<compile_context>
chip_gen: v5e
topology: v5e:2x2
jax: 0.10.0
libtpu: 0.0.40
codegen_flags: <defaults>
</compile_context>

<pallas_src>
import functools

import numpy as np
import jax
import jax.numpy as jnp
from jax.experimental import pallas as pl
from jax.experimental.pallas import tpu as pltpu

NUM_CLASSES = 19      # Cityscapes
CPAD = 128            # lane-dense channel width carried through the network


def _round_up(v, m):
    return (v + m - 1) // m * m


# ----------------------------------------------------------------------------
# Pallas kernel: tiled  O = relu?(A @ B + bias)   (bf16 MXU, f32 accumulate)
# ----------------------------------------------------------------------------
def _mm_kernel(a_ref, b_ref, bias_ref, o_ref, acc_ref, *, relu):
    @pl.when(pl.program_id(2) == 0)
    def _init():
        acc_ref[...] = jnp.zeros_like(acc_ref)

    acc_ref[...] += jnp.dot(a_ref[...], b_ref[...],
                            preferred_element_type=jnp.float32)

    @pl.when(pl.program_id(2) == pl.num_programs(2) - 1)
    def _finalize():
        r = acc_ref[...] + bias_ref[...]
        if relu:
            r = jnp.maximum(r, 0.0)
        o_ref[...] = r.astype(o_ref.dtype)


def _choose_tk(kp):
    """Largest multiple-of-128 tile <= 512 that exactly divides kp."""
    q = kp // 128
    for d in (4, 3, 2, 1):
        if q % d == 0:
            return 128 * d
    return 128


def pallas_mm(a, b, bias=None, relu=False, out_dtype=jnp.float32):
    """a: (M, K), b: (K, N), bias: (N,) or None -> (M, N) in out_dtype."""
    M, K = a.shape
    K2, N = b.shape
    assert K == K2
    a = a.astype(jnp.bfloat16)
    b = b.astype(jnp.bfloat16)
    if bias is None:
        bias = jnp.zeros((N,), jnp.float32)
    bias = bias.astype(jnp.float32)

    tm = min(256, _round_up(M, 16))      # bf16 sublane multiple
    tn = min(256, _round_up(N, 128))     # lane multiple
    Mp = _round_up(M, tm)
    Np = _round_up(N, tn)
    Kp = _round_up(K, 128)
    tk = _choose_tk(Kp)

    a_p = jnp.pad(a, ((0, Mp - M), (0, Kp - K)))
    b_p = jnp.pad(b, ((0, Kp - K), (0, Np - N)))
    bias_p = jnp.pad(bias, (0, Np - N)).reshape(1, Np)

    grid = (Mp // tm, Np // tn, Kp // tk)
    out_bytes = Mp * Np * np.dtype(out_dtype).itemsize
    cost = pl.CostEstimate(
        flops=2 * Mp * Np * Kp,
        transcendentals=0,
        bytes_accessed=Mp * Kp * 2 + Kp * Np * 2 + Np * 4 + out_bytes)

    out = pl.pallas_call(
        functools.partial(_mm_kernel, relu=relu),
        out_shape=jax.ShapeDtypeStruct((Mp, Np), out_dtype),
        grid=grid,
        in_specs=[
            pl.BlockSpec((tm, tk), lambda i, j, k: (i, k)),
            pl.BlockSpec((tk, tn), lambda i, j, k: (k, j)),
            pl.BlockSpec((1, tn), lambda i, j, k: (0, j)),
        ],
        out_specs=pl.BlockSpec((tm, tn), lambda i, j, k: (i, j)),
        scratch_shapes=[pltpu.VMEM((tm, tn), jnp.float32)],
        compiler_params=pltpu.CompilerParams(
            dimension_semantics=("parallel", "parallel", "arbitrary"),
            vmem_limit_bytes=48 * 1024 * 1024),
        cost_estimate=cost,
    )(a_p, b_p, bias_p)

    if Mp != M or Np != N:
        out = out[:M, :N]
    return out


# ----------------------------------------------------------------------------
# 3x3 / stride-2 / pad-1 conv (+ReLU) as patches + fused Pallas GEMM
# ----------------------------------------------------------------------------
def conv3x3_s2(x, w, b, *, relu=True, out_dtype=jnp.bfloat16):
    """x: (B,H,W,Cin) NHWC; w: (9*Cin, Cout); b: (Cout,) -> (B,H/2,W/2,Cout)."""
    # TODO(synk): patch extraction still materializes the 9x window in HBM;
    # folding the 3x3 taps into the matmul grid would remove that extra pass.
    patches = jax.lax.conv_general_dilated_patches(
        x, filter_shape=(3, 3), window_strides=(2, 2),
        padding=((1, 1), (1, 1)),
        dimension_numbers=("NHWC", "HWIO", "NHWC"))
    B, Ho, Wo, K = patches.shape
    y = pallas_mm(patches.reshape(B * Ho * Wo, K), w, bias=b, relu=relu,
                  out_dtype=out_dtype)
    return y.reshape(B, Ho, Wo, -1)


# ----------------------------------------------------------------------------
# Fused double bilinear resize (align_corners=False), separable Pallas passes
# ----------------------------------------------------------------------------
def _bilinear_matrix(out_size, in_size):
    """PyTorch bilinear (align_corners=False) interpolation matrix (numpy)."""
    i = np.arange(out_size, dtype=np.float64)
    s = (i + 0.5) * (in_size / out_size) - 0.5
    s = np.maximum(s, 0.0)                 # PyTorch clamps negative src coords
    i0 = np.floor(s).astype(np.int64)
    frac = (s - i0).astype(np.float32)
    i0 = np.clip(i0, 0, in_size - 1)
    i1 = np.clip(i0 + 1, 0, in_size - 1)
    W = np.zeros((out_size, in_size), np.float32)
    rows = np.arange(out_size)
    np.add.at(W, (rows, i0), 1.0 - frac)
    np.add.at(W, (rows, i1), frac)
    return W


def _resize_rows_kernel(wh_ref, x_ref, o_ref):
    # wh: (toh, h), x: (1, h, w*C) -> o: (1, toh, w*C)
    o_ref[0] = jnp.dot(wh_ref[...], x_ref[0],
                       preferred_element_type=jnp.float32)


def _resize_cols_kernel(ww_ref, y_ref, o_ref, *, toh):
    # ww: (ow, w), y: (1, toh, w, C) -> o: (1, toh, ow, C); C stays in lanes.
    ww = ww_ref[...]
    for t in range(toh):                       # small static unroll
        o_ref[0, t] = jnp.dot(ww, y_ref[0, t],
                              preferred_element_type=jnp.float32)


def _pick_row_tile(oh):
    if oh % 8 != 0:
        return oh
    for t in (32, 24, 16, 8):
        if oh % t == 0:
            return t
    return 8


def fused_double_resize(x, out_h, out_w):
    """Applies the two back-to-back bilinear resizes of the reference forward
    (the second one is the exact identity), composed on the host and lowered
    as two separable Pallas passes:
        pass 1 (rows): y1[b, oy, (x,c)] = sum_y Wh[oy, y] * x[b, y, (x,c)]
        pass 2 (cols): out[b, oy, ox, c] = sum_x Ww[ox, x] * y1[b, oy, x, c]
    Channels stay 128-lane-dense; every store is a full unmasked lane store.
    """
    B, h, w, C = x.shape
    wh = _bilinear_matrix(out_h, out_h) @ _bilinear_matrix(out_h, h)
    ww = _bilinear_matrix(out_w, out_w) @ _bilinear_matrix(out_w, w)
    wh = jnp.asarray(wh.astype(np.float32))        # (out_h, h)
    ww = jnp.asarray(ww.astype(np.float32))        # (out_w, w)

    toh = _pick_row_tile(out_h)
    n_oh = out_h // toh

    xf = x.reshape(B, h, w * C).astype(jnp.float32)

    # pass 1: row interpolation (one matmul per (batch, row-tile))
    y1 = pl.pallas_call(
        _resize_rows_kernel,
        out_shape=jax.ShapeDtypeStruct((B, out_h, w * C), jnp.float32),
        grid=(B, n_oh),
        in_specs=[
            pl.BlockSpec((toh, h), lambda b, i: (i, 0)),
            pl.BlockSpec((1, h, w * C), lambda b, i: (b, 0, 0)),
        ],
        out_specs=pl.BlockSpec((1, toh, w * C), lambda b, i: (b, i, 0)),
        compiler_params=pltpu.CompilerParams(
            dimension_semantics=("parallel", "parallel")),
    )(wh, xf)

    y1 = y1.reshape(B, out_h, w, C)

    # pass 2: column interpolation (per-output-row matmuls, C in lanes)
    out = pl.pallas_call(
        functools.partial(_resize_cols_kernel, toh=toh),
        out_shape=jax.ShapeDtypeStruct((B, out_h, out_w, C), jnp.float32),
        grid=(B, n_oh),
        in_specs=[
            pl.BlockSpec((out_w, w), lambda b, i: (0, 0)),
            pl.BlockSpec((1, toh, w, C), lambda b, i: (b, i, 0, 0)),
        ],
        out_specs=pl.BlockSpec((1, toh, out_w, C), lambda b, i: (b, i, 0, 0)),
        compiler_params=pltpu.CompilerParams(
            dimension_semantics=("parallel", "parallel")),
    )(ww, y1)
    return out


# ----------------------------------------------------------------------------
# Synthetic SeaFormer-like model (weights stored 128-lane-dense)
# ----------------------------------------------------------------------------
def init_params(key, in_ch=3, stem=(16, 32, 64), num_classes=NUM_CLASSES):
    params = {"convs": []}
    c_in = in_ch
    for c_out in stem:
        key, kw, kb = jax.random.split(key, 3)
        fan_in = 9 * c_in
        col_mask = (jnp.arange(CPAD) < c_out).astype(jnp.float32)
        w = (jax.random.normal(kw, (fan_in, CPAD), jnp.float32)
             / float(np.sqrt(fan_in))) * col_mask[None, :]
        b = 0.01 * jax.random.normal(kb, (CPAD,), jnp.float32) * col_mask
        params["convs"].append((w, b))
        c_in = CPAD              # activations carried 128-lane-dense from here
    key, kw, kb = jax.random.split(key, 3)
    col_mask = (jnp.arange(CPAD) < num_classes).astype(jnp.float32)
    params["head_w"] = (jax.random.normal(kw, (CPAD, CPAD), jnp.float32)
                        / float(np.sqrt(CPAD))) * col_mask[None, :]
    params["head_b"] = 0.01 * jax.random.normal(kb, (CPAD,), jnp.float32) * col_mask
    return params


def forward(params, input_tensor):
    """input_tensor: (B, C, H, W) NCHW f32 -> seg_logit (B, NUM_CLASSES, H, W)."""
    B, C, H, W = input_tensor.shape
    x = jnp.transpose(input_tensor, (0, 2, 3, 1))            # -> NHWC

    # "backbone": 3 x (3x3 stride-2 conv + ReLU), channels kept 128-lane-dense
    for (w, b) in params["convs"]:
        x = conv3x3_s2(x, w, b, relu=True, out_dtype=jnp.bfloat16)

    # "decode_head": 1x1 conv -> num_classes (zero-padded to 128 lanes)
    Bh, Hh, Wh_, Ch = x.shape
    logits = pallas_mm(x.reshape(Bh * Hh * Wh_, Ch), params["head_w"],
                       bias=params["head_b"], relu=False,
                       out_dtype=jnp.float32)
    logits = logits.reshape(Bh, Hh, Wh_, CPAD)

    # two bilinear resizes (align_corners=False) to the input size, composed
    # and lowered as two separable Pallas passes
    seg = fused_double_resize(logits, H, W)                   # (B, H, W, 128)
    seg = seg[..., :NUM_CLASSES]                              # slice once, at the end
    return jnp.transpose(seg, (0, 3, 1, 2))                   # back to NCHW


if __name__ == "__main__":
    key = jax.random.PRNGKey(0)
    B, Cin, H, W = 2, 3, 32, 32
    key, kx = jax.random.split(key)
    x = jax.random.normal(kx, (B, Cin, H, W), jnp.float32)

    params = init_params(jax.random.PRNGKey(0))

    fwd = jax.jit(lambda inp: forward(params, inp))
    out = jax.block_until_ready(fwd(x))

    assert out.shape == (B, NUM_CLASSES, H, W), out.shape
    assert out.dtype == jnp.float32
    assert bool(jnp.all(jnp.isfinite(out)))
    print("KERNEL_OK")
</pallas_src>

<mosaic_0001>
module attributes {stable_mosaic.version = 11 : i64} {
  func.func @_mm_kernel(%arg0: i32, %arg1: i32, %arg2: i32, %arg3: memref<256x128xbf16, #tpu.memory_space<vmem>>, %arg4: memref<128x128xbf16, #tpu.memory_space<vmem>>, %arg5: memref<1x128xf32, #tpu.memory_space<vmem>>, %arg6: memref<256x128xbf16, #tpu.memory_space<vmem>>, %arg7: memref<256x128xf32, #tpu.memory_space<vmem>>) attributes {dimension_semantics = [#tpu.dimension_semantics<parallel>, #tpu.dimension_semantics<parallel>, #tpu.dimension_semantics<arbitrary>], iteration_bounds = array<i64: 2, 1, 1>, scalar_prefetch = 0 : i64, scratch_operands = 1 : i64, tpu.core_type = #tpu.core_type<tc>, window_params = [{transform_indices = @transform_0, window_bounds = array<i64: 256, 128>}, {transform_indices = @transform_1, window_bounds = array<i64: 128, 128>}, {transform_indices = @transform_2, window_bounds = array<i64: 1, 128>}, {transform_indices = @transform_3, window_bounds = array<i64: 256, 128>}]} {
    %c0_i32 = arith.constant 0 : i32
    %0 = arith.cmpi eq, %arg2, %c0_i32 : i32
    %1 = arith.extui %0 : i1 to i32
    %c0_i32_0 = arith.constant 0 : i32
    %2 = arith.cmpi ne, %1, %c0_i32_0 : i32
    scf.if %2 {
      %cst_10 = arith.constant 0.000000e+00 : f32
      %12 = vector.broadcast %cst_10 : f32 to vector<256x128xf32>
      %c0_11 = arith.constant 0 : index
      %c0_12 = arith.constant 0 : index
      %13 = vector.load %arg7[%c0_11, %c0_12] : memref<256x128xf32, #tpu.memory_space<vmem>>, vector<256x128xf32>
      tpu.vector_store %arg7[%c0_11, %c0_12], %12 {strides = array<i32>} : memref<256x128xf32, #tpu.memory_space<vmem>>, vector<256x128xf32>,
    } else {
    }
    %c0 = arith.constant 0 : index
    %c0_1 = arith.constant 0 : index
    %3 = vector.load %arg7[%c0, %c0_1] : memref<256x128xf32, #tpu.memory_space<vmem>>, vector<256x128xf32>
    %c0_2 = arith.constant 0 : index
    %c0_3 = arith.constant 0 : index
    %4 = vector.load %arg3[%c0_2, %c0_3] : memref<256x128xbf16, #tpu.memory_space<vmem>>, vector<256x128xbf16>
    %c0_4 = arith.constant 0 : index
    %c0_5 = arith.constant 0 : index
    %5 = vector.load %arg4[%c0_4, %c0_5] : memref<128x128xbf16, #tpu.memory_space<vmem>>, vector<128x128xbf16>
    %cst = arith.constant dense<0.000000e+00> : vector<256x128xf32>
    %6 = tpu.matmul %4, %5, %cst {dimension_numbers = #tpu.dot_dimension_numbers<[1], [0], [0], [1], [0, 0, 1, 1], [], []>} : vector<256x128xbf16>, vector<128x128xbf16>, vector<256x128xf32> -> vector<256x128xf32>
    %7 = arith.addf %3, %6 : vector<256x128xf32>
    %c0_6 = arith.constant 0 : index
    %c0_7 = arith.constant 0 : index
    %8 = vector.load %arg7[%c0_6, %c0_7] : memref<256x128xf32, #tpu.memory_space<vmem>>, vector<256x128xf32>
    tpu.vector_store %arg7[%c0_6, %c0_7], %7 {strides = array<i32>} : memref<256x128xf32, #tpu.memory_space<vmem>>, vector<256x128xf32>,
    %c0_i32_8 = arith.constant 0 : i32
    %9 = arith.cmpi eq, %arg2, %c0_i32_8 : i32
    %10 = arith.extui %9 : i1 to i32
    %c0_i32_9 = arith.constant 0 : i32
    %11 = arith.cmpi ne, %10, %c0_i32_9 : i32
    scf.if %11 {
      %c0_10 = arith.constant 0 : index
      %c0_11 = arith.constant 0 : index
      %12 = vector.load %arg7[%c0_10, %c0_11] : memref<256x128xf32, #tpu.memory_space<vmem>>, vector<256x128xf32>
      %c0_12 = arith.constant 0 : index
      %c0_13 = arith.constant 0 : index
      %13 = vector.load %arg5[%c0_12, %c0_13] : memref<1x128xf32, #tpu.memory_space<vmem>>, vector<1x128xf32>
      %14 = vector.broadcast %13 : vector<1x128xf32> to vector<256x128xf32>
      %15 = arith.addf %12, %14 : vector<256x128xf32>
      %cst_14 = arith.constant 0.000000e+00 : f32
      %16 = vector.broadcast %cst_14 : f32 to vector<256x128xf32>
      %17 = arith.maximumf %15, %16 : vector<256x128xf32>
      %18 = arith.truncf %17 : vector<256x128xf32> to vector<256x128xbf16>
      %c0_15 = arith.constant 0 : index
      %c0_16 = arith.constant 0 : index
      %19 = vector.load %arg6[%c0_15, %c0_16] : memref<256x128xbf16, #tpu.memory_space<vmem>>, vector<256x128xbf16>
      tpu.vector_store %arg6[%c0_15, %c0_16], %18 {strides = array<i32>} : memref<256x128xbf16, #tpu.memory_space<vmem>>, vector<256x128xbf16>,
    } else {
    }
    return
  }
  func.func @transform_0(%arg0: i32, %arg1: i32, %arg2: i32) -> (i32, i32) {
    %c0_i32 = arith.constant 0 : i32
    return %arg0, %arg2 : i32, i32
  }
  func.func @transform_1(%arg0: i32, %arg1: i32, %arg2: i32) -> (i32, i32) {
    %c0_i32 = arith.constant 0 : i32
    return %arg2, %arg1 : i32, i32
  }
  func.func @transform_2(%arg0: i32, %arg1: i32, %arg2: i32) -> (i32, i32) {
    %c0_i32 = arith.constant 0 : i32
    %c0_i32_0 = arith.constant 0 : i32
    return %c0_i32, %arg1 : i32, i32
  }
  func.func @transform_3(%arg0: i32, %arg1: i32, %arg2: i32) -> (i32, i32) {
    %c0_i32 = arith.constant 0 : i32
    return %arg0, %arg1 : i32, i32
  }
}

module attributes {stable_mosaic.version = 11 : i64} {
  func.func @_mm_kernel(%arg0: i32, %arg1: i32, %arg2: i32, %arg3: memref<128x384xbf16, #tpu.memory_space<vmem>>, %arg4: memref<384x128xbf16, #tpu.memory_space<vmem>>, %arg5: memref<1x128xf32, #tpu.memory_space<vmem>>, %arg6: memref<128x128xbf16, #tpu.memory_space<vmem>>, %arg7: memref<128x128xf32, #tpu.memory_space<vmem>>) attributes {dimension_semantics = [#tpu.dimension_semantics<parallel>, #tpu.dimension_semantics<parallel>, #tpu.dimension_semantics<arbitrary>], iteration_bounds = array<i64: 1, 1, 3>, scalar_prefetch = 0 : i64, scratch_operands = 1 : i64, tpu.core_type = #tpu.core_type<tc>, window_params = [{transform_indices = @transform_0, window_bounds = array<i64: 128, 384>}, {transform_indices = @transform_1, window_bounds = array<i64: 384, 128>}, {transform_indices = @transform_2, window_bounds = array<i64: 1, 128>}, {transform_indices = @transform_3, window_bounds = array<i64: 128, 128>}]} {
    %c0_i32 = arith.constant 0 : i32
    %0 = arith.cmpi eq, %arg2, %c0_i32 : i32
    %1 = arith.extui %0 : i1 to i32
    %c0_i32_0 = arith.constant 0 : i32
    %2 = arith.cmpi ne, %1, %c0_i32_0 : i32
    scf.if %2 {
      %cst_9 = arith.constant 0.000000e+00 : f32
      %12 = vector.broadcast %cst_9 : f32 to vector<128x128xf32>
      %c0_10 = arith.constant 0 : index
      %c0_11 = arith.constant 0 : index
      %13 = vector.load %arg7[%c0_10, %c0_11] : memref<128x128xf32, #tpu.memory_space<vmem>>, vector<128x128xf32>
      tpu.vector_store %arg7[%c0_10, %c0_11], %12 {strides = array<i32>} : memref<128x128xf32, #tpu.memory_space<vmem>>, vector<128x128xf32>,
    } else {
    }
    %c0 = arith.constant 0 : index
    %c0_1 = arith.constant 0 : index
    %3 = vector.load %arg7[%c0, %c0_1] : memref<128x128xf32, #tpu.memory_space<vmem>>, vector<128x128xf32>
    %c0_2 = arith.constant 0 : index
    %c0_3 = arith.constant 0 : index
    %4 = vector.load %arg3[%c0_2, %c0_3] : memref<128x384xbf16, #tpu.memory_space<vmem>>, vector<128x384xbf16>
    %c0_4 = arith.constant 0 : index
    %c0_5 = arith.constant 0 : index
    %5 = vector.load %arg4[%c0_4, %c0_5] : memref<384x128xbf16, #tpu.memory_space<vmem>>, vector<384x128xbf16>
    %cst = arith.constant dense<0.000000e+00> : vector<128x128xf32>
    %6 = tpu.matmul %4, %5, %cst {dimension_numbers = #tpu.dot_dimension_numbers<[1], [0], [0], [1], [0, 0, 1, 1], [], []>} : vector<128x384xbf16>, vector<384x128xbf16>, vector<128x128xf32> -> vector<128x128xf32>
    %7 = arith.addf %3, %6 : vector<128x128xf32>
    %c0_6 = arith.constant 0 : index
    %c0_7 = arith.constant 0 : index
    %8 = vector.load %arg7[%c0_6, %c0_7] : memref<128x128xf32, #tpu.memory_space<vmem>>, vector<128x128xf32>
    tpu.vector_store %arg7[%c0_6, %c0_7], %7 {strides = array<i32>} : memref<128x128xf32, #tpu.memory_space<vmem>>, vector<128x128xf32>,
    %c2_i32 = arith.constant 2 : i32
    %9 = arith.cmpi eq, %arg2, %c2_i32 : i32
    %10 = arith.extui %9 : i1 to i32
    %c0_i32_8 = arith.constant 0 : i32
    %11 = arith.cmpi ne, %10, %c0_i32_8 : i32
    scf.if %11 {
      %c0_9 = arith.constant 0 : index
      %c0_10 = arith.constant 0 : index
      %12 = vector.load %arg7[%c0_9, %c0_10] : memref<128x128xf32, #tpu.memory_space<vmem>>, vector<128x128xf32>
      %c0_11 = arith.constant 0 : index
      %c0_12 = arith.constant 0 : index
      %13 = vector.load %arg5[%c0_11, %c0_12] : memref<1x128xf32, #tpu.memory_space<vmem>>, vector<1x128xf32>
      %14 = vector.broadcast %13 : vector<1x128xf32> to vector<128x128xf32>
      %15 = arith.addf %12, %14 : vector<128x128xf32>
      %cst_13 = arith.constant 0.000000e+00 : f32
      %16 = vector.broadcast %cst_13 : f32 to vector<128x128xf32>
      %17 = arith.maximumf %15, %16 : vector<128x128xf32>
      %18 = arith.truncf %17 : vector<128x128xf32> to vector<128x128xbf16>
      %c0_14 = arith.constant 0 : index
      %c0_15 = arith.constant 0 : index
      %19 = vector.load %arg6[%c0_14, %c0_15] : memref<128x128xbf16, #tpu.memory_space<vmem>>, vector<128x128xbf16>
      tpu.vector_store %arg6[%c0_14, %c0_15], %18 {strides = array<i32>} : memref<128x128xbf16, #tpu.memory_space<vmem>>, vector<128x128xbf16>,
    } else {
    }
    return
  }
  func.func @transform_0(%arg0: i32, %arg1: i32, %arg2: i32) -> (i32, i32) {
    %c0_i32 = arith.constant 0 : i32
    return %arg0, %arg2 : i32, i32
  }
  func.func @transform_1(%arg0: i32, %arg1: i32, %arg2: i32) -> (i32, i32) {
    %c0_i32 = arith.constant 0 : i32
    return %arg2, %arg1 : i32, i32
  }
  func.func @transform_2(%arg0: i32, %arg1: i32, %arg2: i32) -> (i32, i32) {
    %c0_i32 = arith.constant 0 : i32
    %c0_i32_0 = arith.constant 0 : i32
    return %c0_i32, %arg1 : i32, i32
  }
  func.func @transform_3(%arg0: i32, %arg1: i32, %arg2: i32) -> (i32, i32) {
    %c0_i32 = arith.constant 0 : i32
    return %arg0, %arg1 : i32, i32
  }
}

module attributes {stable_mosaic.version = 11 : i64} {
  func.func @_mm_kernel(%arg0: i32, %arg1: i32, %arg2: i32, %arg3: memref<32x384xbf16, #tpu.memory_space<vmem>>, %arg4: memref<384x128xbf16, #tpu.memory_space<vmem>>, %arg5: memref<1x128xf32, #tpu.memory_space<vmem>>, %arg6: memref<32x128xbf16, #tpu.memory_space<vmem>>, %arg7: memref<32x128xf32, #tpu.memory_space<vmem>>) attributes {dimension_semantics = [#tpu.dimension_semantics<parallel>, #tpu.dimension_semantics<parallel>, #tpu.dimension_semantics<arbitrary>], iteration_bounds = array<i64: 1, 1, 3>, scalar_prefetch = 0 : i64, scratch_operands = 1 : i64, tpu.core_type = #tpu.core_type<tc>, window_params = [{transform_indices = @transform_0, window_bounds = array<i64: 32, 384>}, {transform_indices = @transform_1, window_bounds = array<i64: 384, 128>}, {transform_indices = @transform_2, window_bounds = array<i64: 1, 128>}, {transform_indices = @transform_3, window_bounds = array<i64: 32, 128>}]} {
    %c0_i32 = arith.constant 0 : i32
    %0 = arith.cmpi eq, %arg2, %c0_i32 : i32
    %1 = arith.extui %0 : i1 to i32
    %c0_i32_0 = arith.constant 0 : i32
    %2 = arith.cmpi ne, %1, %c0_i32_0 : i32
    scf.if %2 {
      %cst_9 = arith.constant 0.000000e+00 : f32
      %12 = vector.broadcast %cst_9 : f32 to vector<32x128xf32>
      %c0_10 = arith.constant 0 : index
      %c0_11 = arith.constant 0 : index
      %13 = vector.load %arg7[%c0_10, %c0_11] : memref<32x128xf32, #tpu.memory_space<vmem>>, vector<32x128xf32>
      tpu.vector_store %arg7[%c0_10, %c0_11], %12 {strides = array<i32>} : memref<32x128xf32, #tpu.memory_space<vmem>>, vector<32x128xf32>,
    } else {
    }
    %c0 = arith.constant 0 : index
    %c0_1 = arith.constant 0 : index
    %3 = vector.load %arg7[%c0, %c0_1] : memref<32x128xf32, #tpu.memory_space<vmem>>, vector<32x128xf32>
    %c0_2 = arith.constant 0 : index
    %c0_3 = arith.constant 0 : index
    %4 = vector.load %arg3[%c0_2, %c0_3] : memref<32x384xbf16, #tpu.memory_space<vmem>>, vector<32x384xbf16>
    %c0_4 = arith.constant 0 : index
    %c0_5 = arith.constant 0 : index
    %5 = vector.load %arg4[%c0_4, %c0_5] : memref<384x128xbf16, #tpu.memory_space<vmem>>, vector<384x128xbf16>
    %cst = arith.constant dense<0.000000e+00> : vector<32x128xf32>
    %6 = tpu.matmul %4, %5, %cst {dimension_numbers = #tpu.dot_dimension_numbers<[1], [0], [0], [1], [0, 0, 1, 1], [], []>} : vector<32x384xbf16>, vector<384x128xbf16>, vector<32x128xf32> -> vector<32x128xf32>
    %7 = arith.addf %3, %6 : vector<32x128xf32>
    %c0_6 = arith.constant 0 : index
    %c0_7 = arith.constant 0 : index
    %8 = vector.load %arg7[%c0_6, %c0_7] : memref<32x128xf32, #tpu.memory_space<vmem>>, vector<32x128xf32>
    tpu.vector_store %arg7[%c0_6, %c0_7], %7 {strides = array<i32>} : memref<32x128xf32, #tpu.memory_space<vmem>>, vector<32x128xf32>,
    %c2_i32 = arith.constant 2 : i32
    %9 = arith.cmpi eq, %arg2, %c2_i32 : i32
    %10 = arith.extui %9 : i1 to i32
    %c0_i32_8 = arith.constant 0 : i32
    %11 = arith.cmpi ne, %10, %c0_i32_8 : i32
    scf.if %11 {
      %c0_9 = arith.constant 0 : index
      %c0_10 = arith.constant 0 : index
      %12 = vector.load %arg7[%c0_9, %c0_10] : memref<32x128xf32, #tpu.memory_space<vmem>>, vector<32x128xf32>
      %c0_11 = arith.constant 0 : index
      %c0_12 = arith.constant 0 : index
      %13 = vector.load %arg5[%c0_11, %c0_12] : memref<1x128xf32, #tpu.memory_space<vmem>>, vector<1x128xf32>
      %14 = vector.broadcast %13 : vector<1x128xf32> to vector<32x128xf32>
      %15 = arith.addf %12, %14 : vector<32x128xf32>
      %cst_13 = arith.constant 0.000000e+00 : f32
      %16 = vector.broadcast %cst_13 : f32 to vector<32x128xf32>
      %17 = arith.maximumf %15, %16 : vector<32x128xf32>
      %18 = arith.truncf %17 : vector<32x128xf32> to vector<32x128xbf16>
      %c0_14 = arith.constant 0 : index
      %c0_15 = arith.constant 0 : index
      %19 = vector.load %arg6[%c0_14, %c0_15] : memref<32x128xbf16, #tpu.memory_space<vmem>>, vector<32x128xbf16>
      tpu.vector_store %arg6[%c0_14, %c0_15], %18 {strides = array<i32>} : memref<32x128xbf16, #tpu.memory_space<vmem>>, vector<32x128xbf16>,
    } else {
    }
    return
  }
  func.func @transform_0(%arg0: i32, %arg1: i32, %arg2: i32) -> (i32, i32) {
    %c0_i32 = arith.constant 0 : i32
    return %arg0, %arg2 : i32, i32
  }
  func.func @transform_1(%arg0: i32, %arg1: i32, %arg2: i32) -> (i32, i32) {
    %c0_i32 = arith.constant 0 : i32
    return %arg2, %arg1 : i32, i32
  }
  func.func @transform_2(%arg0: i32, %arg1: i32, %arg2: i32) -> (i32, i32) {
    %c0_i32 = arith.constant 0 : i32
    %c0_i32_0 = arith.constant 0 : i32
    return %c0_i32, %arg1 : i32, i32
  }
  func.func @transform_3(%arg0: i32, %arg1: i32, %arg2: i32) -> (i32, i32) {
    %c0_i32 = arith.constant 0 : i32
    return %arg0, %arg1 : i32, i32
  }
}

module attributes {stable_mosaic.version = 11 : i64} {
  func.func @_mm_kernel(%arg0: i32, %arg1: i32, %arg2: i32, %arg3: memref<32x128xbf16, #tpu.memory_space<vmem>>, %arg4: memref<128x128xbf16, #tpu.memory_space<vmem>>, %arg5: memref<1x128xf32, #tpu.memory_space<vmem>>, %arg6: memref<32x128xf32, #tpu.memory_space<vmem>>, %arg7: memref<32x128xf32, #tpu.memory_space<vmem>>) attributes {dimension_semantics = [#tpu.dimension_semantics<parallel>, #tpu.dimension_semantics<parallel>, #tpu.dimension_semantics<arbitrary>], iteration_bounds = array<i64: 1, 1, 1>, scalar_prefetch = 0 : i64, scratch_operands = 1 : i64, tpu.core_type = #tpu.core_type<tc>, window_params = [{transform_indices = @transform_0, window_bounds = array<i64: 32, 128>}, {transform_indices = @transform_1, window_bounds = array<i64: 128, 128>}, {transform_indices = @transform_2, window_bounds = array<i64: 1, 128>}, {transform_indices = @transform_3, window_bounds = array<i64: 32, 128>}]} {
    %c0_i32 = arith.constant 0 : i32
    %0 = arith.cmpi eq, %arg2, %c0_i32 : i32
    %1 = arith.extui %0 : i1 to i32
    %c0_i32_0 = arith.constant 0 : i32
    %2 = arith.cmpi ne, %1, %c0_i32_0 : i32
    scf.if %2 {
      %cst_10 = arith.constant 0.000000e+00 : f32
      %12 = vector.broadcast %cst_10 : f32 to vector<32x128xf32>
      %c0_11 = arith.constant 0 : index
      %c0_12 = arith.constant 0 : index
      %13 = vector.load %arg7[%c0_11, %c0_12] : memref<32x128xf32, #tpu.memory_space<vmem>>, vector<32x128xf32>
      tpu.vector_store %arg7[%c0_11, %c0_12], %12 {strides = array<i32>} : memref<32x128xf32, #tpu.memory_space<vmem>>, vector<32x128xf32>,
    } else {
    }
    %c0 = arith.constant 0 : index
    %c0_1 = arith.constant 0 : index
    %3 = vector.load %arg7[%c0, %c0_1] : memref<32x128xf32, #tpu.memory_space<vmem>>, vector<32x128xf32>
    %c0_2 = arith.constant 0 : index
    %c0_3 = arith.constant 0 : index
    %4 = vector.load %arg3[%c0_2, %c0_3] : memref<32x128xbf16, #tpu.memory_space<vmem>>, vector<32x128xbf16>
    %c0_4 = arith.constant 0 : index
    %c0_5 = arith.constant 0 : index
    %5 = vector.load %arg4[%c0_4, %c0_5] : memref<128x128xbf16, #tpu.memory_space<vmem>>, vector<128x128xbf16>
    %cst = arith.constant dense<0.000000e+00> : vector<32x128xf32>
    %6 = tpu.matmul %4, %5, %cst {dimension_numbers = #tpu.dot_dimension_numbers<[1], [0], [0], [1], [0, 0, 1, 1], [], []>} : vector<32x128xbf16>, vector<128x128xbf16>, vector<32x128xf32> -> vector<32x128xf32>
    %7 = arith.addf %3, %6 : vector<32x128xf32>
    %c0_6 = arith.constant 0 : index
    %c0_7 = arith.constant 0 : index
    %8 = vector.load %arg7[%c0_6, %c0_7] : memref<32x128xf32, #tpu.memory_space<vmem>>, vector<32x128xf32>
    tpu.vector_store %arg7[%c0_6, %c0_7], %7 {strides = array<i32>} : memref<32x128xf32, #tpu.memory_space<vmem>>, vector<32x128xf32>,
    %c0_i32_8 = arith.constant 0 : i32
    %9 = arith.cmpi eq, %arg2, %c0_i32_8 : i32
    %10 = arith.extui %9 : i1 to i32
    %c0_i32_9 = arith.constant 0 : i32
    %11 = arith.cmpi ne, %10, %c0_i32_9 : i32
    scf.if %11 {
      %c0_10 = arith.constant 0 : index
      %c0_11 = arith.constant 0 : index
      %12 = vector.load %arg7[%c0_10, %c0_11] : memref<32x128xf32, #tpu.memory_space<vmem>>, vector<32x128xf32>
      %c0_12 = arith.constant 0 : index
      %c0_13 = arith.constant 0 : index
      %13 = vector.load %arg5[%c0_12, %c0_13] : memref<1x128xf32, #tpu.memory_space<vmem>>, vector<1x128xf32>
      %14 = vector.broadcast %13 : vector<1x128xf32> to vector<32x128xf32>
      %15 = arith.addf %12, %14 : vector<32x128xf32>
      %c0_14 = arith.constant 0 : index
      %c0_15 = arith.constant 0 : index
      %16 = vector.load %arg6[%c0_14, %c0_15] : memref<32x128xf32, #tpu.memory_space<vmem>>, vector<32x128xf32>
      tpu.vector_store %arg6[%c0_14, %c0_15], %15 {strides = array<i32>} : memref<32x128xf32, #tpu.memory_space<vmem>>, vector<32x128xf32>,
    } else {
    }
    return
  }
  func.func @transform_0(%arg0: i32, %arg1: i32, %arg2: i32) -> (i32, i32) {
    %c0_i32 = arith.constant 0 : i32
    return %arg0, %arg2 : i32, i32
  }
  func.func @transform_1(%arg0: i32, %arg1: i32, %arg2: i32) -> (i32, i32) {
    %c0_i32 = arith.constant 0 : i32
    return %arg2, %arg1 : i32, i32
  }
  func.func @transform_2(%arg0: i32, %arg1: i32, %arg2: i32) -> (i32, i32) {
    %c0_i32 = arith.constant 0 : i32
    %c0_i32_0 = arith.constant 0 : i32
    return %c0_i32, %arg1 : i32, i32
  }
  func.func @transform_3(%arg0: i32, %arg1: i32, %arg2: i32) -> (i32, i32) {
    %c0_i32 = arith.constant 0 : i32
    return %arg0, %arg1 : i32, i32
  }
}

module attributes {stable_mosaic.version = 11 : i64} {
  func.func @_resize_rows_kernel(%arg0: i32, %arg1: i32, %arg2: memref<32x4xf32, #tpu.memory_space<vmem>>, %arg3: memref<1x4x512xf32, #tpu.memory_space<vmem>>, %arg4: memref<1x32x512xf32, #tpu.memory_space<vmem>>) attributes {dimension_semantics = [#tpu.dimension_semantics<parallel>, #tpu.dimension_semantics<parallel>], iteration_bounds = array<i64: 2, 1>, scalar_prefetch = 0 : i64, scratch_operands = 0 : i64, tpu.core_type = #tpu.core_type<tc>, window_params = [{transform_indices = @transform_0, window_bounds = array<i64: 32, 4>}, {transform_indices = @transform_1, window_bounds = array<i64: 1, 4, 512>}, {transform_indices = @transform_2, window_bounds = array<i64: 1, 32, 512>}]} {
    %c0 = arith.constant 0 : index
    %c0_0 = arith.constant 0 : index
    %0 = vector.load %arg2[%c0, %c0_0] : memref<32x4xf32, #tpu.memory_space<vmem>>, vector<32x4xf32>
    %c0_1 = arith.constant 0 : index
    %c0_2 = arith.constant 0 : index
    %c0_3 = arith.constant 0 : index
    %1 = vector.load %arg3[%c0_1, %c0_2, %c0_3] : memref<1x4x512xf32, #tpu.memory_space<vmem>>, vector<1x4x512xf32>
    %2 = vector.shape_cast %1 : vector<1x4x512xf32> to vector<4x512xf32>
    %cst = arith.constant dense<0.000000e+00> : vector<32x512xf32>
    %3 = tpu.matmul %0, %2, %cst {dimension_numbers = #tpu.dot_dimension_numbers<[1], [0], [0], [1], [0, 0, 1, 1], [], []>} : vector<32x4xf32>, vector<4x512xf32>, vector<32x512xf32> -> vector<32x512xf32>
    %c0_4 = arith.constant 0 : index
    %c0_5 = arith.constant 0 : index
    %c0_6 = arith.constant 0 : index
    %4 = vector.load %arg4[%c0_4, %c0_5, %c0_6] : memref<1x32x512xf32, #tpu.memory_space<vmem>>, vector<1x32x512xf32>
    %5 = vector.shape_cast %4 : vector<1x32x512xf32> to vector<32x512xf32>
    %6 = vector.shape_cast %3 : vector<32x512xf32> to vector<1x32x512xf32>
    tpu.vector_store %arg4[%c0_4, %c0_5, %c0_6], %6 {strides = array<i32>} : memref<1x32x512xf32, #tpu.memory_space<vmem>>, vector<1x32x512xf32>,
    return
  }
  func.func @transform_0(%arg0: i32, %arg1: i32) -> (i32, i32) {
    %c0_i32 = arith.constant 0 : i32
    %c0_i32_0 = arith.constant 0 : i32
    return %arg1, %c0_i32 : i32, i32
  }
  func.func @transform_1(%arg0: i32, %arg1: i32) -> (i32, i32, i32) {
    %c0_i32 = arith.constant 0 : i32
    %c0_i32_0 = arith.constant 0 : i32
    %c0_i32_1 = arith.constant 0 : i32
    return %arg0, %c0_i32, %c0_i32_0 : i32, i32, i32
  }
  func.func @transform_2(%arg0: i32, %arg1: i32) -> (i32, i32, i32) {
    %c0_i32 = arith.constant 0 : i32
    %c0_i32_0 = arith.constant 0 : i32
    return %arg0, %arg1, %c0_i32 : i32, i32, i32
  }
}

module attributes {stable_mosaic.version = 11 : i64} {
  func.func @_resize_cols_kernel(%arg0: i32, %arg1: i32, %arg2: memref<32x4xf32, #tpu.memory_space<vmem>>, %arg3: memref<1x32x4x128xf32, #tpu.memory_space<vmem>>, %arg4: memref<1x32x32x128xf32, #tpu.memory_space<vmem>>) attributes {dimension_semantics = [#tpu.dimension_semantics<parallel>, #tpu.dimension_semantics<parallel>], iteration_bounds = array<i64: 2, 1>, scalar_prefetch = 0 : i64, scratch_operands = 0 : i64, tpu.core_type = #tpu.core_type<tc>, window_params = [{pipeline_mode = #tpu.pipeline_mode<synchronous>, transform_indices = @transform_0, window_bounds = array<i64: 32, 4>}, {transform_indices = @transform_1, window_bounds = array<i64: 1, 32, 4, 128>}, {transform_indices = @transform_2, window_bounds = array<i64: 1, 32, 32, 128>}]} {
    %c0 = arith.constant 0 : index
    %c0_0 = arith.constant 0 : index
    %0 = vector.load %arg2[%c0, %c0_0] : memref<32x4xf32, #tpu.memory_space<vmem>>, vector<32x4xf32>
    %c0_1 = arith.constant 0 : index
    %c0_2 = arith.constant 0 : index
    %c0_3 = arith.constant 0 : index
    %c0_4 = arith.constant 0 : index
    %1 = vector.load %arg3[%c0_1, %c0_2, %c0_3, %c0_4] : memref<1x32x4x128xf32, #tpu.memory_space<vmem>>, vector<1x1x4x128xf32>
    %2 = vector.shape_cast %1 : vector<1x1x4x128xf32> to vector<4x128xf32>
    %cst = arith.constant dense<0.000000e+00> : vector<32x128xf32>
    %3 = tpu.matmul %0, %2, %cst {dimension_numbers = #tpu.dot_dimension_numbers<[1], [0], [0], [1], [0, 0, 1, 1], [], []>} : vector<32x4xf32>, vector<4x128xf32>, vector<32x128xf32> -> vector<32x128xf32>
    %c0_5 = arith.constant 0 : index
    %c0_6 = arith.constant 0 : index
    %c0_7 = arith.constant 0 : index
    %c0_8 = arith.constant 0 : index
    %4 = vector.load %arg4[%c0_5, %c0_6, %c0_7, %c0_8] : memref<1x32x32x128xf32, #tpu.memory_space<vmem>>, vector<1x1x32x128xf32>
    %5 = vector.shape_cast %4 : vector<1x1x32x128xf32> to vector<32x128xf32>
    %6 = vector.shape_cast %3 : vector<32x128xf32> to vector<1x1x32x128xf32>
    tpu.vector_store %arg4[%c0_5, %c0_6, %c0_7, %c0_8], %6 {strides = array<i32>} : memref<1x32x32x128xf32, #tpu.memory_space<vmem>>, vector<1x1x32x128xf32>,
    %c0_9 = arith.constant 0 : index
    %c1 = arith.constant 1 : index
    %c0_10 = arith.constant 0 : index
    %c0_11 = arith.constant 0 : index
    %7 = vector.load %arg3[%c0_9, %c1, %c0_10, %c0_11] : memref<1x32x4x128xf32, #tpu.memory_space<vmem>>, vector<1x1x4x128xf32>
    %8 = vector.shape_cast %7 : vector<1x1x4x128xf32> to vector<4x128xf32>
    %cst_12 = arith.constant dense<0.000000e+00> : vector<32x128xf32>
    %9 = tpu.matmul %0, %8, %cst_12 {dimension_numbers = #tpu.dot_dimension_numbers<[1], [0], [0], [1], [0, 0, 1, 1], [], []>} : vector<32x4xf32>, vector<4x128xf32>, vector<32x128xf32> -> vector<32x128xf32>
    %c0_13 = arith.constant 0 : index
    %c1_14 = arith.constant 1 : index
    %c0_15 = arith.constant 0 : index
    %c0_16 = arith.constant 0 : index
    %10 = vector.load %arg4[%c0_13, %c1_14, %c0_15, %c0_16] : memref<1x32x32x128xf32, #tpu.memory_space<vmem>>, vector<1x1x32x128xf32>
    %11 = vector.shape_cast %10 : vector<1x1x32x128xf32> to vector<32x128xf32>
    %12 = vector.shape_cast %9 : vector<32x128xf32> to vector<1x1x32x128xf32>
    tpu.vector_store %arg4[%c0_13, %c1_14, %c0_15, %c0_16], %12 {strides = array<i32>} : memref<1x32x32x128xf32, #tpu.memory_space<vmem>>, vector<1x1x32x128xf32>,
    %c0_17 = arith.constant 0 : index
    %c2 = arith.constant 2 : index
    %c0_18 = arith.constant 0 : index
    %c0_19 = arith.constant 0 : index
    %13 = vector.load %arg3[%c0_17, %c2, %c0_18, %c0_19] : memref<1x32x4x128xf32, #tpu.memory_space<vmem>>, vector<1x1x4x128xf32>
    %14 = vector.shape_cast %13 : vector<1x1x4x128xf32> to vector<4x128xf32>
    %cst_20 = arith.constant dense<0.000000e+00> : vector<32x128xf32>
    %15 = tpu.matmul %0, %14, %cst_20 {dimension_numbers = #tpu.dot_dimension_numbers<[1], [0], [0], [1], [0, 0, 1, 1], [], []>} : vector<32x4xf32>, vector<4x128xf32>, vector<32x128xf32> -> vector<32x128xf32>
    %c0_21 = arith.constant 0 : index
    %c2_22 = arith.constant 2 : index
    %c0_23 = arith.constant 0 : index
    %c0_24 = arith.constant 0 : index
    %16 = vector.load %arg4[%c0_21, %c2_22, %c0_23, %c0_24] : memref<1x32x32x128xf32, #tpu.memory_space<vmem>>, vector<1x1x32x128xf32>
    %17 = vector.shape_cast %16 : vector<1x1x32x128xf32> to vector<32x128xf32>
    %18 = vector.shape_cast %15 : vector<32x128xf32> to vector<1x1x32x128xf32>
    tpu.vector_store %arg4[%c0_21, %c2_22, %c0_23, %c0_24], %18 {strides = array<i32>} : memref<1x32x32x128xf32, #tpu.memory_space<vmem>>, vector<1x1x32x128xf32>,
    %c0_25 = arith.constant 0 : index
    %c3 = arith.constant 3 : index
    %c0_26 = arith.constant 0 : index
    %c0_27 = arith.constant 0 : index
    %19 = vector.load %arg3[%c0_25, %c3, %c0_26, %c0_27] : memref<1x32x4x128xf32, #tpu.memory_space<vmem>>, vector<1x1x4x128xf32>
    %20 = vector.shape_cast %19 : vector<1x1x4x128xf32> to vector<4x128xf32>
    %cst_28 = arith.constant dense<0.000000e+00> : vector<32x128xf32>
    %21 = tpu.matmul %0, %20, %cst_28 {dimension_numbers = #tpu.dot_dimension_numbers<[1], [0], [0], [1], [0, 0, 1, 1], [], []>} : vector<32x4xf32>, vector<4x128xf32>, vector<32x128xf32> -> vector<32x128xf32>
    %c0_29 = arith.constant 0 : index
    %c3_30 = arith.constant 3 : index
    %c0_31 = arith.constant 0 : index
    %c0_32 = arith.constant 0 : index
    %22 = vector.load %arg4[%c0_29, %c3_30, %c0_31, %c0_32] : memref<1x32x32x128xf32, #tpu.memory_space<vmem>>, vector<1x1x32x128xf32>
    %23 = vector.shape_cast %22 : vector<1x1x32x128xf32> to vector<32x128xf32>
    %24 = vector.shape_cast %21 : vector<32x128xf32> to vector<1x1x32x128xf32>
    tpu.vector_store %arg4[%c0_29, %c3_30, %c0_31, %c0_32], %24 {strides = array<i32>} : memref<1x32x32x128xf32, #tpu.memory_space<vmem>>, vector<1x1x32x128xf32>,
    %c0_33 = arith.constant 0 : index
    %c4 = arith.constant 4 : index
    %c0_34 = arith.constant 0 : index
    %c0_35 = arith.constant 0 : index
    %25 = vector.load %arg3[%c0_33, %c4, %c0_34, %c0_35] : memref<1x32x4x128xf32, #tpu.memory_space<vmem>>, vector<1x1x4x128xf32>
    %26 = vector.shape_cast %25 : vector<1x1x4x128xf32> to vector<4x128xf32>
    %cst_36 = arith.constant dense<0.000000e+00> : vector<32x128xf32>
    %27 = tpu.matmul %0, %26, %cst_36 {dimension_numbers = #tpu.dot_dimension_numbers<[1], [0], [0], [1], [0, 0, 1, 1], [], []>} : vector<32x4xf32>, vector<4x128xf32>, vector<32x128xf32> -> vector<32x128xf32>
    %c0_37 = arith.constant 0 : index
    %c4_38 = arith.constant 4 : index
    %c0_39 = arith.constant 0 : index
    %c0_40 = arith.constant 0 : index
    %28 = vector.load %arg4[%c0_37, %c4_38, %c0_39, %c0_40] : memref<1x32x32x128xf32, #tpu.memory_space<vmem>>, vector<1x1x32x128xf32>
    %29 = vector.shape_cast %28 : vector<1x1x32x128xf32> to vector<32x128xf32>
    %30 = vector.shape_cast %27 : vector<32x128xf32> to vector<1x1x32x128xf32>
    tpu.vector_store %arg4[%c0_37, %c4_38, %c0_39, %c0_40], %30 {strides = array<i32>} : memref<1x32x32x128xf32, #tpu.memory_space<vmem>>, vector<1x1x32x128xf32>,
    %c0_41 = arith.constant 0 : index
    %c5 = arith.constant 5 : index
    %c0_42 = arith.constant 0 : index
    %c0_43 = arith.constant 0 : index
    %31 = vector.load %arg3[%c0_41, %c5, %c0_42, %c0_43] : memref<1x32x4x128xf32, #tpu.memory_space<vmem>>, vector<1x1x4x128xf32>
    %32 = vector.shape_cast %31 : vector<1x1x4x128xf32> to vector<4x128xf32>
    %cst_44 = arith.constant dense<0.000000e+00> : vector<32x128xf32>
    %33 = tpu.matmul %0, %32, %cst_44 {dimension_numbers = #tpu.dot_dimension_numbers<[1], [0], [0], [1], [0, 0, 1, 1], [], []>} : vector<32x4xf32>, vector<4x128xf32>, vector<32x128xf32> -> vector<32x128xf32>
    %c0_45 = arith.constant 0 : index
    %c5_46 = arith.constant 5 : index
    %c0_47 = arith.constant 0 : index
    %c0_48 = arith.constant 0 : index
    %34 = vector.load %arg4[%c0_45, %c5_46, %c0_47, %c0_48] : memref<1x32x32x128xf32, #tpu.memory_space<vmem>>, vector<1x1x32x128xf32>
    %35 = vector.shape_cast %34 : vector<1x1x32x128xf32> to vector<32x128xf32>
    %36 = vector.shape_cast %33 : vector<32x128xf32> to vector<1x1x32x128xf32>
    tpu.vector_store %arg4[%c0_45, %c5_46, %c0_47, %c0_48], %36 {strides = array<i32>} : memref<1x32x32x128xf32, #tpu.memory_space<vmem>>, vector<1x1x32x128xf32>,
    %c0_49 = arith.constant 0 : index
    %c6 = arith.constant 6 : index
    %c0_50 = arith.constant 0 : index
    %c0_51 = arith.constant 0 : index
    %37 = vector.load %arg3[%c0_49, %c6, %c0_50, %c0_51] : memref<1x32x4x128xf32, #tpu.memory_space<vmem>>, vector<1x1x4x128xf32>
    %38 = vector.shape_cast %37 : vector<1x1x4x128xf32> to vector<4x128xf32>
    %cst_52 = arith.constant dense<0.000000e+00> : vector<32x128xf32>
    %39 = tpu.matmul %0, %38, %cst_52 {dimension_numbers = #tpu.dot_dimension_numbers<[1], [0], [0], [1], [0, 0, 1, 1], [], []>} : vector<32x4xf32>, vector<4x128xf32>, vector<32x128xf32> -> vector<32x128xf32>
    %c0_53 = arith.constant 0 : index
    %c6_54 = arith.constant 6 : index
    %c0_55 = arith.constant 0 : index
    %c0_56 = arith.constant 0 : index
    %40 = vector.load %arg4[%c0_53, %c6_54, %c0_55, %c0_56] : memref<1x32x32x128xf32, #tpu.memory_space<vmem>>, vector<1x1x32x128xf32>
    %41 = vector.shape_cast %40 : vector<1x1x32x128xf32> to vector<32x128xf32>
    %42 = vector.shape_cast %39 : vector<32x128xf32> to vector<1x1x32x128xf32>
    tpu.vector_store %arg4[%c0_53, %c6_54, %c0_55, %c0_56], %42 {strides = array<i32>} : memref<1x32x32x128xf32, #tpu.memory_space<vmem>>, vector<1x1x32x128xf32>,
    %c0_57 = arith.constant 0 : index
    %c7 = arith.constant 7 : index
    %c0_58 = arith.constant 0 : index
    %c0_59 = arith.constant 0 : index
    %43 = vector.load %arg3[%c0_57, %c7, %c0_58, %c0_59] : memref<1x32x4x128xf32, #tpu.memory_space<vmem>>, vector<1x1x4x128xf32>
    %44 = vector.shape_cast %43 : vector<1x1x4x128xf32> to vector<4x128xf32>
    %cst_60 = arith.constant dense<0.000000e+00> : vector<32x128xf32>
    %45 = tpu.matmul %0, %44, %cst_60 {dimension_numbers = #tpu.dot_dimension_numbers<[1], [0], [0], [1], [0, 0, 1, 1], [], []>} : vector<32x4xf32>, vector<4x128xf32>, vector<32x128xf32> -> vector<32x128xf32>
    %c0_61 = arith.constant 0 : index
    %c7_62 = arith.constant 7 : index
    %c0_63 = arith.constant 0 : index
    %c0_64 = arith.constant 0 : index
    %46 = vector.load %arg4[%c0_61, %c7_62, %c0_63, %c0_64] : memref<1x32x32x128xf32, #tpu.memory_space<vmem>>, vector<1x1x32x128xf32>
    %47 = vector.shape_cast %46 : vector<1x1x32x128xf32> to vector<32x128xf32>
    %48 = vector.shape_cast %45 : vector<32x128xf32> to vector<1x1x32x128xf32>
    tpu.vector_store %arg4[%c0_61, %c7_62, %c0_63, %c0_64], %48 {strides = array<i32>} : memref<1x32x32x128xf32, #tpu.memory_space<vmem>>, vector<1x1x32x128xf32>,
    %c0_65 = arith.constant 0 : index
    %c8 = arith.constant 8 : index
    %c0_66 = arith.constant 0 : index
    %c0_67 = arith.constant 0 : index
    %49 = vector.load %arg3[%c0_65, %c8, %c0_66, %c0_67] : memref<1x32x4x128xf32, #tpu.memory_space<vmem>>, vector<1x1x4x128xf32>
    %50 = vector.shape_cast %49 : vector<1x1x4x128xf32> to vector<4x128xf32>
    %cst_68 = arith.constant dense<0.000000e+00> : vector<32x128xf32>
    %51 = tpu.matmul %0, %50, %cst_68 {dimension_numbers = #tpu.dot_dimension_numbers<[1], [0], [0], [1], [0, 0, 1, 1], [], []>} : vector<32x4xf32>, vector<4x128xf32>, vector<32x128xf32> -> vector<32x128xf32>
    %c0_69 = arith.constant 0 : index
    %c8_70 = arith.constant 8 : index
    %c0_71 = arith.constant 0 : index
    %c0_72 = arith.constant 0 : index
    %52 = vector.load %arg4[%c0_69, %c8_70, %c0_71, %c0_72] : memref<1x32x32x128xf32, #tpu.memory_space<vmem>>, vector<1x1x32x128xf32>
    %53 = vector.shape_cast %52 : vector<1x1x32x128xf32> to vector<32x128xf32>
    %54 = vector.shape_cast %51 : vector<32x128xf32> to vector<1x1x32x128xf32>
    tpu.vector_store %arg4[%c0_69, %c8_70, %c0_71, %c0_72], %54 {strides = array<i32>} : memref<1x32x32x128xf32, #tpu.memory_space<vmem>>, vector<1x1x32x128xf32>,
    %c0_73 = arith.constant 0 : index
    %c9 = arith.constant 9 : index
    %c0_74 = arith.constant 0 : index
    %c0_75 = arith.constant 0 : index
    %55 = vector.load %arg3[%c0_73, %c9, %c0_74, %c0_75] : memref<1x32x4x128xf32, #tpu.memory_space<vmem>>, vector<1x1x4x128xf32>
    %56 = vector.shape_cast %55 : vector<1x1x4x128xf32> to vector<4x128xf32>
    %cst_76 = arith.constant dense<0.000000e+00> : vector<32x128xf32>
    %57 = tpu.matmul %0, %56, %cst_76 {dimension_numbers = #tpu.dot_dimension_numbers<[1], [0], [0], [1], [0, 0, 1, 1], [], []>} : vector<32x4xf32>, vector<4x128xf32>, vector<32x128xf32> -> vector<32x128xf32>
    %c0_77 = arith.constant 0 : index
    %c9_78 = arith.constant 9 : index
    %c0_79 = arith.constant 0 : index
    %c0_80 = arith.constant 0 : index
    %58 = vector.load %arg4[%c0_77, %c9_78, %c0_79, %c0_80] : memref<1x32x32x128xf32, #tpu.memory_space<vmem>>, vector<1x1x32x128xf32>
    %59 = vector.shape_cast %58 : vector<1x1x32x128xf32> to vector<32x128xf32>
    %60 = vector.shape_cast %57 : vector<32x128xf32> to vector<1x1x32x128xf32>
    tpu.vector_store %arg4[%c0_77, %c9_78, %c0_79, %c0_80], %60 {strides = array<i32>} : memref<1x32x32x128xf32, #tpu.memory_space<vmem>>, vector<1x1x32x128xf32>,
    %c0_81 = arith.constant 0 : index
    %c10 = arith.constant 10 : index
    %c0_82 = arith.constant 0 : index
    %c0_83 = arith.constant 0 : index
    %61 = vector.load %arg3[%c0_81, %c10, %c0_82, %c0_83] : memref<1x32x4x128xf32, #tpu.memory_space<vmem>>, vector<1x1x4x128xf32>
    %62 = vector.shape_cast %61 : vector<1x1x4x128xf32> to vector<4x128xf32>
    %cst_84 = arith.constant dense<0.000000e+00> : vector<32x128xf32>
    %63 = tpu.matmul %0, %62, %cst_84 {dimension_numbers = #tpu.dot_dimension_numbers<[1], [0], [0], [1], [0, 0, 1, 1], [], []>} : vector<32x4xf32>, vector<4x128xf32>, vector<32x128xf32> -> vector<32x128xf32>
    %c0_85 = arith.constant 0 : index
    %c10_86 = arith.constant 10 : index
    %c0_87 = arith.constant 0 : index
    %c0_88 = arith.constant 0 : index
    %64 = vector.load %arg4[%c0_85, %c10_86, %c0_87, %c0_88] : memref<1x32x32x128xf32, #tpu.memory_space<vmem>>, vector<1x1x32x128xf32>
    %65 = vector.shape_cast %64 : vector<1x1x32x128xf32> to vector<32x128xf32>
    %66 = vector.shape_cast %63 : vector<32x128xf32> to vector<1x1x32x128xf32>
    tpu.vector_store %arg4[%c0_85, %c10_86, %c0_87, %c0_88], %66 {strides = array<i32>} : memref<1x32x32x128xf32, #tpu.memory_space<vmem>>, vector<1x1x32x128xf32>,
    %c0_89 = arith.constant 0 : index
    %c11 = arith.constant 11 : index
    %c0_90 = arith.constant 0 : index
    %c0_91 = arith.constant 0 : index
    %67 = vector.load %arg3[%c0_89, %c11, %c0_90, %c0_91] : memref<1x32x4x128xf32, #tpu.memory_space<vmem>>, vector<1x1x4x128xf32>
    %68 = vector.shape_cast %67 : vector<1x1x4x128xf32> to vector<4x128xf32>
    %cst_92 = arith.constant dense<0.000000e+00> : vector<32x128xf32>
    %69 = tpu.matmul %0, %68, %cst_92 {dimension_numbers = #tpu.dot_dimension_numbers<[1], [0], [0], [1], [0, 0, 1, 1], [], []>} : vector<32x4xf32>, vector<4x128xf32>, vector<32x128xf32> -> vector<32x128xf32>
    %c0_93 = arith.constant 0 : index
    %c11_94 = arith.constant 11 : index
    %c0_95 = arith.constant 0 : index
    %c0_96 = arith.constant 0 : index
    %70 = vector.load %arg4[%c0_93, %c11_94, %c0_95, %c0_96] : memref<1x32x32x128xf32, #tpu.memory_space<vmem>>, vector<1x1x32x128xf32>
    %71 = vector.shape_cast %70 : vector<1x1x32x128xf32> to vector<32x128xf32>
    %72 = vector.shape_cast %69 : vector<32x128xf32> to vector<1x1x32x128xf32>
    tpu.vector_store %arg4[%c0_93, %c11_94, %c0_95, %c0_96], %72 {strides = array<i32>} : memref<1x32x32x128xf32, #tpu.memory_space<vmem>>, vector<1x1x32x128xf32>,
    %c0_97 = arith.constant 0 : index
    %c12 = arith.constant 12 : index
    %c0_98 = arith.constant 0 : index
    %c0_99 = arith.constant 0 : index
    %73 = vector.load %arg3[%c0_97, %c12, %c0_98, %c0_99] : memref<1x32x4x128xf32, #tpu.memory_space<vmem>>, vector<1x1x4x128xf32>
    %74 = vector.shape_cast %73 : vector<1x1x4x128xf32> to vector<4x128xf32>
    %cst_100 = arith.constant dense<0.000000e+00> : vector<32x128xf32>
    %75 = tpu.matmul %0, %74, %cst_100 {dimension_numbers = #tpu.dot_dimension_numbers<[1], [0], [0], [1], [0, 0, 1, 1], [], []>} : vector<32x4xf32>, vector<4x128xf32>, vector<32x128xf32> -> vector<32x128xf32>
    %c0_101 = arith.constant 0 : index
    %c12_102 = arith.constant 12 : index
    %c0_103 = arith.constant 0 : index
    %c0_104 = arith.constant 0 : index
    %76 = vector.load %arg4[%c0_101, %c12_102, %c0_103, %c0_104] : memref<1x32x32x128xf32, #tpu.memory_space<vmem>>, vector<1x1x32x128xf32>
    %77 = vector.shape_cast %76 : vector<1x1x32x128xf32> to vector<32x128xf32>
    %78 = vector.shape_cast %75 : vector<32x128xf32> to vector<1x1x32x128xf32>
    tpu.vector_store %arg4[%c0_101, %c12_102, %c0_103, %c0_104], %78 {strides = array<i32>} : memref<1x32x32x128xf32, #tpu.memory_space<vmem>>, vector<1x1x32x128xf32>,
    %c0_105 = arith.constant 0 : index
    %c13 = arith.constant 13 : index
    %c0_106 = arith.constant 0 : index
    %c0_107 = arith.constant 0 : index
    %79 = vector.load %arg3[%c0_105, %c13, %c0_106, %c0_107] : memref<1x32x4x128xf32, #tpu.memory_space<vmem>>, vector<1x1x4x128xf32>
    %80 = vector.shape_cast %79 : vector<1x1x4x128xf32> to vector<4x128xf32>
    %cst_108 = arith.constant dense<0.000000e+00> : vector<32x128xf32>
    %81 = tpu.matmul %0, %80, %cst_108 {dimension_numbers = #tpu.dot_dimension_numbers<[1], [0], [0], [1], [0, 0, 1, 1], [], []>} : vector<32x4xf32>, vector<4x128xf32>, vector<32x128xf32> -> vector<32x128xf32>
    %c0_109 = arith.constant 0 : index
    %c13_110 = arith.constant 13 : index
    %c0_111 = arith.constant 0 : index
    %c0_112 = arith.constant 0 : index
    %82 = vector.load %arg4[%c0_109, %c13_110, %c0_111, %c0_112] : memref<1x32x32x128xf32, #tpu.memory_space<vmem>>, vector<1x1x32x128xf32>
    %83 = vector.shape_cast %82 : vector<1x1x32x128xf32> to vector<32x128xf32>
    %84 = vector.shape_cast %81 : vector<32x128xf32> to vector<1x1x32x128xf32>
    tpu.vector_store %arg4[%c0_109, %c13_110, %c0_111, %c0_112], %84 {strides = array<i32>} : memref<1x32x32x128xf32, #tpu.memory_space<vmem>>, vector<1x1x32x128xf32>,
    %c0_113 = arith.constant 0 : index
    %c14 = arith.constant 14 : index
    %c0_114 = arith.constant 0 : index
    %c0_115 = arith.constant 0 : index
    %85 = vector.load %arg3[%c0_113, %c14, %c0_114, %c0_115] : memref<1x32x4x128xf32, #tpu.memory_space<vmem>>, vector<1x1x4x128xf32>
    %86 = vector.shape_cast %85 : vector<1x1x4x128xf32> to vector<4x128xf32>
    %cst_116 = arith.constant dense<0.000000e+00> : vector<32x128xf32>
    %87 = tpu.matmul %0, %86, %cst_116 {dimension_numbers = #tpu.dot_dimension_numbers<[1], [0], [0], [1], [0, 0, 1, 1], [], []>} : vector<32x4xf32>, vector<4x128xf32>, vector<32x128xf32> -> vector<32x128xf32>
    %c0_117 = arith.constant 0 : index
    %c14_118 = arith.constant 14 : index
    %c0_119 = arith.constant 0 : index
    %c0_120 = arith.constant 0 : index
    %88 = vector.load %arg4[%c0_117, %c14_118, %c0_119, %c0_120] : memref<1x32x32x128xf32, #tpu.memory_space<vmem>>, vector<1x1x32x128xf32>
    %89 = vector.shape_cast %88 : vector<1x1x32x128xf32> to vector<32x128xf32>
    %90 = vector.shape_cast %87 : vector<32x128xf32> to vector<1x1x32x128xf32>
    tpu.vector_store %arg4[%c0_117, %c14_118, %c0_119, %c0_120], %90 {strides = array<i32>} : memref<1x32x32x128xf32, #tpu.memory_space<vmem>>, vector<1x1x32x128xf32>,
    %c0_121 = arith.constant 0 : index
    %c15 = arith.constant 15 : index
    %c0_122 = arith.constant 0 : index
    %c0_123 = arith.constant 0 : index
    %91 = vector.load %arg3[%c0_121, %c15, %c0_122, %c0_123] : memref<1x32x4x128xf32, #tpu.memory_space<vmem>>, vector<1x1x4x128xf32>
    %92 = vector.shape_cast %91 : vector<1x1x4x128xf32> to vector<4x128xf32>
    %cst_124 = arith.constant dense<0.000000e+00> : vector<32x128xf32>
    %93 = tpu.matmul %0, %92, %cst_124 {dimension_numbers = #tpu.dot_dimension_numbers<[1], [0], [0], [1], [0, 0, 1, 1], [], []>} : vector<32x4xf32>, vector<4x128xf32>, vector<32x128xf32> -> vector<32x128xf32>
    %c0_125 = arith.constant 0 : index
    %c15_126 = arith.constant 15 : index
    %c0_127 = arith.constant 0 : index
    %c0_128 = arith.constant 0 : index
    %94 = vector.load %arg4[%c0_125, %c15_126, %c0_127, %c0_128] : memref<1x32x32x128xf32, #tpu.memory_space<vmem>>, vector<1x1x32x128xf32>
    %95 = vector.shape_cast %94 : vector<1x1x32x128xf32> to vector<32x128xf32>
    %96 = vector.shape_cast %93 : vector<32x128xf32> to vector<1x1x32x128xf32>
    tpu.vector_store %arg4[%c0_125, %c15_126, %c0_127, %c0_128], %96 {strides = array<i32>} : memref<1x32x32x128xf32, #tpu.memory_space<vmem>>, vector<1x1x32x128xf32>,
    %c0_129 = arith.constant 0 : index
    %c16 = arith.constant 16 : index
    %c0_130 = arith.constant 0 : index
    %c0_131 = arith.constant 0 : index
    %97 = vector.load %arg3[%c0_129, %c16, %c0_130, %c0_131] : memref<1x32x4x128xf32, #tpu.memory_space<vmem>>, vector<1x1x4x128xf32>
    %98 = vector.shape_cast %97 : vector<1x1x4x128xf32> to vector<4x128xf32>
    %cst_132 = arith.constant dense<0.000000e+00> : vector<32x128xf32>
    %99 = tpu.matmul %0, %98, %cst_132 {dimension_numbers = #tpu.dot_dimension_numbers<[1], [0], [0], [1], [0, 0, 1, 1], [], []>} : vector<32x4xf32>, vector<4x128xf32>, vector<32x128xf32> -> vector<32x128xf32>
    %c0_133 = arith.constant 0 : index
    %c16_134 = arith.constant 16 : index
    %c0_135 = arith.constant 0 : index
    %c0_136 = arith.constant 0 : index
    %100 = vector.load %arg4[%c0_133, %c16_134, %c0_135, %c0_136] : memref<1x32x32x128xf32, #tpu.memory_space<vmem>>, vector<1x1x32x128xf32>
    %101 = vector.shape_cast %100 : vector<1x1x32x128xf32> to vector<32x128xf32>
    %102 = vector.shape_cast %99 : vector<32x128xf32> to vector<1x1x32x128xf32>
    tpu.vector_store %arg4[%c0_133, %c16_134, %c0_135, %c0_136], %102 {strides = array<i32>} : memref<1x32x32x128xf32, #tpu.memory_space<vmem>>, vector<1x1x32x128xf32>,
    %c0_137 = arith.constant 0 : index
    %c17 = arith.constant 17 : index
    %c0_138 = arith.constant 0 : index
    %c0_139 = arith.constant 0 : index
    %103 = vector.load %arg3[%c0_137, %c17, %c0_138, %c0_139] : memref<1x32x4x128xf32, #tpu.memory_space<vmem>>, vector<1x1x4x128xf32>
    %104 = vector.shape_cast %103 : vector<1x1x4x128xf32> to vector<4x128xf32>
    %cst_140 = arith.constant dense<0.000000e+00> : vector<32x128xf32>
    %105 = tpu.matmul %0, %104, %cst_140 {dimension_numbers = #tpu.dot_dimension_numbers<[1], [0], [0], [1], [0, 0, 1, 1], [], []>} : vector<32x4xf32>, vector<4x128xf32>, vector<32x128xf32> -> vector<32x128xf32>
    %c0_141 = arith.constant 0 : index
    %c17_142 = arith.constant 17 : index
    %c0_143 = arith.constant 0 : index
    %c0_144 = arith.constant 0 : index
    %106 = vector.load %arg4[%c0_141, %c17_142, %c0_143, %c0_144] : memref<1x32x32x128xf32, #tpu.memory_space<vmem>>, vector<1x1x32x128xf32>
    %107 = vector.shape_cast %106 : vector<1x1x32x128xf32> to vector<32x128xf32>
    %108 = vector.shape_cast %105 : vector<32x128xf32> to vector<1x1x32x128xf32>
    tpu.vector_store %arg4[%c0_141, %c17_142, %c0_143, %c0_144], %108 {strides = array<i32>} : memref<1x32x32x128xf32, #tpu.memory_space<vmem>>, vector<1x1x32x128xf32>,
    %c0_145 = arith.constant 0 : index
    %c18 = arith.constant 18 : index
    %c0_146 = arith.constant 0 : index
    %c0_147 = arith.constant 0 : index
    %109 = vector.load %arg3[%c0_145, %c18, %c0_146, %c0_147] : memref<1x32x4x128xf32, #tpu.memory_space<vmem>>, vector<1x1x4x128xf32>
    %110 = vector.shape_cast %109 : vector<1x1x4x128xf32> to vector<4x128xf32>
    %cst_148 = arith.constant dense<0.000000e+00> : vector<32x128xf32>
    %111 = tpu.matmul %0, %110, %cst_148 {dimension_numbers = #tpu.dot_dimension_numbers<[1], [0], [0], [1], [0, 0, 1, 1], [], []>} : vector<32x4xf32>, vector<4x128xf32>, vector<32x128xf32> -> vector<32x128xf32>
    %c0_149 = arith.constant 0 : index
    %c18_150 = arith.constant 18 : index
    %c0_151 = arith.constant 0 : index
    %c0_152 = arith.constant 0 : index
    %112 = vector.load %arg4[%c0_149, %c18_150, %c0_151, %c0_152] : memref<1x32x32x128xf32, #tpu.memory_space<vmem>>, vector<1x1x32x128xf32>
    %113 = vector.shape_cast %112 : vector<1x1x32x128xf32> to vector<32x128xf32>
    %114 = vector.shape_cast %111 : vector<32x128xf32> to vector<1x1x32x128xf32>
    tpu.vector_store %arg4[%c0_149, %c18_150, %c0_151, %c0_152], %114 {strides = array<i32>} : memref<1x32x32x128xf32, #tpu.memory_space<vmem>>, vector<1x1x32x128xf32>,
    %c0_153 = arith.constant 0 : index
    %c19 = arith.constant 19 : index
    %c0_154 = arith.constant 0 : index
    %c0_155 = arith.constant 0 : index
    %115 = vector.load %arg3[%c0_153, %c19, %c0_154, %c0_155] : memref<1x32x4x128xf32, #tpu.memory_space<vmem>>, vector<1x1x4x128xf32>
    %116 = vector.shape_cast %115 : vector<1x1x4x128xf32> to vector<4x128xf32>
    %cst_156 = arith.constant dense<0.000000e+00> : vector<32x128xf32>
    %117 = tpu.matmul %0, %116, %cst_156 {dimension_numbers = #tpu.dot_dimension_numbers<[1], [0], [0], [1], [0, 0, 1, 1], [], []>} : vector<32x4xf32>, vector<4x128xf32>, vector<32x128xf32> -> vector<32x128xf32>
    %c0_157 = arith.constant 0 : index
    %c19_158 = arith.constant 19 : index
    %c0_159 = arith.constant 0 : index
    %c0_160 = arith.constant 0 : index
    %118 = vector.load %arg4[%c0_157, %c19_158, %c0_159, %c0_160] : memref<1x32x32x128xf32, #tpu.memory_space<vmem>>, vector<1x1x32x128xf32>
    %119 = vector.shape_cast %118 : vector<1x1x32x128xf32> to vector<32x128xf32>
    %120 = vector.shape_cast %117 : vector<32x128xf32> to vector<1x1x32x128xf32>
    tpu.vector_store %arg4[%c0_157, %c19_158, %c0_159, %c0_160], %120 {strides = array<i32>} : memref<1x32x32x128xf32, #tpu.memory_space<vmem>>, vector<1x1x32x128xf32>,
    %c0_161 = arith.constant 0 : index
    %c20 = arith.constant 20 : index
    %c0_162 = arith.constant 0 : index
    %c0_163 = arith.constant 0 : index
    %121 = vector.load %arg3[%c0_161, %c20, %c0_162, %c0_163] : memref<1x32x4x128xf32, #tpu.memory_space<vmem>>, vector<1x1x4x128xf32>
    %122 = vector.shape_cast %121 : vector<1x1x4x128xf32> to vector<4x128xf32>
    %cst_164 = arith.constant dense<0.000000e+00> : vector<32x128xf32>
    %123 = tpu.matmul %0, %122, %cst_164 {dimension_numbers = #tpu.dot_dimension_numbers<[1], [0], [0], [1], [0, 0, 1, 1], [], []>} : vector<32x4xf32>, vector<4x128xf32>, vector<32x128xf32> -> vector<32x128xf32>
    %c0_165 = arith.constant 0 : index
    %c20_166 = arith.constant 20 : index
    %c0_167 = arith.constant 0 : index
    %c0_168 = arith.constant 0 : index
    %124 = vector.load %arg4[%c0_165, %c20_166, %c0_167, %c0_168] : memref<1x32x32x128xf32, #tpu.memory_space<vmem>>, vector<1x1x32x128xf32>
    %125 = vector.shape_cast %124 : vector<1x1x32x128xf32> to vector<32x128xf32>
    %126 = vector.shape_cast %123 : vector<32x128xf32> to vector<1x1x32x128xf32>
    tpu.vector_store %arg4[%c0_165, %c20_166, %c0_167, %c0_168], %126 {strides = array<i32>} : memref<1x32x32x128xf32, #tpu.memory_space<vmem>>, vector<1x1x32x128xf32>,
    %c0_169 = arith.constant 0 : index
    %c21 = arith.constant 21 : index
    %c0_170 = arith.constant 0 : index
    %c0_171 = arith.constant 0 : index
    %127 = vector.load %arg3[%c0_169, %c21, %c0_170, %c0_171] : memref<1x32x4x128xf32, #tpu.memory_space<vmem>>, vector<1x1x4x128xf32>
    %128 = vector.shape_cast %127 : vector<1x1x4x128xf32> to vector<4x128xf32>
    %cst_172 = arith.constant dense<0.000000e+00> : vector<32x128xf32>
    %129 = tpu.matmul %0, %128, %cst_172 {dimension_numbers = #tpu.dot_dimension_numbers<[1], [0], [0], [1], [0, 0, 1, 1], [], []>} : vector<32x4xf32>, vector<4x128xf32>, vector<32x128xf32> -> vector<32x128xf32>
    %c0_173 = arith.constant 0 : index
    %c21_174 = arith.constant 21 : index
    %c0_175 = arith.constant 0 : index
    %c0_176 = arith.constant 0 : index
    %130 = vector.load %arg4[%c0_173, %c21_174, %c0_175, %c0_176] : memref<1x32x32x128xf32, #tpu.memory_space<vmem>>, vector<1x1x32x128xf32>
    %131 = vector.shape_cast %130 : vector<1x1x32x128xf32> to vector<32x128xf32>
    %132 = vector.shape_cast %129 : vector<32x128xf32> to vector<1x1x32x128xf32>
    tpu.vector_store %arg4[%c0_173, %c21_174, %c0_175, %c0_176], %132 {strides = array<i32>} : memref<1x32x32x128xf32, #tpu.memory_space<vmem>>, vector<1x1x32x128xf32>,
    %c0_177 = arith.constant 0 : index
    %c22 = arith.constant 22 : index
    %c0_178 = arith.constant 0 : index
    %c0_179 = arith.constant 0 : index
    %133 = vector.load %arg3[%c0_177, %c22, %c0_178, %c0_179] : memref<1x32x4x128xf32, #tpu.memory_space<vmem>>, vector<1x1x4x128xf32>
    %134 = vector.shape_cast %133 : vector<1x1x4x128xf32> to vector<4x128xf32>
    %cst_180 = arith.constant dense<0.000000e+00> : vector<32x128xf32>
    %135 = tpu.matmul %0, %134, %cst_180 {dimension_numbers = #tpu.dot_dimension_numbers<[1], [0], [0], [1], [0, 0, 1, 1], [], []>} : vector<32x4xf32>, vector<4x128xf32>, vector<32x128xf32> -> vector<32x128xf32>
    %c0_181 = arith.constant 0 : index
    %c22_182 = arith.constant 22 : index
    %c0_183 = arith.constant 0 : index
    %c0_184 = arith.constant 0 : index
    %136 = vector.load %arg4[%c0_181, %c22_182, %c0_183, %c0_184] : memref<1x32x32x128xf32, #tpu.memory_space<vmem>>, vector<1x1x32x128xf32>
    %137 = vector.shape_cast %136 : vector<1x1x32x128xf32> to vector<32x128xf32>
    %138 = vector.shape_cast %135 : vector<32x128xf32> to vector<1x1x32x128xf32>
    tpu.vector_store %arg4[%c0_181, %c22_182, %c0_183, %c0_184], %138 {strides = array<i32>} : memref<1x32x32x128xf32, #tpu.memory_space<vmem>>, vector<1x1x32x128xf32>,
    %c0_185 = arith.constant 0 : index
    %c23 = arith.constant 23 : index
    %c0_186 = arith.constant 0 : index
    %c0_187 = arith.constant 0 : index
    %139 = vector.load %arg3[%c0_185, %c23, %c0_186, %c0_187] : memref<1x32x4x128xf32, #tpu.memory_space<vmem>>, vector<1x1x4x128xf32>
    %140 = vector.shape_cast %139 : vector<1x1x4x128xf32> to vector<4x128xf32>
    %cst_188 = arith.constant dense<0.000000e+00> : vector<32x128xf32>
    %141 = tpu.matmul %0, %140, %cst_188 {dimension_numbers = #tpu.dot_dimension_numbers<[1], [0], [0], [1], [0, 0, 1, 1], [], []>} : vector<32x4xf32>, vector<4x128xf32>, vector<32x128xf32> -> vector<32x128xf32>
    %c0_189 = arith.constant 0 : index
    %c23_190 = arith.constant 23 : index
    %c0_191 = arith.constant 0 : index
    %c0_192 = arith.constant 0 : index
    %142 = vector.load %arg4[%c0_189, %c23_190, %c0_191, %c0_192] : memref<1x32x32x128xf32, #tpu.memory_space<vmem>>, vector<1x1x32x128xf32>
    %143 = vector.shape_cast %142 : vector<1x1x32x128xf32> to vector<32x128xf32>
    %144 = vector.shape_cast %141 : vector<32x128xf32> to vector<1x1x32x128xf32>
    tpu.vector_store %arg4[%c0_189, %c23_190, %c0_191, %c0_192], %144 {strides = array<i32>} : memref<1x32x32x128xf32, #tpu.memory_space<vmem>>, vector<1x1x32x128xf32>,
    %c0_193 = arith.constant 0 : index
    %c24 = arith.constant 24 : index
    %c0_194 = arith.constant 0 : index
    %c0_195 = arith.constant 0 : index
    %145 = vector.load %arg3[%c0_193, %c24, %c0_194, %c0_195] : memref<1x32x4x128xf32, #tpu.memory_space<vmem>>, vector<1x1x4x128xf32>
    %146 = vector.shape_cast %145 : vector<1x1x4x128xf32> to vector<4x128xf32>
    %cst_196 = arith.constant dense<0.000000e+00> : vector<32x128xf32>
    %147 = tpu.matmul %0, %146, %cst_196 {dimension_numbers = #tpu.dot_dimension_numbers<[1], [0], [0], [1], [0, 0, 1, 1], [], []>} : vector<32x4xf32>, vector<4x128xf32>, vector<32x128xf32> -> vector<32x128xf32>
    %c0_197 = arith.constant 0 : index
    %c24_198 = arith.constant 24 : index
    %c0_199 = arith.constant 0 : index
    %c0_200 = arith.constant 0 : index
    %148 = vector.load %arg4[%c0_197, %c24_198, %c0_199, %c0_200] : memref<1x32x32x128xf32, #tpu.memory_space<vmem>>, vector<1x1x32x128xf32>
    %149 = vector.shape_cast %148 : vector<1x1x32x128xf32> to vector<32x128xf32>
    %150 = vector.shape_cast %147 : vector<32x128xf32> to vector<1x1x32x128xf32>
    tpu.vector_store %arg4[%c0_197, %c24_198, %c0_199, %c0_200], %150 {strides = array<i32>} : memref<1x32x32x128xf32, #tpu.memory_space<vmem>>, vector<1x1x32x128xf32>,
    %c0_201 = arith.constant 0 : index
    %c25 = arith.constant 25 : index
    %c0_202 = arith.constant 0 : index
    %c0_203 = arith.constant 0 : index
    %151 = vector.load %arg3[%c0_201, %c25, %c0_202, %c0_203] : memref<1x32x4x128xf32, #tpu.memory_space<vmem>>, vector<1x1x4x128xf32>
    %152 = vector.shape_cast %151 : vector<1x1x4x128xf32> to vector<4x128xf32>
    %cst_204 = arith.constant dense<0.000000e+00> : vector<32x128xf32>
    %153 = tpu.matmul %0, %152, %cst_204 {dimension_numbers = #tpu.dot_dimension_numbers<[1], [0], [0], [1], [0, 0, 1, 1], [], []>} : vector<32x4xf32>, vector<4x128xf32>, vector<32x128xf32> -> vector<32x128xf32>
    %c0_205 = arith.constant 0 : index
    %c25_206 = arith.constant 25 : index
    %c0_207 = arith.constant 0 : index
    %c0_208 = arith.constant 0 : index
    %154 = vector.load %arg4[%c0_205, %c25_206, %c0_207, %c0_208] : memref<1x32x32x128xf32, #tpu.memory_space<vmem>>, vector<1x1x32x128xf32>
    %155 = vector.shape_cast %154 : vector<1x1x32x128xf32> to vector<32x128xf32>
    %156 = vector.shape_cast %153 : vector<32x128xf32> to vector<1x1x32x128xf32>
    tpu.vector_store %arg4[%c0_205, %c25_206, %c0_207, %c0_208], %156 {strides = array<i32>} : memref<1x32x32x128xf32, #tpu.memory_space<vmem>>, vector<1x1x32x128xf32>,
    %c0_209 = arith.constant 0 : index
    %c26 = arith.constant 26 : index
    %c0_210 = arith.constant 0 : index
    %c0_211 = arith.constant 0 : index
    %157 = vector.load %arg3[%c0_209, %c26, %c0_210, %c0_211] : memref<1x32x4x128xf32, #tpu.memory_space<vmem>>, vector<1x1x4x128xf32>
    %158 = vector.shape_cast %157 : vector<1x1x4x128xf32> to vector<4x128xf32>
    %cst_212 = arith.constant dense<0.000000e+00> : vector<32x128xf32>
    %159 = tpu.matmul %0, %158, %cst_212 {dimension_numbers = #tpu.dot_dimension_numbers<[1], [0], [0], [1], [0, 0, 1, 1], [], []>} : vector<32x4xf32>, vector<4x128xf32>, vector<32x128xf32> -> vector<32x128xf32>
    %c0_213 = arith.constant 0 : index
    %c26_214 = arith.constant 26 : index
    %c0_215 = arith.constant 0 : index
    %c0_216 = arith.constant 0 : index
    %160 = vector.load %arg4[%c0_213, %c26_214, %c0_215, %c0_216] : memref<1x32x32x128xf32, #tpu.memory_space<vmem>>, vector<1x1x32x128xf32>
    %161 = vector.shape_cast %160 : vector<1x1x32x128xf32> to vector<32x128xf32>
    %162 = vector.shape_cast %159 : vector<32x128xf32> to vector<1x1x32x128xf32>
    tpu.vector_store %arg4[%c0_213, %c26_214, %c0_215, %c0_216], %162 {strides = array<i32>} : memref<1x32x32x128xf32, #tpu.memory_space<vmem>>, vector<1x1x32x128xf32>,
    %c0_217 = arith.constant 0 : index
    %c27 = arith.constant 27 : index
    %c0_218 = arith.constant 0 : index
    %c0_219 = arith.constant 0 : index
    %163 = vector.load %arg3[%c0_217, %c27, %c0_218, %c0_219] : memref<1x32x4x128xf32, #tpu.memory_space<vmem>>, vector<1x1x4x128xf32>
    %164 = vector.shape_cast %163 : vector<1x1x4x128xf32> to vector<4x128xf32>
    %cst_220 = arith.constant dense<0.000000e+00> : vector<32x128xf32>
    %165 = tpu.matmul %0, %164, %cst_220 {dimension_numbers = #tpu.dot_dimension_numbers<[1], [0], [0], [1], [0, 0, 1, 1], [], []>} : vector<32x4xf32>, vector<4x128xf32>, vector<32x128xf32> -> vector<32x128xf32>
    %c0_221 = arith.constant 0 : index
    %c27_222 = arith.constant 27 : index
    %c0_223 = arith.constant 0 : index
    %c0_224 = arith.constant 0 : index
    %166 = vector.load %arg4[%c0_221, %c27_222, %c0_223, %c0_224] : memref<1x32x32x128xf32, #tpu.memory_space<vmem>>, vector<1x1x32x128xf32>
    %167 = vector.shape_cast %166 : vector<1x1x32x128xf32> to vector<32x128xf32>
    %168 = vector.shape_cast %165 : vector<32x128xf32> to vector<1x1x32x128xf32>
    tpu.vector_store %arg4[%c0_221, %c27_222, %c0_223, %c0_224], %168 {strides = array<i32>} : memref<1x32x32x128xf32, #tpu.memory_space<vmem>>, vector<1x1x32x128xf32>,
    %c0_225 = arith.constant 0 : index
    %c28 = arith.constant 28 : index
    %c0_226 = arith.constant 0 : index
    %c0_227 = arith.constant 0 : index
    %169 = vector.load %arg3[%c0_225, %c28, %c0_226, %c0_227] : memref<1x32x4x128xf32, #tpu.memory_space<vmem>>, vector<1x1x4x128xf32>
    %170 = vector.shape_cast %169 : vector<1x1x4x128xf32> to vector<4x128xf32>
    %cst_228 = arith.constant dense<0.000000e+00> : vector<32x128xf32>
    %171 = tpu.matmul %0, %170, %cst_228 {dimension_numbers = #tpu.dot_dimension_numbers<[1], [0], [0], [1], [0, 0, 1, 1], [], []>} : vector<32x4xf32>, vector<4x128xf32>, vector<32x128xf32> -> vector<32x128xf32>
    %c0_229 = arith.constant 0 : index
    %c28_230 = arith.constant 28 : index
    %c0_231 = arith.constant 0 : index
    %c0_232 = arith.constant 0 : index
    %172 = vector.load %arg4[%c0_229, %c28_230, %c0_231, %c0_232] : memref<1x32x32x128xf32, #tpu.memory_space<vmem>>, vector<1x1x32x128xf32>
    %173 = vector.shape_cast %172 : vector<1x1x32x128xf32> to vector<32x128xf32>
    %174 = vector.shape_cast %171 : vector<32x128xf32> to vector<1x1x32x128xf32>
    tpu.vector_store %arg4[%c0_229, %c28_230, %c0_231, %c0_232], %174 {strides = array<i32>} : memref<1x32x32x128xf32, #tpu.memory_space<vmem>>, vector<1x1x32x128xf32>,
    %c0_233 = arith.constant 0 : index
    %c29 = arith.constant 29 : index
    %c0_234 = arith.constant 0 : index
    %c0_235 = arith.constant 0 : index
    %175 = vector.load %arg3[%c0_233, %c29, %c0_234, %c0_235] : memref<1x32x4x128xf32, #tpu.memory_space<vmem>>, vector<1x1x4x128xf32>
    %176 = vector.shape_cast %175 : vector<1x1x4x128xf32> to vector<4x128xf32>
    %cst_236 = arith.constant dense<0.000000e+00> : vector<32x128xf32>
    %177 = tpu.matmul %0, %176, %cst_236 {dimension_numbers = #tpu.dot_dimension_numbers<[1], [0], [0], [1], [0, 0, 1, 1], [], []>} : vector<32x4xf32>, vector<4x128xf32>, vector<32x128xf32> -> vector<32x128xf32>
    %c0_237 = arith.constant 0 : index
    %c29_238 = arith.constant 29 : index
    %c0_239 = arith.constant 0 : index
    %c0_240 = arith.constant 0 : index
    %178 = vector.load %arg4[%c0_237, %c29_238, %c0_239, %c0_240] : memref<1x32x32x128xf32, #tpu.memory_space<vmem>>, vector<1x1x32x128xf32>
    %179 = vector.shape_cast %178 : vector<1x1x32x128xf32> to vector<32x128xf32>
    %180 = vector.shape_cast %177 : vector<32x128xf32> to vector<1x1x32x128xf32>
    tpu.vector_store %arg4[%c0_237, %c29_238, %c0_239, %c0_240], %180 {strides = array<i32>} : memref<1x32x32x128xf32, #tpu.memory_space<vmem>>, vector<1x1x32x128xf32>,
    %c0_241 = arith.constant 0 : index
    %c30 = arith.constant 30 : index
    %c0_242 = arith.constant 0 : index
    %c0_243 = arith.constant 0 : index
    %181 = vector.load %arg3[%c0_241, %c30, %c0_242, %c0_243] : memref<1x32x4x128xf32, #tpu.memory_space<vmem>>, vector<1x1x4x128xf32>
    %182 = vector.shape_cast %181 : vector<1x1x4x128xf32> to vector<4x128xf32>
    %cst_244 = arith.constant dense<0.000000e+00> : vector<32x128xf32>
    %183 = tpu.matmul %0, %182, %cst_244 {dimension_numbers = #tpu.dot_dimension_numbers<[1], [0], [0], [1], [0, 0, 1, 1], [], []>} : vector<32x4xf32>, vector<4x128xf32>, vector<32x128xf32> -> vector<32x128xf32>
    %c0_245 = arith.constant 0 : index
    %c30_246 = arith.constant 30 : index
    %c0_247 = arith.constant 0 : index
    %c0_248 = arith.constant 0 : index
    %184 = vector.load %arg4[%c0_245, %c30_246, %c0_247, %c0_248] : memref<1x32x32x128xf32, #tpu.memory_space<vmem>>, vector<1x1x32x128xf32>
    %185 = vector.shape_cast %184 : vector<1x1x32x128xf32> to vector<32x128xf32>
    %186 = vector.shape_cast %183 : vector<32x128xf32> to vector<1x1x32x128xf32>
    tpu.vector_store %arg4[%c0_245, %c30_246, %c0_247, %c0_248], %186 {strides = array<i32>} : memref<1x32x32x128xf32, #tpu.memory_space<vmem>>, vector<1x1x32x128xf32>,
    %c0_249 = arith.constant 0 : index
    %c31 = arith.constant 31 : index
    %c0_250 = arith.constant 0 : index
    %c0_251 = arith.constant 0 : index
    %187 = vector.load %arg3[%c0_249, %c31, %c0_250, %c0_251] : memref<1x32x4x128xf32, #tpu.memory_space<vmem>>, vector<1x1x4x128xf32>
    %188 = vector.shape_cast %187 : vector<1x1x4x128xf32> to vector<4x128xf32>
    %cst_252 = arith.constant dense<0.000000e+00> : vector<32x128xf32>
    %189 = tpu.matmul %0, %188, %cst_252 {dimension_numbers = #tpu.dot_dimension_numbers<[1], [0], [0], [1], [0, 0, 1, 1], [], []>} : vector<32x4xf32>, vector<4x128xf32>, vector<32x128xf32> -> vector<32x128xf32>
    %c0_253 = arith.constant 0 : index
    %c31_254 = arith.constant 31 : index
    %c0_255 = arith.constant 0 : index
    %c0_256 = arith.constant 0 : index
    %190 = vector.load %arg4[%c0_253, %c31_254, %c0_255, %c0_256] : memref<1x32x32x128xf32, #tpu.memory_space<vmem>>, vector<1x1x32x128xf32>
    %191 = vector.shape_cast %190 : vector<1x1x32x128xf32> to vector<32x128xf32>
    %192 = vector.shape_cast %189 : vector<32x128xf32> to vector<1x1x32x128xf32>
    tpu.vector_store %arg4[%c0_253, %c31_254, %c0_255, %c0_256], %192 {strides = array<i32>} : memref<1x32x32x128xf32, #tpu.memory_space<vmem>>, vector<1x1x32x128xf32>,
    return
  }
  func.func @transform_0(%arg0: i32, %arg1: i32) -> (i32, i32) {
    %c0_i32 = arith.constant 0 : i32
    %c0_i32_0 = arith.constant 0 : i32
    %c0_i32_1 = arith.constant 0 : i32
    return %c0_i32, %c0_i32_0 : i32, i32
  }
  func.func @transform_1(%arg0: i32, %arg1: i32) -> (i32, i32, i32, i32) {
    %c0_i32 = arith.constant 0 : i32
    %c0_i32_0 = arith.constant 0 : i32
    %c0_i32_1 = arith.constant 0 : i32
    return %arg0, %arg1, %c0_i32, %c0_i32_0 : i32, i32, i32, i32
  }
  func.func @transform_2(%arg0: i32, %arg1: i32) -> (i32, i32, i32, i32) {
    %c0_i32 = arith.constant 0 : i32
    %c0_i32_0 = arith.constant 0 : i32
    %c0_i32_1 = arith.constant 0 : i32
    return %arg0, %arg1, %c0_i32, %c0_i32_0 : i32, i32, i32, i32
  }
}

</mosaic_0001>

<bundles_post_ra>
// kernel: _lambda_.6
= control target key start
LH: loop header
LB: loop body
LE: loop exit
PB: predicated region body
PF: predicated region fallthrough
CT: control target
= control target key end

     0   :  { %8 = vsyncpa [#allocation4], 0  ;;  %s1510_s0 = inlined_call_operand.vmem [shape: bf16[512,128], index: 0, kind: input, shape index: {}]   ;;  %s1511_s1 = inlined_call_operand.hbm [shape: bf16[128,128], index: 1, kind: input, shape index: {}]   ;;  %s1512_s2 = inlined_call_operand.hbm [shape: f32[1,128], index: 2, kind: input, shape index: {}]   ;;  %s1513_s3 = inlined_call_operand.vmem [shape: bf16[512,128], index: 3, kind: output, shape index: {}]  }
   0x1   :  { %9 = vsyncpa [#allocation6], 0  ;;  %s1368_s12 = smov 0   ;;  %s1370_s13 = smov 0  }
   0x2   :  { %s1372_s14 = smov 0  }
   0x3 LB: > { %s950_s15 = sadd.s32 4294967295, %s1342_s14   ;;  %s34_s16 = sadd.s32 1, %s1338_s13  ;;  %s1342_s14 = sphi %s1372_s14, %s15_s14   ;;  %s1338_s13 = sphi %s1370_s13, %s1517_s13   ;;  %s1334_s12 = sphi %s1368_s12, %s1516_s12  }
   0x4   : > { %p36_p0 = scmp.ge.s32.totalorder %s34_s16, 2  ;;  %p952_p1 = scmp.ge.s32.totalorder %s1342_s14, 1 }
   0x5   : > { %p149_p2 = scmp.lt.s32.totalorder %s1342_s14, 3  ;;  %p1393_p4 = scmp.eq.s32.totalorder %s950_s15, 0 }
   0x6   : > { %s1519_s16 = smov (%p36_p0, %s34_s16), 0  ;;  %s164_s21 = sshll.u32 %s1511_s1, 4  ;;  %s165_s21 = int_to_ptr.hbm [resolvable:$true] %s164_s21 }
   0x7   : > { %p1389_p3 = pnand %p952_p1, %p149_p2  ;;  %s1344_s22 = smov [#allocation3]  }
   0x8   : > { %s166_s23 = sshll.u32 %s1344_s22, 4  ;;  %s180_s26 = sshll.u32 %s1512_s2, 4  ;;  %s167_s23 = int_to_ptr.vmem [resolvable:$true] %s166_s23  ;;  %s181_s26 = int_to_ptr.hbm [resolvable:$true] %s180_s26 }
   0x9   : > { %p1212_p5 = pneg %p1389_p3  ;;  %s1345_s27 = smov 64  }
   0xa   : > { %s1346_s28 = smov 4   ;;  %s1347_s29 = smov [#allocation5]  }
   0xb   : > { %p1213_p6 = pnand %p1393_p4, %p1212_p5  ;;  %s182_s30 = sshll.u32 %s1347_s29, 4  ;;  %s183_s30 = int_to_ptr.vmem [resolvable:$true] %s182_s30 }
   0xc   : > { %207 = sbr.rel (%p1389_p3) target bundleno = 249 (0xf9), region = 32 }
   0xd   : > { %1215 = dma.hbm_to_vmem [thread:$0]  (!%p1213_p6), %s165_s21, 1024, %s167_s23, [#allocation4], %s1345_s27, %s1345_s27, %s1346_s28  }
   0xe   : > { %1218 = dma.hbm_to_vmem [thread:$0]  (!%p1213_p6), %s181_s26, 16, %s183_s30, [#allocation6]  }
  0x11   : > { %1325 = dma.done.wait (%p1393_p4), [#allocation4], 1024  }
  0x12   : > { %1327 = vsyncadd (%p1393_p4), [#allocation4], 4294966272 }
  0x13   : > { %1329 = dma.done.wait (%p1393_p4), [#allocation6], 16  }
  0x14   : > { %1331 = vsyncadd (%p1393_p4), [#allocation6], 4294967280  ;;  %v1084_v0 = vld [vmem:[#allocation3 + $0x38] sm:$0xff]  ;;  %v1083_v1 = vld [vmem:[#allocation3 + $0x30] sm:$0xff]  ;;  %s959_s4 = sshll.u32 %s1334_s12, 5 }
  0x15   : > { %522 = vmatpush.bf16.msra.mxu0 %v1084_v0  ;;  %1180 = vmatpush.bf16.msra.mxu1 %v1084_v0  ;;  %v1082_v2 = vld [vmem:[#allocation3 + $0x28] sm:$0xff]  ;;  %v1081_v3 = vld [vmem:[#allocation3 + $0x20] sm:$0xff]  ;;  %v1080_v4 = vld [vmem:[#allocation3 + $0x18] sm:$0xff]  ;;  %p244_p7 = scmp.lt.s32.totalorder %s959_s4, 63 }
  0x16   : > { %1181 = vmatpush.bf16.msra.mxu2 %v1084_v0  ;;  %1182 = vmatpush.bf16.msra.mxu3 %v1084_v0  ;;  %v1079_v5 = vld [vmem:[#allocation3 + $0x10] sm:$0xff]  ;;  %v1078_v6 = vld [vmem:[#allocation3 + $0x8] sm:$0xff]  ;;  %v1077_v7 = vld [vmem:[#allocation3] sm:$0xff] }
  0x17   : > { %s1521_s4 = smov (!%p244_p7, %s959_s4), 63  ;;  %v1444_v26 = vld [vmem:[#allocation5] ss:$0 sm:$0xff] }
  0x18   : > { %s960_s5 = sshll.u32 %s1521_s4, 2 }
  0x19   : > { %523 = vmatpush.bf16.msra.mxu0 %v1083_v1  ;;  %1183 = vmatpush.bf16.msra.mxu1 %v1083_v1  ;;  %s1426_s8 = scalar_lea.vmem %s1510_s0, %s960_s5  ;;  %s1455_s11 = scalar_lea.vmem %s1513_s3, %s960_s5 }
  0x1a   : > { %1184 = vmatpush.bf16.msra.mxu2 %v1083_v1  ;;  %1185 = vmatpush.bf16.msra.mxu3 %v1083_v1  ;;  %v1061_v8 = vld [vmem:[%s1426_s8] sm:$0xff]  ;;  %v1062_v12 = vld [vmem:[%s1426_s8 + $0x8] sm:$0xff]  ;;  %v1063_v16 = vld [vmem:[%s1426_s8 + $0x10] sm:$0xff] }
  0x1b   : > { %v1065_v9 = vld [vmem:[%s1426_s8 + $0x20] sm:$0xff]  ;;  %v1066_v13 = vld [vmem:[%s1426_s8 + $0x28] sm:$0xff]  ;;  %v1067_v17 = vld [vmem:[%s1426_s8 + $0x30] sm:$0xff] }
  0x1c   : > { %v1069_v10 = vld [vmem:[%s1426_s8 + $0x40] sm:$0xff]  ;;  %v1070_v14 = vld [vmem:[%s1426_s8 + $0x48] sm:$0xff]  ;;  %v1071_v18 = vld [vmem:[%s1426_s8 + $0x50] sm:$0xff] }
  0x1d   : > { %524 = vmatpush.bf16.msra.mxu0 %v1082_v2  ;;  %1186 = vmatpush.bf16.msra.mxu1 %v1082_v2  ;;  %v1073_v11 = vld [vmem:[%s1426_s8 + $0x60] sm:$0xff]  ;;  %v1074_v15 = vld [vmem:[%s1426_s8 + $0x68] sm:$0xff]  ;;  %v1075_v19 = vld [vmem:[%s1426_s8 + $0x70] sm:$0xff] }
  0x1e   : > { %1187 = vmatpush.bf16.msra.mxu2 %v1082_v2  ;;  %1188 = vmatpush.bf16.msra.mxu3 %v1082_v2  ;;  %v1064_v20 = vld [vmem:[%s1426_s8 + $0x18] sm:$0xff] }
  0x1f   : > { %v1068_v21 = vld [vmem:[%s1426_s8 + $0x38] sm:$0xff] }
  0x20   : > { %v1072_v22 = vld [vmem:[%s1426_s8 + $0x58] sm:$0xff] }
  0x21   : > { %525 = vmatpush.bf16.msra.mxu0 %v1081_v3  ;;  %1189 = vmatpush.bf16.msra.mxu1 %v1081_v3  ;;  %v1076_v23 = vld [vmem:[%s1426_s8 + $0x78] sm:$0xff] }
  0x22   : > { %1190 = vmatpush.bf16.msra.mxu2 %v1081_v3  ;;  %1191 = vmatpush.bf16.msra.mxu3 %v1081_v3 }
  0x25   : > { %526 = vmatpush.bf16.msra.mxu0 %v1080_v4  ;;  %1192 = vmatpush.bf16.msra.mxu1 %v1080_v4 }
  0x26   : > { %1193 = vmatpush.bf16.msra.mxu2 %v1080_v4  ;;  %1194 = vmatpush.bf16.msra.mxu3 %v1080_v4 }
  0x29   : > { %527 = vmatpush.bf16.msra.mxu0 %v1079_v5  ;;  %1195 = vmatpush.bf16.msra.mxu1 %v1079_v5 }
  0x2a   : > { %1196 = vmatpush.bf16.msra.mxu2 %v1079_v5  ;;  %1197 = vmatpush.bf16.msra.mxu3 %v1079_v5 }
  0x2d   : > { %528 = vmatpush.bf16.msra.mxu0 %v1078_v6  ;;  %1198 = vmatpush.bf16.msra.mxu1 %v1078_v6 }
  0x2e   : > { %1199 = vmatpush.bf16.msra.mxu2 %v1078_v6  ;;  %1200 = vmatpush.bf16.msra.mxu3 %v1078_v6 }
  0x31   : > { %529 = vmatpush.bf16.msra.mxu0 %v1077_v7  ;;  %1201 = vmatpush.bf16.msra.mxu1 %v1077_v7 }
  0x32   : > { %1202 = vmatpush.bf16.msra.mxu2 %v1077_v7  ;;  %1203 = vmatpush.bf16.msra.mxu3 %v1077_v7 }
  0x34   : > { %530 = vmatmul.bf16.vlgmr.msra.gmra.mxu0 %v1061_v8  ;;  %550 = vmatmul.bf16.vlgmr.msra.gmra.mxu1 %v1065_v9 }
  0x35   : > { %570 = vmatmul.bf16.vlgmr.msra.gmra.mxu2 %v1069_v10  ;;  %590 = vmatmul.bf16.vlgmr.msra.gmra.mxu3 %v1073_v11 }
  0x44   : > { %535 = vmatmul.bf16.gmra.mxu0 %v1062_v12  ;;  %555 = vmatmul.bf16.gmra.mxu1 %v1066_v13 }
  0x45   : > { %575 = vmatmul.bf16.gmra.mxu2 %v1070_v14  ;;  %595 = vmatmul.bf16.gmra.mxu3 %v1074_v15 }
  0x54   : > { %540 = vmatmul.bf16.gmra.mxu0 %v1063_v16  ;;  %560 = vmatmul.bf16.gmra.mxu1 %v1067_v17 }
  0x55   : > { %580 = vmatmul.bf16.gmra.mxu2 %v1071_v18  ;;  %600 = vmatmul.bf16.gmra.mxu3 %v1075_v19 }
  0x64   : > { %545 = vmatmul.bf16.gmra.mxu0 %v1064_v20  ;;  %565 = vmatmul.bf16.gmra.mxu1 %v1068_v21 }
  0x65   : > { %585 = vmatmul.bf16.gmra.mxu2 %v1072_v22  ;;  %605 = vmatmul.bf16.gmra.mxu3 %v1076_v23 }
  0xb1   : > { %v531_v24 = vpop.f32.mrf.mxu0  ;;  %v551_v25 = vpop.f32.mrf.mxu1 }
  0xb2   : > { %v714_v27 = vadd.f32 %v1444_v26, %v531_v24  ;;  %v722_v28 = vadd.f32 %v1444_v26, %v551_v25 }
  0xb4   : > { %v746_v35 = vmax.f32 %v714_v27, 0.0  ;;  %v754_v36 = vmax.f32 %v722_v28, 0.0 }
  0xb8   : > { %v571_v29 = vpop.f32.mrf.mxu2  ;;  %v591_v30 = vpop.f32.mrf.mxu3 }
  0xb9   : > { %v533_v31 = vpop.f32.mrf.mxu0  ;;  %v553_v32 = vpop.f32.mrf.mxu1  ;;  %v730_v41 = vadd.f32 %v1444_v26, %v571_v29  ;;  %v738_v42 = vadd.f32 %v1444_v26, %v591_v30 }
  0xba   : > { %v715_v33 = vadd.f32 %v1444_v26, %v533_v31  ;;  %v723_v34 = vadd.f32 %v1444_v26, %v553_v32 }
  0xbb   : > { %v762_v49 = vmax.f32 %v730_v41, 0.0  ;;  %v770_v50 = vmax.f32 %v738_v42, 0.0 }
  0xbc   : > { %v747_v37 = vmax.f32 %v715_v33, 0.0  ;;  %v755_v38 = vmax.f32 %v723_v34, 0.0 }
  0xbe   : > { %v1088_v39 = vpack.c.bf16 %v747_v37, %v746_v35  ;;  %v1108_v40 = vpack.c.bf16 %v755_v38, %v754_v36 }
  0xc0   : > { %1089 = vst [vmem:[%s1455_s11] sm:$0xff] %v1088_v39   ;;  %v573_v43 = vpop.f32.mrf.mxu2  ;;  %v593_v44 = vpop.f32.mrf.mxu3 }
  0xc1   : > { %1168 = vst [vmem:[%s1455_s11 + $0x20] sm:$0xff] %v1108_v40   ;;  %v731_v45 = vadd.f32 %v1444_v26, %v573_v43  ;;  %v739_v46 = vadd.f32 %v1444_v26, %v593_v44  ;;  %v536_v47 = vpop.f32.mrf.mxu0  ;;  %v556_v48 = vpop.f32.mrf.mxu1 }
  0xc2   : > { %v716_v55 = vadd.f32 %v1444_v26, %v536_v47  ;;  %v724_v56 = vadd.f32 %v1444_v26, %v556_v48 }
  0xc3   : > { %v763_v51 = vmax.f32 %v731_v45, 0.0  ;;  %v771_v52 = vmax.f32 %v739_v46, 0.0 }
  0xc4   : > { %v748_v63 = vmax.f32 %v716_v55, 0.0  ;;  %v756_v0 = vmax.f32 %v724_v56, 0.0 }
  0xc5   : > { %v1128_v53 = vpack.c.bf16 %v763_v51, %v762_v49  ;;  %v1148_v54 = vpack.c.bf16 %v771_v52, %v770_v50 }
  0xc7   : > { %1172 = vst [vmem:[%s1455_s11 + $0x40] sm:$0xff] %v1128_v53  }
  0xc8   : > { %1176 = vst [vmem:[%s1455_s11 + $0x60] sm:$0xff] %v1148_v54   ;;  %v576_v57 = vpop.f32.mrf.mxu2  ;;  %v596_v58 = vpop.f32.mrf.mxu3 }
  0xc9   : > { %v538_v59 = vpop.f32.mrf.mxu0  ;;  %v558_v60 = vpop.f32.mrf.mxu1  ;;  %v732_v5 = vadd.f32 %v1444_v26, %v576_v57  ;;  %v740_v6 = vadd.f32 %v1444_v26, %v596_v58 }
  0xca   : > { %v717_v61 = vadd.f32 %v1444_v26, %v538_v59  ;;  %v725_v62 = vadd.f32 %v1444_v26, %v558_v60 }
  0xcb   : > { %v764_v13 = vmax.f32 %v732_v5, 0.0  ;;  %v772_v14 = vmax.f32 %v740_v6, 0.0 }
  0xcc   : > { %v749_v1 = vmax.f32 %v717_v61, 0.0  ;;  %v757_v2 = vmax.f32 %v725_v62, 0.0 }
  0xce   : > { %v1093_v3 = vpack.c.bf16 %v749_v1, %v748_v63  ;;  %v1113_v4 = vpack.c.bf16 %v757_v2, %v756_v0 }
  0xd0   : > { %1165 = vst [vmem:[%s1455_s11 + $0x8] sm:$0xff] %v1093_v3   ;;  %v578_v7 = vpop.f32.mrf.mxu2  ;;  %v598_v8 = vpop.f32.mrf.mxu3 }
  0xd1   : > { %1169 = vst [vmem:[%s1455_s11 + $0x28] sm:$0xff] %v1113_v4   ;;  %v733_v9 = vadd.f32 %v1444_v26, %v578_v7  ;;  %v741_v10 = vadd.f32 %v1444_v26, %v598_v8  ;;  %v541_v11 = vpop.f32.mrf.mxu0  ;;  %v561_v12 = vpop.f32.mrf.mxu1 }
  0xd2   : > { %v718_v19 = vadd.f32 %v1444_v26, %v541_v11  ;;  %v726_v20 = vadd.f32 %v1444_v26, %v561_v12 }
  0xd3   : > { %v765_v15 = vmax.f32 %v733_v9, 0.0  ;;  %v773_v16 = vmax.f32 %v741_v10, 0.0 }
  0xd4   : > { %v750_v28 = vmax.f32 %v718_v19, 0.0  ;;  %v758_v29 = vmax.f32 %v726_v20, 0.0 }
  0xd5   : > { %v1133_v17 = vpack.c.bf16 %v765_v15, %v764_v13  ;;  %v1153_v18 = vpack.c.bf16 %v773_v16, %v772_v14 }
  0xd7   : > { %1173 = vst [vmem:[%s1455_s11 + $0x48] sm:$0xff] %v1133_v17  }
  0xd8   : > { %1177 = vst [vmem:[%s1455_s11 + $0x68] sm:$0xff] %v1153_v18   ;;  %v581_v21 = vpop.f32.mrf.mxu2  ;;  %v601_v22 = vpop.f32.mrf.mxu3 }
  0xd9   : > { %v543_v23 = vpop.f32.mrf.mxu0  ;;  %v563_v24 = vpop.f32.mrf.mxu1  ;;  %v734_v34 = vadd.f32 %v1444_v26, %v581_v21  ;;  %v742_v35 = vadd.f32 %v1444_v26, %v601_v22 }
  0xda   : > { %v719_v25 = vadd.f32 %v1444_v26, %v543_v23  ;;  %v727_v27 = vadd.f32 %v1444_v26, %v563_v24 }
  0xdb   : > { %v766_v42 = vmax.f32 %v734_v34, 0.0  ;;  %v774_v43 = vmax.f32 %v742_v35, 0.0 }
  0xdc   : > { %v751_v30 = vmax.f32 %v719_v25, 0.0  ;;  %v759_v31 = vmax.f32 %v727_v27, 0.0 }
  0xde   : > { %v1098_v32 = vpack.c.bf16 %v751_v30, %v750_v28  ;;  %v1118_v33 = vpack.c.bf16 %v759_v31, %v758_v29 }
  0xe0   : > { %1166 = vst [vmem:[%s1455_s11 + $0x10] sm:$0xff] %v1098_v32   ;;  %v583_v36 = vpop.f32.mrf.mxu2  ;;  %v603_v37 = vpop.f32.mrf.mxu3 }
  0xe1   : > { %1170 = vst [vmem:[%s1455_s11 + $0x30] sm:$0xff] %v1118_v33   ;;  %v735_v38 = vadd.f32 %v1444_v26, %v583_v36  ;;  %v743_v39 = vadd.f32 %v1444_v26, %v603_v37  ;;  %v546_v40 = vpop.f32.mrf.mxu0  ;;  %v566_v41 = vpop.f32.mrf.mxu1 }
  0xe2   : > { %v720_v48 = vadd.f32 %v1444_v26, %v546_v40  ;;  %v728_v49 = vadd.f32 %v1444_v26, %v566_v41 }
  0xe3   : > { %v767_v44 = vmax.f32 %v735_v38, 0.0  ;;  %v775_v45 = vmax.f32 %v743_v39, 0.0 }
  0xe4   : > { %v752_v56 = vmax.f32 %v720_v48, 0.0  ;;  %v760_v57 = vmax.f32 %v728_v49, 0.0 }
  0xe5   : > { %v1138_v46 = vpack.c.bf16 %v767_v44, %v766_v42  ;;  %v1158_v47 = vpack.c.bf16 %v775_v45, %v774_v43 }
  0xe7   : > { %1174 = vst [vmem:[%s1455_s11 + $0x50] sm:$0xff] %v1138_v46  }
  0xe8   : > { %1178 = vst [vmem:[%s1455_s11 + $0x70] sm:$0xff] %v1158_v47   ;;  %v586_v50 = vpop.f32.mrf.mxu2  ;;  %v606_v51 = vpop.f32.mrf.mxu3 }
  0xe9   : > { %v548_v52 = vpop.f32.mrf.mxu0  ;;  %v568_v53 = vpop.f32.mrf.mxu1  ;;  %v736_v62 = vadd.f32 %v1444_v26, %v586_v50  ;;  %v744_v63 = vadd.f32 %v1444_v26, %v606_v51 }
  0xea   : > { %v721_v54 = vadd.f32 %v1444_v26, %v548_v52  ;;  %v729_v55 = vadd.f32 %v1444_v26, %v568_v53 }
  0xeb   : > { %v768_v4 = vmax.f32 %v736_v62, 0.0  ;;  %v776_v5 = vmax.f32 %v744_v63, 0.0 }
  0xec   : > { %v753_v58 = vmax.f32 %v721_v54, 0.0  ;;  %v761_v59 = vmax.f32 %v729_v55, 0.0 }
  0xee   : > { %v1103_v60 = vpack.c.bf16 %v753_v58, %v752_v56  ;;  %v1123_v61 = vpack.c.bf16 %v761_v59, %v760_v57 }
  0xf0   : > { %1167 = vst [vmem:[%s1455_s11 + $0x18] sm:$0xff] %v1103_v60   ;;  %v588_v0 = vpop.f32.mrf.mxu2  ;;  %v608_v1 = vpop.f32.mrf.mxu3 }
  0xf1   : > { %1171 = vst [vmem:[%s1455_s11 + $0x38] sm:$0xff] %v1123_v61   ;;  %v737_v2 = vadd.f32 %v1444_v26, %v588_v0  ;;  %v745_v3 = vadd.f32 %v1444_v26, %v608_v1 }
  0xf3   : > { %v769_v6 = vmax.f32 %v737_v2, 0.0  ;;  %v777_v7 = vmax.f32 %v745_v3, 0.0 }
  0xf5   : > { %v1143_v8 = vpack.c.bf16 %v769_v6, %v768_v4  ;;  %v1163_v9 = vpack.c.bf16 %v777_v7, %v776_v5 }
  0xf7   : > { %1175 = vst [vmem:[%s1455_s11 + $0x58] sm:$0xff] %v1143_v8  }
  0xf8   : > { %1179 = vst [vmem:[%s1455_s11 + $0x78] sm:$0xff] %v1163_v9  }
  0xf9 PF: > { %s15_s14 = sadd.s32 1, %s1342_s14   ;;  %s1516_s12 = smov %s1338_s13 }
  0xfa   : > { %p12_p8 = scmp.ge.s32.totalorder %s15_s14, 4   ;;  %s1517_s13 = smov %s1519_s16 }
  0xfc   :  { %14 = sbr.rel (!%p12_p8) target bundleno = 3 (0x3), region = 81 }
 0x101   :  { %870 = vsyncpa [#allocation4], 1 }
 0x102   :  { %872 = vsyncpa [#allocation4 + $0x1], 1 }
 0x103   :  { %873 = vsyncpa [#allocation6], 1 }

// kernel: _lambda_.7
= control target key start
LH: loop header
LB: loop body
LE: loop exit
PB: predicated region body
PF: predicated region fallthrough
CT: control target
= control target key end

     0   :  { %s1577_s12 = smov 0   ;;  %s1579_s13 = smov 0   ;;  %s1867_s0 = inlined_call_operand.vmem [shape: bf16[128,1152], index: 0, kind: input, shape index: {}]   ;;  %s1868_s1 = inlined_call_operand.vmem [shape: bf16[1152,128], index: 1, kind: input, shape index: {}]   ;;  %s1869_s2 = inlined_call_operand.vmem [shape: f32[1,128], index: 2, kind: input, shape index: {}]   ;;  %s1870_s3 = inlined_call_operand.vmem [shape: bf16[128,128], index: 3, kind: output, shape index: {}]  }
   0x1   :  { %s1581_s14 = smov 0   ;;  %s1583_s15 = smov 0  }
   0x2   :  { %s1585_s16 = smov 0  }
   0x3 LB: > { %s25_s17 = sadd.s32 1, %s1550_s15  ;;  %p48_p1 = scmp.ne.s32.totalorder %s1542_s13, %s1538_s12  ;;  %s1554_s16 = sphi %s1585_s16, %s13_s16   ;;  %s1550_s15 = sphi %s1583_s15, %s1874_s15   ;;  %s1546_s14 = sphi %s1581_s14, %s1873_s14   ;;  %s1542_s13 = sphi %s1579_s13, %s1872_s13   ;;  %s1538_s12 = sphi %s1577_s12, %s1871_s12  }
   0x4   : > { %p26_p0 = scmp.ge.s32.totalorder %s25_s17, 3  ;;  %p49_p2 = scmp.eq.s32.totalorder %s1554_s16, 0 }
   0x5   : > { %s41_s19 = sadd.s32 1, %s1542_s13  ;;  %p1118_p5 = scmp.ge.s32.totalorder %s1554_s16, 3 }
   0x6   : > { %s1876_s17 = smov (%p26_p0, %s25_s17), 0  ;;  %p50_p3 = por %p49_p2, %p48_p1 }
   0x7   : > { %s37_s18 = ssub.s32 %s1550_s15, %s1876_s17  ;;  %162 = sbr.rel (%p1118_p5) target bundleno = 49 (0x31), region = 20 }
   0x8   : > { %p39_p4 = scmp.eq.s32.totalorder %s37_s18, 0 }
   0xa   : > { %s1612_s20 = scalar_select %p39_p4, %s1542_s13, %s41_s19  }
   0xc   : > { %165 = sbr.rel (!%p50_p3) target bundleno = 49 (0x31), region = 24  ;;  %s167_s21 = sand.u32 (%p50_p3), 1, %s1542_s13  }
   0xd   : > { %s1352_s22 = smul.u32 (%p50_p3), 12, %s1550_s15 }
   0xe   : > { %s1472_s23 = smul.u32 (%p50_p3), 192, %s167_s21 }
   0xf   : > { %s1620_s26 = scalar_lea.vmem (%p50_p3), %s1867_s0, %s1352_s22 }
  0x10   : > { %v190_v0 = vld [vmem:[%s1620_s26] sm:$0xff] (%p50_p3)  ;;  %v194_v2 = vld [vmem:[%s1620_s26 + $0x48] sm:$0xff] (%p50_p3)  ;;  %s1625_s27 = scalar_lea.vmem (%p50_p3), [#allocation3], %s1472_s23  ;;  %v198_v4 = vld [vmem:[%s1620_s26 + $0x90] sm:$0xff] (%p50_p3) }
  0x11   : > { %v192_v1 = vld [vmem:[%s1620_s26 + $0x24] sm:$0xff]  ;;  %191 = vst [vmem:[%s1625_s27] sm:$0xff] %v190_v0  ;;  %v196_v3 = vld [vmem:[%s1620_s26 + $0x6c] sm:$0xff]  ;;  %v200_v5 = vld [vmem:[%s1620_s26 + $0xb4] sm:$0xff] }
  0x12   : > { %193 = vst [vmem:[%s1625_s27 + $0xc] sm:$0xff] %v192_v1  ;;  %v202_v6 = vld [vmem:[%s1620_s26 + $0xd8] sm:$0xff]  ;;  %v206_v8 = vld [vmem:[%s1620_s26 + $0x120] sm:$0xff]  ;;  %v210_v10 = vld [vmem:[%s1620_s26 + $0x168] sm:$0xff] }
  0x13   : > { %195 = vst [vmem:[%s1625_s27 + $0x18] sm:$0xff] %v194_v2  ;;  %v204_v7 = vld [vmem:[%s1620_s26 + $0xfc] sm:$0xff]  ;;  %v208_v9 = vld [vmem:[%s1620_s26 + $0x144] sm:$0xff]  ;;  %v212_v11 = vld [vmem:[%s1620_s26 + $0x18c] sm:$0xff] }
  0x14   : > { %197 = vst [vmem:[%s1625_s27 + $0x24] sm:$0xff] %v196_v3  ;;  %v214_v12 = vld [vmem:[%s1620_s26 + $0x1b0] sm:$0xff]  ;;  %v218_v14 = vld [vmem:[%s1620_s26 + $0x1f8] sm:$0xff]  ;;  %v1120_v16 = vld [vmem:[%s1620_s26 + $0x8] sm:$0xf] }
  0x15   : > { %199 = vst [vmem:[%s1625_s27 + $0x30] sm:$0xff] %v198_v4  ;;  %v216_v13 = vld [vmem:[%s1620_s26 + $0x1d4] sm:$0xff]  ;;  %v220_v15 = vld [vmem:[%s1620_s26 + $0x21c] sm:$0xff]  ;;  %v1122_v17 = vld [vmem:[%s1620_s26 + $0x2c] sm:$0xf] }
  0x16   : > { %201 = vst [vmem:[%s1625_s27 + $0x3c] sm:$0xff] %v200_v5  ;;  %v1124_v18 = vld [vmem:[%s1620_s26 + $0x50] sm:$0xf]  ;;  %v1126_v19 = vld [vmem:[%s1620_s26 + $0x74] sm:$0xf] }
  0x17   : > { %203 = vst [vmem:[%s1625_s27 + $0x48] sm:$0xff] %v202_v6  ;;  %v1128_v20 = vld [vmem:[%s1620_s26 + $0x98] sm:$0xf]  ;;  %v1130_v21 = vld [vmem:[%s1620_s26 + $0xbc] sm:$0xf] }
  0x18   : > { %205 = vst [vmem:[%s1625_s27 + $0x54] sm:$0xff] %v204_v7  ;;  %v1132_v22 = vld [vmem:[%s1620_s26 + $0xe0] sm:$0xf]  ;;  %v1134_v23 = vld [vmem:[%s1620_s26 + $0x104] sm:$0xf] }
  0x19   : > { %207 = vst [vmem:[%s1625_s27 + $0x60] sm:$0xff] %v206_v8  ;;  %v1136_v24 = vld [vmem:[%s1620_s26 + $0x128] sm:$0xf]  ;;  %v1138_v25 = vld [vmem:[%s1620_s26 + $0x14c] sm:$0xf] }
  0x1a   : > { %209 = vst [vmem:[%s1625_s27 + $0x6c] sm:$0xff] %v208_v9  ;;  %v1140_v26 = vld [vmem:[%s1620_s26 + $0x170] sm:$0xf]  ;;  %v1142_v27 = vld [vmem:[%s1620_s26 + $0x194] sm:$0xf] }
  0x1b   : > { %211 = vst [vmem:[%s1625_s27 + $0x78] sm:$0xff] %v210_v10  ;;  %v1144_v28 = vld [vmem:[%s1620_s26 + $0x1b8] sm:$0xf]  ;;  %v1146_v29 = vld [vmem:[%s1620_s26 + $0x1dc] sm:$0xf] }
  0x1c   : > { %213 = vst [vmem:[%s1625_s27 + $0x84] sm:$0xff] %v212_v11  ;;  %v1148_v30 = vld [vmem:[%s1620_s26 + $0x200] sm:$0xf]  ;;  %v1150_v31 = vld [vmem:[%s1620_s26 + $0x224] sm:$0xf] }
  0x1d   : > { %215 = vst [vmem:[%s1625_s27 + $0x90] sm:$0xff] %v214_v12 }
  0x1e   : > { %217 = vst [vmem:[%s1625_s27 + $0x9c] sm:$0xff] %v216_v13 }
  0x1f   : > { %219 = vst [vmem:[%s1625_s27 + $0xa8] sm:$0xff] %v218_v14 }
  0x20   : > { %221 = vst [vmem:[%s1625_s27 + $0xb4] sm:$0xff] %v220_v15 }
  0x21   : > { %1121 = vst [vmem:[%s1625_s27 + $0x8] sm:$0xf] %v1120_v16 }
  0x22   : > { %1123 = vst [vmem:[%s1625_s27 + $0x14] sm:$0xf] %v1122_v17 }
  0x23   : > { %1125 = vst [vmem:[%s1625_s27 + $0x20] sm:$0xf] %v1124_v18 }
  0x24   : > { %1127 = vst [vmem:[%s1625_s27 + $0x2c] sm:$0xf] %v1126_v19 }
  0x25   : > { %1129 = vst [vmem:[%s1625_s27 + $0x38] sm:$0xf] %v1128_v20 }
  0x26   : > { %1131 = vst [vmem:[%s1625_s27 + $0x44] sm:$0xf] %v1130_v21 }
  0x27   : > { %1133 = vst [vmem:[%s1625_s27 + $0x50] sm:$0xf] %v1132_v22 }
  0x28   : > { %1135 = vst [vmem:[%s1625_s27 + $0x5c] sm:$0xf] %v1134_v23 }
  0x29   : > { %1137 = vst [vmem:[%s1625_s27 + $0x68] sm:$0xf] %v1136_v24 }
  0x2a   : > { %1139 = vst [vmem:[%s1625_s27 + $0x74] sm:$0xf] %v1138_v25 }
  0x2b   : > { %1141 = vst [vmem:[%s1625_s27 + $0x80] sm:$0xf] %v1140_v26 }
  0x2c   : > { %1143 = vst [vmem:[%s1625_s27 + $0x8c] sm:$0xf] %v1142_v27 }
  0x2d   : > { %1145 = vst [vmem:[%s1625_s27 + $0x98] sm:$0xf] %v1144_v28 }
  0x2e   : > { %1147 = vst [vmem:[%s1625_s27 + $0xa4] sm:$0xf] %v1146_v29 }
  0x2f   : > { %1149 = vst [vmem:[%s1625_s27 + $0xb0] sm:$0xf] %v1148_v30 }
  0x30   : > { %1151 = vst [vmem:[%s1625_s27 + $0xbc] sm:$0xf] %v1150_v31 }
  0x31 PF: > { %p1152_p6 = scmp.ge.s32.totalorder %s1554_s16, 1  ;;  %p278_p7 = scmp.lt.s32.totalorder %s1554_s16, 4 }
  0x33   : > { %p279_p8 = pnand %p1152_p6, %p278_p7 }
  0x34   : > { %s285_s28 = sand.u32 (!%p279_p8), 1, %s1538_s12   ;;  %s324_s29 = smul.u32 (!%p279_p8), 48, %s1546_s14 }
  0x35   : > { %282 = sbr.rel (%p279_p8) target bundleno = 355 (0x163), region = 54  ;;  %p1154_p10 = scmp.ne.s32.totalorder (!%p279_p8), %s1546_s14, 0 }
  0x36   : > { %s1473_s30 = smul.u32 (!%p279_p8), 192, %s285_s28  ;;  %p325_p9 = scmp.lt.s32.totalorder (!%p279_p8), %s324_s29, 143 }
  0x38   : > { %s1697_s8 = scalar_lea.vmem (!%p279_p8), [#allocation3], %s1473_s30 }
  0x3a   : > { %s1878_s29 = smov (!%p325_p9, %s324_s29), 143  ;;  %348 = sbr.rel (%p1154_p10) target bundleno = 80 (0x50), region = 62 }
  0x3b   : > { %s1153_s4 = sshll.u32 %s1878_s29, 2 }
  0x3c   : > { %s1695_s7 = scalar_lea.vmem %s1868_s1, %s1153_s4 }
  0x3f   : > { %v1556_v32 = vmov 0.0  }
  0x40   : > { %349 = vst [vmem:[#allocation2 + $0x30] sm:$0xff] %v1556_v32 }
  0x41   : > { %350 = vst [vmem:[#allocation2] sm:$0xff] %v1556_v32 }
  0x42   : > { %351 = vst [vmem:[#allocation2 + $0x58] sm:$0xff] %v1556_v32 }
  0x43   : > { %352 = vst [vmem:[#allocation2 + $0x18] sm:$0xff] %v1556_v32 }
  0x44   : > { %353 = vst [vmem:[#allocation2 + $0x50] sm:$0xff] %v1556_v32 }
  0x45   : > { %354 = vst [vmem:[#allocation2 + $0x68] sm:$0xff] %v1556_v32 }
  0x46   : > { %355 = vst [vmem:[#allocation2 + $0x8] sm:$0xff] %v1556_v32 }
  0x47   : > { %356 = vst [vmem:[#allocation2 + $0x48] sm:$0xff] %v1556_v32 }
  0x48   : > { %357 = vst [vmem:[#allocation2 + $0x40] sm:$0xff] %v1556_v32 }
  0x49   : > { %358 = vst [vmem:[#allocation2 + $0x20] sm:$0xff] %v1556_v32 }
  0x4a   : > { %359 = vst [vmem:[#allocation2 + $0x10] sm:$0xff] %v1556_v32 }
  0x4b   : > { %360 = vst [vmem:[#allocation2 + $0x38] sm:$0xff] %v1556_v32 }
  0x4c   : > { %361 = vst [vmem:[#allocation2 + $0x60] sm:$0xff] %v1556_v32 }
  0x4d   : > { %362 = vst [vmem:[#allocation2 + $0x70] sm:$0xff] %v1556_v32 }
  0x4e   : > { %363 = vst [vmem:[#allocation2 + $0x78] sm:$0xff] %v1556_v32 }
  0x4f   : > { %364 = vst [vmem:[#allocation2 + $0x28] sm:$0xff] %v1556_v32 }
  0x50 PF: > { %v1384_v33 = vld [vmem:[%s1695_s7 + $0x38] sm:$0xff]  ;;  %v1383_v36 = vld [vmem:[%s1695_s7 + $0x30] sm:$0xff]  ;;  %v1382_v39 = vld [vmem:[%s1695_s7 + $0x28] sm:$0xff]  ;;  %p1347_p11 = scmp.ne.s32.totalorder %s1546_s14, 2 }
  0x51   : > { %v1702_v34 = vld [vmem:[%s1695_s7 + $0x78] sm:$0xff]  ;;  %733 = vmatpush.bf16.msra.mxu0 %v1384_v33  ;;  %1448 = vmatpush.bf16.msra.mxu3 %v1384_v33  ;;  %v1711_v37 = vld [vmem:[%s1695_s7 + $0x70] sm:$0xff]  ;;  %v1390_v40 = vld [vmem:[%s1695_s7 + $0x68] sm:$0xff] }
  0x52   : > { %v1705_v35 = vld [vmem:[%s1695_s7 + $0xb8] sm:$0xff]  ;;  %782 = vmatpush.bf16.msra.mxu1 %v1702_v34  ;;  %v1714_v38 = vld [vmem:[%s1695_s7 + $0xb0] sm:$0xff]  ;;  %v1721_v41 = vld [vmem:[%s1695_s7 + $0xa8] sm:$0xff] }
  0x53   : > { %831 = vmatpush.bf16.msra.mxu2 %v1705_v35  ;;  %v1381_v42 = vld [vmem:[%s1695_s7 + $0x20] sm:$0xff]  ;;  %v1380_v45 = vld [vmem:[%s1695_s7 + $0x18] sm:$0xff]  ;;  %v1379_v48 = vld [vmem:[%s1695_s7 + $0x10] sm:$0xff] }
  0x54   : > { %v1389_v43 = vld [vmem:[%s1695_s7 + $0x60] sm:$0xff]  ;;  %v1388_v46 = vld [vmem:[%s1695_s7 + $0x58] sm:$0xff]  ;;  %v1387_v49 = vld [vmem:[%s1695_s7 + $0x50] sm:$0xff] }
  0x55   : > { %734 = vmatpush.bf16.msra.mxu0 %v1383_v36  ;;  %1449 = vmatpush.bf16.msra.mxu3 %v1383_v36  ;;  %v1727_v44 = vld [vmem:[%s1695_s7 + $0xa0] sm:$0xff]  ;;  %v1733_v47 = vld [vmem:[%s1695_s7 + $0x98] sm:$0xff]  ;;  %v1739_v50 = vld [vmem:[%s1695_s7 + $0x90] sm:$0xff] }
  0x56   : > { %783 = vmatpush.bf16.msra.mxu1 %v1711_v37  ;;  %v1378_v51 = vld [vmem:[%s1695_s7 + $0x8] sm:$0xff]  ;;  %v1377_v54 = vld [vmem:[%s1695_s7] sm:$0xff]  ;;  %v1229_v59 = vld [vmem:[%s1697_s8 + $0x90] sm:$0xf] }
  0x57   : > { %832 = vmatpush.bf16.msra.mxu2 %v1714_v38  ;;  %v1386_v52 = vld [vmem:[%s1695_s7 + $0x48] sm:$0xff]  ;;  %v1385_v55 = vld [vmem:[%s1695_s7 + $0x40] sm:$0xff]  ;;  %v1372_v60 = vld [vmem:[%s1697_s8 + $0x98] sm:$0xf0] }
  0x58   : > { %v1745_v53 = vld [vmem:[%s1695_s7 + $0x88] sm:$0xff]  ;;  %v1750_v56 = vld [vmem:[%s1695_s7 + $0x80] sm:$0xff]  ;;  %v1159_v62 = vld [vmem:[%s1697_s8 + $0xc] sm:$0xf0]  ;;  %v1230_v2 = vor.u32 %v1372_v60, %v1229_v59 }
  0x59   : > { %735 = vmatpush.bf16.msra.mxu0 %v1382_v39  ;;  %1450 = vmatpush.bf16.msra.mxu3 %v1382_v39  ;;  %v1157_v57 = vld [vmem:[%s1697_s8] sm:$0xf]  ;;  %v1354_v58 = vld [vmem:[%s1697_s8 + $0x8] sm:$0xf0]  ;;  %v1353_v61 = vld [vmem:[%s1697_s8 + $0x4] sm:$0xf] }
  0x5a   : > { %784 = vmatpush.bf16.msra.mxu1 %v1390_v40  ;;  %v1165_v63 = vld [vmem:[%s1697_s8 + $0x8] sm:$0xf]  ;;  %v1355_v0 = vld [vmem:[%s1697_s8 + $0x10] sm:$0xf0]  ;;  %v1158_v1 = vor.u32 %v1354_v58, %v1157_v57  ;;  %v1162_v3 = vor.u32 %v1353_v61, %v1159_v62  ;;  %v1169_v5 = vld [vmem:[%s1697_s8 + $0x18] sm:$0xf] }
  0x5b   : > { %833 = vmatpush.bf16.msra.mxu2 %v1721_v41  ;;  %v1166_v4 = vor.u32 %v1355_v0, %v1165_v63  ;;  %v1357_v6 = vld [vmem:[%s1697_s8 + $0x20] sm:$0xf0]  ;;  %v1241_v7 = vld [vmem:[%s1697_s8 + $0xa8] sm:$0xf]  ;;  %v1375_v8 = vld [vmem:[%s1697_s8 + $0xb0] sm:$0xf0] }
  0x5c   : > { %v1356_v9 = vld [vmem:[%s1697_s8 + $0x1c] sm:$0xf]  ;;  %v1171_v10 = vld [vmem:[%s1697_s8 + $0x24] sm:$0xf0]  ;;  %v1177_v11 = vld [vmem:[%s1697_s8 + $0x20] sm:$0xf]  ;;  %v1170_v13 = vor.u32 %v1357_v6, %v1169_v5  ;;  %v1242_v14 = vor.u32 %v1375_v8, %v1241_v7 }
  0x5d   : > { %736 = vmatpush.bf16.msra.mxu0 %v1381_v42  ;;  %1451 = vmatpush.bf16.msra.mxu3 %v1381_v42  ;;  %v1358_v12 = vld [vmem:[%s1697_s8 + $0x28] sm:$0xf0]  ;;  %v1174_v15 = vor.u32 %v1356_v9, %v1171_v10  ;;  %v1181_v17 = vld [vmem:[%s1697_s8 + $0x30] sm:$0xf]  ;;  %v1360_v18 = vld [vmem:[%s1697_s8 + $0x38] sm:$0xf0] }
  0x5e   : > { %785 = vmatpush.bf16.msra.mxu1 %v1389_v43  ;;  %v1178_v16 = vor.u32 %v1358_v12, %v1177_v11  ;;  %v1359_v19 = vld [vmem:[%s1697_s8 + $0x34] sm:$0xf]  ;;  %v1231_v21 = vld [vmem:[%s1697_s8 + $0x9c] sm:$0xf0]  ;;  %v1189_v23 = vld [vmem:[%s1697_s8 + $0x38] sm:$0xf]  ;;  %v1182_v25 = vor.u32 %v1360_v18, %v1181_v17 }
  0x5f   : > { %834 = vmatpush.bf16.msra.mxu2 %v1727_v44  ;;  %v1371_v20 = vld [vmem:[%s1697_s8 + $0x94] sm:$0xf]  ;;  %v1183_v22 = vld [vmem:[%s1697_s8 + $0x3c] sm:$0xf0]  ;;  %v1361_v24 = vld [vmem:[%s1697_s8 + $0x40] sm:$0xf0] }
  0x60   : > { %v1234_v26 = vor.u32 %v1371_v20, %v1231_v21  ;;  %v1186_v27 = vor.u32 %v1359_v19, %v1183_v22  ;;  %v1190_v28 = vor.u32 %v1361_v24, %v1189_v23  ;;  %v1193_v29 = vld [vmem:[%s1697_s8 + $0x48] sm:$0xf]  ;;  %v1363_v30 = vld [vmem:[%s1697_s8 + $0x50] sm:$0xf0]  ;;  %v1362_v31 = vld [vmem:[%s1697_s8 + $0x4c] sm:$0xf] }
  0x61   : > { %737 = vmatpush.bf16.msra.mxu0 %v1380_v45  ;;  %1452 = vmatpush.bf16.msra.mxu3 %v1380_v45  ;;  %v1374_v32 = vld [vmem:[%s1697_s8 + $0xac] sm:$0xf]  ;;  %v1243_v33 = vld [vmem:[%s1697_s8 + $0xb4] sm:$0xf0]  ;;  %v1364_v36 = vld [vmem:[%s1697_s8 + $0x58] sm:$0xf0] }
  0x62   : > { %786 = vmatpush.bf16.msra.mxu1 %v1388_v46  ;;  %v1246_v39 = vor.u32 %v1374_v32, %v1243_v33  ;;  %v1366_v42 = vld [vmem:[%s1697_s8 + $0x68] sm:$0xf0]  ;;  %v1373_v45 = vld [vmem:[%s1697_s8 + $0xa0] sm:$0xf0]  ;;  %v1249_v57 = vld [vmem:[%s1697_s8 + $0xb0] sm:$0xf] }
  0x63   : > { %835 = vmatpush.bf16.msra.mxu2 %v1733_v47  ;;  %v1219_v58 = vld [vmem:[%s1697_s8 + $0x84] sm:$0xf0]  ;;  %v1225_v59 = vld [vmem:[%s1697_s8 + $0x80] sm:$0xf]  ;;  %v1370_v60 = vld [vmem:[%s1697_s8 + $0x88] sm:$0xf0] }
  0x64   : > { %v1226_v0 = vor.u32 %v1370_v60, %v1225_v59  ;;  %v365_v5 = vld [vmem:[#allocation2 + $0x30] sm:$0xff]  ;;  %v367_v21 = vld [vmem:[#allocation2 + $0x58] sm:$0xff] }
  0x65   : > { %738 = vmatpush.bf16.msra.mxu0 %v1379_v48  ;;  %1453 = vmatpush.bf16.msra.mxu3 %v1379_v48  ;;  %v1367_v48 = vld [vmem:[%s1697_s8 + $0x70] sm:$0xf0] }
  0x66   : > { %787 = vmatpush.bf16.msra.mxu1 %v1387_v49 }
  0x67   : > { %836 = vmatpush.bf16.msra.mxu2 %v1739_v50 }
  0x69   : > { %739 = vmatpush.bf16.msra.mxu0 %v1378_v51  ;;  %1454 = vmatpush.bf16.msra.mxu3 %v1378_v51 }
  0x6a   : > { %788 = vmatpush.bf16.msra.mxu1 %v1386_v52 }
  0x6b   : > { %837 = vmatpush.bf16.msra.mxu2 %v1745_v53 }
  0x6d   : > { %740 = vmatpush.bf16.msra.mxu0 %v1377_v54  ;;  %1455 = vmatpush.bf16.msra.mxu3 %v1377_v54  ;;  %v1369_v54 = vld [vmem:[%s1697_s8 + $0x80] sm:$0xf0] }
  0x6e   : > { %789 = vmatpush.bf16.msra.mxu1 %v1385_v55 }
  0x6f   : > { %838 = vmatpush.bf16.msra.mxu2 %v1750_v56 }
  0x70   : > { %741 = vmatmul.bf16.vlgmr.msra.gmra.mxu0 %v1158_v1  ;;  %771 = vmatmul.bf16.vlgmr.msra.gmra.mxu3 %v1230_v2 }
  0x71   : > { %1456 = vmatpush.bf16.msrb.mxu3 %v1702_v34  ;;  %790 = vmatmul.bf16.vlgmr.msra.gmra.mxu1 %v1162_v3  ;;  %v1195_v34 = vld [vmem:[%s1697_s8 + $0x54] sm:$0xf0] }
  0x72   : > { %839 = vmatmul.bf16.vlgmr.msra.gmra.mxu2 %v1166_v4 }
  0x75   : > { %1457 = vmatpush.bf16.msrb.mxu3 %v1711_v37  ;;  %v1194_v37 = vor.u32 %v1363_v30, %v1193_v29  ;;  %v368_v29 = vld [vmem:[#allocation2 + $0x18] sm:$0xff] }
  0x79   : > { %1458 = vmatpush.bf16.msrb.mxu3 %v1390_v40 }
  0x7d   : > { %1459 = vmatpush.bf16.msrb.mxu3 %v1389_v43  ;;  %v1365_v43 = vld [vmem:[%s1697_s8 + $0x64] sm:$0xf] }
  0x80   : > { %746 = vmatmul.bf16.gmra.mxu0 %v1170_v13  ;;  %776 = vmatmul.bf16.gmra.mxu3 %v1242_v14  ;;  %v366_v13 = vld [vmem:[#allocation2] sm:$0xff] }
  0x81   : > { %1460 = vmatpush.bf16.msrb.mxu3 %v1388_v46  ;;  %795 = vmatmul.bf16.gmra.mxu1 %v1174_v15  ;;  %v1207_v46 = vld [vmem:[%s1697_s8 + $0x6c] sm:$0xf0] }
  0x82   : > { %844 = vmatmul.bf16.gmra.mxu2 %v1178_v16  ;;  %v1210_v51 = vor.u32 %v1365_v43, %v1207_v46 }
  0x85   : > { %1461 = vmatpush.bf16.msrb.mxu3 %v1387_v49 }
  0x89   : > { %1462 = vmatpush.bf16.msrb.mxu3 %v1386_v52 }
  0x8d   : > { %1463 = vmatpush.bf16.msrb.mxu3 %v1385_v55  ;;  %v1368_v55 = vld [vmem:[%s1697_s8 + $0x7c] sm:$0xf] }
  0x8e   : > { %v1222_v63 = vor.u32 %v1368_v55, %v1219_v58 }
  0x90   : > { %751 = vmatmul.bf16.gmra.mxu0 %v1182_v25  ;;  %820 = vmatmul.bf16.vlgmr.msrb.gmra.mxu3 %v1234_v26 }
  0x91   : > { %1464 = vmatpush.bf16.msra.mxu3 %v1705_v35  ;;  %800 = vmatmul.bf16.gmra.mxu1 %v1186_v27  ;;  %v1201_v35 = vld [vmem:[%s1697_s8 + $0x50] sm:$0xf] }
  0x92   : > { %849 = vmatmul.bf16.gmra.mxu2 %v1190_v28  ;;  %v1202_v40 = vor.u32 %v1364_v36, %v1201_v35 }
  0x95   : > { %1465 = vmatpush.bf16.msra.mxu3 %v1714_v38  ;;  %v1198_v38 = vor.u32 %v1362_v31, %v1195_v34 }
  0x99   : > { %1466 = vmatpush.bf16.msra.mxu3 %v1721_v41  ;;  %v1205_v41 = vld [vmem:[%s1697_s8 + $0x60] sm:$0xf] }
  0x9a   : > { %v1206_v49 = vor.u32 %v1366_v42, %v1205_v41 }
  0x9d   : > { %1467 = vmatpush.bf16.msra.mxu3 %v1727_v44  ;;  %v1237_v44 = vld [vmem:[%s1697_s8 + $0x98] sm:$0xf] }
  0xa0   : > { %756 = vmatmul.bf16.gmra.mxu0 %v1194_v37  ;;  %825 = vmatmul.bf16.gmra.mxu3 %v1246_v39  ;;  %v369_v37 = vld [vmem:[#allocation2 + $0x50] sm:$0xff] }
  0xa1   : > { %1468 = vmatpush.bf16.msra.mxu3 %v1733_v47  ;;  %805 = vmatmul.bf16.gmra.mxu1 %v1198_v38  ;;  %v1213_v47 = vld [vmem:[%s1697_s8 + $0x68] sm:$0xf] }
  0xa2   : > { %854 = vmatmul.bf16.gmra.mxu2 %v1202_v40  ;;  %v1214_v52 = vor.u32 %v1367_v48, %v1213_v47 }
  0xa5   : > { %1469 = vmatpush.bf16.msra.mxu3 %v1739_v50  ;;  %v1238_v50 = vor.u32 %v1373_v45, %v1237_v44  ;;  %v370_v45 = vld [vmem:[#allocation2 + $0x68] sm:$0xff] }
  0xa9   : > { %1470 = vmatpush.bf16.msra.mxu3 %v1745_v53  ;;  %v1217_v53 = vld [vmem:[%s1697_s8 + $0x78] sm:$0xf] }
  0xaa   : > { %v1218_v61 = vor.u32 %v1369_v54, %v1217_v53  ;;  %v371_v53 = vld [vmem:[#allocation2 + $0x8] sm:$0xff] }
  0xad   : > { %1471 = vmatpush.bf16.msra.mxu3 %v1750_v56  ;;  %v1376_v56 = vld [vmem:[%s1697_s8 + $0xb8] sm:$0xf0] }
  0xae   : > { %v1250_v62 = vor.u32 %v1376_v56, %v1249_v57 }
  0xb0   : > { %761 = vmatmul.bf16.gmra.mxu0 %v1206_v49  ;;  %869 = vmatmul.bf16.vlgmr.msra.gmra.mxu3 %v1238_v50 }
  0xb1   : > { %810 = vmatmul.bf16.gmra.mxu1 %v1210_v51 }
  0xb2   : > { %859 = vmatmul.bf16.gmra.mxu2 %v1214_v52 }
  0xc0   : > { %766 = vmatmul.bf16.gmra.mxu0 %v1218_v61  ;;  %874 = vmatmul.bf16.gmra.mxu3 %v1250_v62  ;;  %v372_v61 = vld [vmem:[#allocation2 + $0x48] sm:$0xff] }
  0xc1   : > { %815 = vmatmul.bf16.gmra.mxu1 %v1222_v63 }
  0xc2   : > { %864 = vmatmul.bf16.gmra.mxu2 %v1226_v0 }
  0xed   : > { %v742_v1 = vpop.f32.mrf.mxu0 }
  0xee   : > { %v791_v2 = vpop.f32.mrf.mxu1 }
  0xef   : > { %v792_v3 = vadd.f32 %v791_v2, %v742_v1 }
  0xf3   : > { %v1812_v4 = vpop.f32.mrf.mxu3 }
  0xf5   : > { %v840_v6 = vpop.f32.mrf.mxu2  ;;  %v744_v8 = vpop.f32.mrf.mxu0 }
  0xf6   : > { %v841_v7 = vadd.f32 %v840_v6, %v792_v3  ;;  %v793_v9 = vpop.f32.mrf.mxu1  ;;  %v377_v6 = vld [vmem:[#allocation2 + $0x60] sm:$0xff] }
  0xf7   : > { %v794_v11 = vadd.f32 %v793_v9, %v744_v8  ;;  %v373_v8 = vld [vmem:[#allocation2 + $0x40] sm:$0xff] }
  0xf8   : > { %v880_v10 = vadd.f32 %v841_v7, %v365_v5 }
  0xfa   : > { %896 = vst [vmem:[#allocation2 + $0x30] sm:$0xff] %v880_v10 }
  0xfb   : > { %v1814_v12 = vpop.f32.mrf.mxu3 }
  0xfd   : > { %v842_v14 = vpop.f32.mrf.mxu2  ;;  %v747_v16 = vpop.f32.mrf.mxu0 }
  0xfe   : > { %v843_v15 = vadd.f32 %v842_v14, %v794_v11  ;;  %v796_v17 = vpop.f32.mrf.mxu1 }
  0xff   : > { %v797_v19 = vadd.f32 %v796_v17, %v747_v16 }
 0x100   : > { %v881_v18 = vadd.f32 %v843_v15, %v366_v13 }
 0x102   : > { %897 = vst [vmem:[#allocation2] sm:$0xff] %v881_v18 }
 0x103   : > { %v1816_v20 = vpop.f32.mrf.mxu3 }
 0x105   : > { %v845_v22 = vpop.f32.mrf.mxu2  ;;  %v749_v24 = vpop.f32.mrf.mxu0 }
 0x106   : > { %v846_v23 = vadd.f32 %v845_v22, %v797_v19  ;;  %v798_v25 = vpop.f32.mrf.mxu1  ;;  %v378_v19 = vld [vmem:[#allocation2 + $0x70] sm:$0xff]  ;;  %v374_v22 = vld [vmem:[#allocation2 + $0x20] sm:$0xff] }
 0x107   : > { %v799_v27 = vadd.f32 %v798_v25, %v749_v24 }
 0x108   : > { %v882_v26 = vadd.f32 %v846_v23, %v367_v21 }
 0x10a   : > { %898 = vst [vmem:[#allocation2 + $0x58] sm:$0xff] %v882_v26 }
 0x10b   : > { %v1818_v28 = vpop.f32.mrf.mxu3 }
 0x10d   : > { %v847_v30 = vpop.f32.mrf.mxu2  ;;  %v752_v32 = vpop.f32.mrf.mxu0 }
 0x10e   : > { %v848_v31 = vadd.f32 %v847_v30, %v799_v27  ;;  %v801_v33 = vpop.f32.mrf.mxu1 }
 0x10f   : > { %v802_v35 = vadd.f32 %v801_v33, %v752_v32  ;;  %v379_v32 = vld [vmem:[#allocation2 + $0x78] sm:$0xff] }
 0x110   : > { %v883_v34 = vadd.f32 %v848_v31, %v368_v29 }
 0x112   : > { %899 = vst [vmem:[#allocation2 + $0x18] sm:$0xff] %v883_v34  ;;  %v375_v34 = vld [vmem:[#allocation2 + $0x10] sm:$0xff] }
 0x113   : > { %v821_v36 = vpop.f32.mrf.mxu3 }
 0x114   : > { %v822_v5 = vadd.f32 %v821_v36, %v1812_v4 }
 0x115   : > { %v850_v39 = vpop.f32.mrf.mxu2  ;;  %v754_v40 = vpop.f32.mrf.mxu0 }
 0x116   : > { %v851_v38 = vadd.f32 %v850_v39, %v802_v35  ;;  %v803_v41 = vpop.f32.mrf.mxu1 }
 0x117   : > { %v804_v43 = vadd.f32 %v803_v41, %v754_v40 }
 0x118   : > { %v884_v42 = vadd.f32 %v851_v38, %v369_v37 }
 0x11a   : > { %900 = vst [vmem:[#allocation2 + $0x50] sm:$0xff] %v884_v42 }
 0x11b   : > { %v823_v44 = vpop.f32.mrf.mxu3 }
 0x11c   : > { %v824_v17 = vadd.f32 %v823_v44, %v1814_v12 }
 0x11d   : > { %v852_v46 = vpop.f32.mrf.mxu2  ;;  %v757_v48 = vpop.f32.mrf.mxu0 }
 0x11e   : > { %v853_v47 = vadd.f32 %v852_v46, %v804_v43  ;;  %v806_v49 = vpop.f32.mrf.mxu1  ;;  %v380_v43 = vld [vmem:[#allocation2 + $0x28] sm:$0xff] }
 0x11f   : > { %v807_v51 = vadd.f32 %v806_v49, %v757_v48 }
 0x120   : > { %v885_v50 = vadd.f32 %v853_v47, %v370_v45  ;;  %v376_v45 = vld [vmem:[#allocation2 + $0x38] sm:$0xff] }
 0x122   : > { %901 = vst [vmem:[#allocation2 + $0x68] sm:$0xff] %v885_v50 }
 0x123   : > { %v826_v52 = vpop.f32.mrf.mxu3 }
 0x124   : > { %v827_v31 = vadd.f32 %v826_v52, %v1816_v20 }
 0x125   : > { %v855_v54 = vpop.f32.mrf.mxu2  ;;  %v759_v57 = vpop.f32.mrf.mxu0 }
 0x126   : > { %v856_v55 = vadd.f32 %v855_v54, %v807_v51  ;;  %v808_v56 = vpop.f32.mrf.mxu1 }
 0x127   : > { %v809_v59 = vadd.f32 %v808_v56, %v759_v57 }
 0x128   : > { %v886_v58 = vadd.f32 %v856_v55, %v371_v53 }
 0x12a   : > { %902 = vst [vmem:[#allocation2 + $0x8] sm:$0xff] %v886_v58 }
 0x12b   : > { %v828_v60 = vpop.f32.mrf.mxu3 }
 0x12c   : > { %v829_v41 = vadd.f32 %v828_v60, %v1818_v28 }
 0x12d   : > { %v857_v62 = vpop.f32.mrf.mxu2  ;;  %v762_v0 = vpop.f32.mrf.mxu0 }
 0x12e   : > { %v858_v63 = vadd.f32 %v857_v62, %v809_v59  ;;  %v811_v1 = vpop.f32.mrf.mxu1 }
 0x12f   : > { %v812_v3 = vadd.f32 %v811_v1, %v762_v0 }
 0x130   : > { %v887_v2 = vadd.f32 %v858_v63, %v372_v61 }
 0x132   : > { %903 = vst [vmem:[#allocation2 + $0x48] sm:$0xff] %v887_v2 }
 0x133   : > { %v870_v7 = vpop.f32.mrf.mxu3 }
 0x134   : > { %v871_v10 = vadd.f32 %v870_v7, %v822_v5 }
 0x135   : > { %v860_v9 = vpop.f32.mrf.mxu2  ;;  %v764_v13 = vpop.f32.mrf.mxu0 }
 0x136   : > { %v861_v11 = vadd.f32 %v860_v9, %v812_v3  ;;  %v892_v14 = vadd.f32 %v871_v10, %v377_v6  ;;  %v813_v15 = vpop.f32.mrf.mxu1 }
 0x137   : > { %v814_v18 = vadd.f32 %v813_v15, %v764_v13 }
 0x138   : > { %v888_v16 = vadd.f32 %v861_v11, %v373_v8  ;;  %908 = vst [vmem:[#allocation2 + $0x60] sm:$0xff] %v892_v14 }
 0x13a   : > { %904 = vst [vmem:[#allocation2 + $0x40] sm:$0xff] %v888_v16 }
 0x13b   : > { %v872_v21 = vpop.f32.mrf.mxu3 }
 0x13c   : > { %v873_v4 = vadd.f32 %v872_v21, %v824_v17 }
 0x13d   : > { %v862_v23 = vpop.f32.mrf.mxu2  ;;  %v767_v26 = vpop.f32.mrf.mxu0 }
 0x13e   : > { %v863_v24 = vadd.f32 %v862_v23, %v814_v18  ;;  %v893_v25 = vadd.f32 %v873_v4, %v378_v19  ;;  %v816_v27 = vpop.f32.mrf.mxu1 }
 0x13f   : > { %v817_v30 = vadd.f32 %v816_v27, %v767_v26 }
 0x140   : > { %v889_v29 = vadd.f32 %v863_v24, %v374_v22  ;;  %909 = vst [vmem:[#allocation2 + $0x70] sm:$0xff] %v893_v25 }
 0x142   : > { %905 = vst [vmem:[#allocation2 + $0x20] sm:$0xff] %v889_v29 }
 0x143   : > { %v875_v33 = vpop.f32.mrf.mxu3 }
 0x144   : > { %v876_v35 = vadd.f32 %v875_v33, %v827_v31 }
 0x145   : > { %v865_v12 = vpop.f32.mrf.mxu2  ;;  %v769_v38 = vpop.f32.mrf.mxu0 }
 0x146   : > { %v866_v36 = vadd.f32 %v865_v12, %v817_v30  ;;  %v894_v37 = vadd.f32 %v876_v35, %v379_v32  ;;  %v818_v40 = vpop.f32.mrf.mxu1 }
 0x147   : > { %v819_v42 = vadd.f32 %v818_v40, %v769_v38 }
 0x148   : > { %v890_v39 = vadd.f32 %v866_v36, %v375_v34  ;;  %910 = vst [vmem:[#allocation2 + $0x78] sm:$0xff] %v894_v37 }
 0x14a   : > { %906 = vst [vmem:[#allocation2 + $0x10] sm:$0xff] %v890_v39 }
 0x14b   : > { %v877_v44 = vpop.f32.mrf.mxu3 }
 0x14c   : > { %v878_v20 = vadd.f32 %v877_v44, %v829_v41 }
 0x14d   : > { %v867_v46 = vpop.f32.mrf.mxu2 }
 0x14e   : > { %v868_v47 = vadd.f32 %v867_v46, %v819_v42  ;;  %v895_v48 = vadd.f32 %v878_v20, %v380_v43  ;;  %915 = sbr.rel (%p1347_p11) target bundleno = 355 (0x163), region = 66 }
 0x150   : > { %v891_v49 = vadd.f32 %v868_v47, %v376_v45  ;;  %911 = vst [vmem:[#allocation2 + $0x28] sm:$0xff] %v895_v48 }
 0x152   : > { %907 = vst [vmem:[#allocation2 + $0x38] sm:$0xff] %v891_v49 }
 0x153   : > { %v916_v50 = vld [vmem:[#allocation2 + $0x30] sm:$0xff]  ;;  %v917_v51 = vld [vmem:[#allocation2] sm:$0xff]  ;;  %v918_v52 = vld [vmem:[#allocation2 + $0x58] sm:$0xff] }
 0x154   : > { %v1515_v28 = vld [vmem:[%s1869_s2] ss:$0 sm:$0xff]  ;;  %v919_v53 = vld [vmem:[#allocation2 + $0x18] sm:$0xff]  ;;  %v920_v54 = vld [vmem:[#allocation2 + $0x50] sm:$0xff] }
 0x155   : > { %v921_v55 = vld [vmem:[#allocation2 + $0x68] sm:$0xff]  ;;  %v936_v56 = vadd.f32 %v1515_v28, %v916_v50  ;;  %v937_v58 = vadd.f32 %v1515_v28, %v917_v51  ;;  %v938_v59 = vadd.f32 %v1515_v28, %v918_v52  ;;  %v939_v60 = vadd.f32 %v1515_v28, %v919_v53  ;;  %v924_v2 = vld [vmem:[#allocation2 + $0x40] sm:$0xff]  ;;  %v926_v9 = vld [vmem:[#allocation2 + $0x10] sm:$0xff] }
 0x156   : > { %v922_v57 = vld [vmem:[#allocation2 + $0x8] sm:$0xff]  ;;  %v940_v62 = vadd.f32 %v1515_v28, %v920_v54  ;;  %v941_v63 = vadd.f32 %v1515_v28, %v921_v55  ;;  %v925_v3 = vld [vmem:[#allocation2 + $0x20] sm:$0xff]  ;;  %v929_v17 = vld [vmem:[#allocation2 + $0x70] sm:$0xff]  ;;  %v944_v21 = vadd.f32 %v1515_v28, %v924_v2  ;;  %v946_v26 = vadd.f32 %v1515_v28, %v926_v9 }
 0x157   : > { %v923_v61 = vld [vmem:[#allocation2 + $0x48] sm:$0xff]  ;;  %v942_v0 = vadd.f32 %v1515_v28, %v922_v57  ;;  %v952_v5 = vmax.f32 %v936_v56, 0.0  ;;  %v953_v6 = vmax.f32 %v937_v58, 0.0  ;;  %v954_v7 = vmax.f32 %v938_v59, 0.0  ;;  %v928_v16 = vld [vmem:[#allocation2 + $0x60] sm:$0xff]  ;;  %v930_v23 = vld [vmem:[#allocation2 + $0x78] sm:$0xff] }
 0x158   : > { %v943_v1 = vadd.f32 %v1515_v28, %v923_v61  ;;  %v955_v8 = vmax.f32 %v939_v60, 0.0  ;;  %v956_v11 = vmax.f32 %v940_v62, 0.0  ;;  %v957_v13 = vmax.f32 %v941_v63, 0.0  ;;  %v931_v4 = vld [vmem:[#allocation2 + $0x28] sm:$0xff] }
 0x159   : > { %v927_v10 = vld [vmem:[#allocation2 + $0x38] sm:$0xff]  ;;  %v958_v14 = vmax.f32 %v942_v0, 0.0  ;;  %v1404_v18 = vpack.c.bf16 %v953_v6, %v952_v5  ;;  %v945_v22 = vadd.f32 %v1515_v28, %v925_v3  ;;  %v960_v29 = vmax.f32 %v944_v21, 0.0 }
 0x15a   : > { %v959_v15 = vmax.f32 %v943_v1, 0.0  ;;  %v1409_v19 = vpack.c.bf16 %v955_v8, %v954_v7  ;;  %v1414_v24 = vpack.c.bf16 %v957_v13, %v956_v11  ;;  %v947_v27 = vadd.f32 %v1515_v28, %v927_v10 }
 0x15b   : > { %1405 = vst [vmem:[%s1870_s3] sm:$0xff] %v1404_v18   ;;  %v961_v30 = vmax.f32 %v945_v22, 0.0  ;;  %v948_v31 = vadd.f32 %v1515_v28, %v928_v16  ;;  %v949_v32 = vadd.f32 %v1515_v28, %v929_v17  ;;  %v962_v33 = vmax.f32 %v946_v26, 0.0 }
 0x15c   : > { %v1419_v25 = vpack.c.bf16 %v959_v15, %v958_v14  ;;  %1441 = vst [vmem:[%s1870_s3 + $0x8] sm:$0xff] %v1409_v19   ;;  %v963_v34 = vmax.f32 %v947_v27, 0.0  ;;  %v950_v12 = vadd.f32 %v1515_v28, %v930_v23  ;;  %v951_v35 = vadd.f32 %v1515_v28, %v931_v4 }
 0x15d   : > { %1442 = vst [vmem:[%s1870_s3 + $0x10] sm:$0xff] %v1414_v24   ;;  %v1424_v36 = vpack.c.bf16 %v961_v30, %v960_v29  ;;  %v964_v37 = vmax.f32 %v948_v31, 0.0  ;;  %v965_v39 = vmax.f32 %v949_v32, 0.0 }
 0x15e   : > { %1443 = vst [vmem:[%s1870_s3 + $0x18] sm:$0xff] %v1419_v25   ;;  %v1429_v38 = vpack.c.bf16 %v963_v34, %v962_v33  ;;  %v966_v40 = vmax.f32 %v950_v12, 0.0  ;;  %v967_v41 = vmax.f32 %v951_v35, 0.0 }
 0x15f   : > { %1444 = vst [vmem:[%s1870_s3 + $0x20] sm:$0xff] %v1424_v36   ;;  %v1434_v42 = vpack.c.bf16 %v965_v39, %v964_v37 }
 0x160   : > { %1445 = vst [vmem:[%s1870_s3 + $0x28] sm:$0xff] %v1429_v38   ;;  %v1439_v43 = vpack.c.bf16 %v967_v41, %v966_v40 }
 0x161   : > { %1446 = vst [vmem:[%s1870_s3 + $0x30] sm:$0xff] %v1434_v42  }
 0x162   : > { %1447 = vst [vmem:[%s1870_s3 + $0x38] sm:$0xff] %v1439_v43  }
 0x163 PF: > { %s13_s16 = sadd.s32 1, %s1554_s16   ;;  %s1871_s12 = smov %s1542_s13 }
 0x164   : > { %p10_p12 = scmp.ge.s32.totalorder %s13_s16, 5   ;;  %s1872_s13 = smov %s1612_s20 }
 0x165   : > { %s1873_s14 = smov %s1550_s15  ;;  %s1874_s15 = smov %s1876_s17 }
 0x166   :  { %12 = sbr.rel (!%p10_p12) target bundleno = 3 (0x3), region = 113 }

// kernel: _lambda_.8
= control target key start
LH: loop header
LB: loop body
LE: loop exit
PB: predicated region body
PF: predicated region fallthrough
CT: control target
= control target key end

     0   :  { %s1045_s12 = smov 0   ;;  %s1047_s13 = smov 0   ;;  %s1161_s0 = inlined_call_operand.vmem [shape: bf16[32,1152], index: 0, kind: input, shape index: {}]   ;;  %s1162_s1 = inlined_call_operand.vmem [shape: bf16[1152,128], index: 1, kind: input, shape index: {}]   ;;  %s1163_s2 = inlined_call_operand.vmem [shape: f32[1,128], index: 2, kind: input, shape index: {}]   ;;  %s1164_s3 = inlined_call_operand.vmem [shape: bf16[32,128], index: 3, kind: output, shape index: {}]  }
   0x1   :  { %s1049_s14 = smov 0   ;;  %s1051_s15 = smov 0  }
   0x2   :  { %s1053_s16 = smov 0  }
   0x3 LB: > { %s25_s17 = sadd.s32 1, %s1018_s15  ;;  %p48_p1 = scmp.ne.s32.totalorder %s1010_s13, %s1006_s12  ;;  %s1022_s16 = sphi %s1053_s16, %s13_s16   ;;  %s1018_s15 = sphi %s1051_s15, %s1168_s15   ;;  %s1014_s14 = sphi %s1049_s14, %s1167_s14   ;;  %s1010_s13 = sphi %s1047_s13, %s1166_s13   ;;  %s1006_s12 = sphi %s1045_s12, %s1165_s12  }
   0x4   : > { %p26_p0 = scmp.ge.s32.totalorder %s25_s17, 3  ;;  %p49_p2 = scmp.eq.s32.totalorder %s1022_s16, 0 }
   0x5   : > { %s41_s19 = sadd.s32 1, %s1010_s13  ;;  %p752_p5 = scmp.ge.s32.totalorder %s1022_s16, 3 }
   0x6   : > { %s1170_s17 = smov (%p26_p0, %s25_s17), 0  ;;  %p50_p3 = por %p49_p2, %p48_p1 }
   0x7   : > { %s37_s18 = ssub.s32 %s1018_s15, %s1170_s17  ;;  %162 = sbr.rel (%p752_p5) target bundleno = 25 (0x19), region = 20 }
   0x8   : > { %p39_p4 = scmp.eq.s32.totalorder %s37_s18, 0 }
   0xa   : > { %s1080_s20 = scalar_select %p39_p4, %s1010_s13, %s41_s19  }
   0xc   : > { %165 = sbr.rel (!%p50_p3) target bundleno = 25 (0x19), region = 24  ;;  %s167_s21 = sand.u32 (%p50_p3), 1, %s1010_s13  }
   0xd   : > { %s890_s22 = smul.u32 (%p50_p3), 12, %s1018_s15 }
   0xe   : > { %s940_s23 = smul.u32 (%p50_p3), 48, %s167_s21 }
   0xf   : > { %s175_s26 = scalar_lea.vmem (%p50_p3), %s1161_s0, %s890_s22 }
  0x10   : > { %v190_v0 = vld [vmem:[%s175_s26] sm:$0xff] (%p50_p3)  ;;  %v194_v2 = vld [vmem:[%s175_s26 + $0x48] sm:$0xff] (%p50_p3)  ;;  %s169_s27 = scalar_lea.vmem (%p50_p3), [#allocation3], %s940_s23  ;;  %v758_v6 = vld [vmem:[%s175_s26 + $0x50] sm:$0xf] (%p50_p3) }
  0x11   : > { %v192_v1 = vld [vmem:[%s175_s26 + $0x24] sm:$0xff]  ;;  %191 = vst [vmem:[%s169_s27] sm:$0xff] %v190_v0  ;;  %v196_v3 = vld [vmem:[%s175_s26 + $0x6c] sm:$0xff]  ;;  %v760_v7 = vld [vmem:[%s175_s26 + $0x74] sm:$0xf] }
  0x12   : > { %193 = vst [vmem:[%s169_s27 + $0xc] sm:$0xff] %v192_v1  ;;  %v754_v4 = vld [vmem:[%s175_s26 + $0x8] sm:$0xf]  ;;  %v756_v5 = vld [vmem:[%s175_s26 + $0x2c] sm:$0xf] }
  0x13   : > { %195 = vst [vmem:[%s169_s27 + $0x18] sm:$0xff] %v194_v2 }
  0x14   : > { %197 = vst [vmem:[%s169_s27 + $0x24] sm:$0xff] %v196_v3 }
  0x15   : > { %755 = vst [vmem:[%s169_s27 + $0x8] sm:$0xf] %v754_v4 }
  0x16   : > { %757 = vst [vmem:[%s169_s27 + $0x14] sm:$0xf] %v756_v5 }
  0x17   : > { %759 = vst [vmem:[%s169_s27 + $0x20] sm:$0xf] %v758_v6 }
  0x18   : > { %761 = vst [vmem:[%s169_s27 + $0x2c] sm:$0xf] %v760_v7 }
  0x19 PF: > { %p762_p6 = scmp.ge.s32.totalorder %s1022_s16, 1  ;;  %p230_p7 = scmp.lt.s32.totalorder %s1022_s16, 4 }
  0x1b   : > { %p231_p8 = pnand %p762_p6, %p230_p7 }
  0x1c   : > { %s237_s28 = sand.u32 (!%p231_p8), 1, %s1006_s12   ;;  %s276_s29 = smul.u32 (!%p231_p8), 48, %s1014_s14 }
  0x1d   : > { %234 = sbr.rel (%p231_p8) target bundleno = 253 (0xfd), region = 54  ;;  %p764_p10 = scmp.ne.s32.totalorder (!%p231_p8), %s1014_s14, 0 }
  0x1e   : > { %s941_s30 = smul.u32 (!%p231_p8), 48, %s237_s28  ;;  %p277_p9 = scmp.lt.s32.totalorder (!%p231_p8), %s276_s29, 143 }
  0x20   : > { %s1097_s8 = scalar_lea.vmem (!%p231_p8), [#allocation3], %s941_s30 }
  0x22   : > { %s1172_s29 = smov (!%p277_p9, %s276_s29), 143  ;;  %300 = sbr.rel (%p764_p10) target bundleno = 44 (0x2c), region = 62 }
  0x23   : > { %s763_s4 = sshll.u32 %s1172_s29, 2 }
  0x24   : > { %s1095_s7 = scalar_lea.vmem %s1162_s1, %s763_s4 }
  0x27   : > { %v1024_v8 = vmov 0.0  }
  0x28   : > { %301 = vst [vmem:[#allocation2 + $0x10] sm:$0xff] %v1024_v8 }
  0x29   : > { %302 = vst [vmem:[#allocation2] sm:$0xff] %v1024_v8 }
  0x2a   : > { %303 = vst [vmem:[#allocation2 + $0x18] sm:$0xff] %v1024_v8 }
  0x2b   : > { %304 = vst [vmem:[#allocation2 + $0x8] sm:$0xff] %v1024_v8 }
  0x2c PF: > { %v904_v9 = vld [vmem:[%s1095_s7 + $0x38] sm:$0xff]  ;;  %v903_v12 = vld [vmem:[%s1095_s7 + $0x30] sm:$0xff]  ;;  %v902_v15 = vld [vmem:[%s1095_s7 + $0x28] sm:$0xff]  ;;  %p885_p11 = scmp.ne.s32.totalorder %s1014_s14, 2 }
  0x2d   : > { %v912_v10 = vld [vmem:[%s1095_s7 + $0x78] sm:$0xff]  ;;  %541 = vmatpush.bf16.msra.mxu0 %v904_v9  ;;  %v911_v13 = vld [vmem:[%s1095_s7 + $0x70] sm:$0xff]  ;;  %932 = vmatpush.bf16.msra.mxu3 %v904_v9  ;;  %v910_v16 = vld [vmem:[%s1095_s7 + $0x68] sm:$0xff] }
  0x2e   : > { %v920_v11 = vld [vmem:[%s1095_s7 + $0xb8] sm:$0xff]  ;;  %560 = vmatpush.bf16.msra.mxu1 %v912_v10  ;;  %v919_v14 = vld [vmem:[%s1095_s7 + $0xb0] sm:$0xff]  ;;  %v918_v17 = vld [vmem:[%s1095_s7 + $0xa8] sm:$0xff] }
  0x2f   : > { %579 = vmatpush.bf16.msra.mxu2 %v920_v11  ;;  %v901_v18 = vld [vmem:[%s1095_s7 + $0x20] sm:$0xff]  ;;  %v900_v21 = vld [vmem:[%s1095_s7 + $0x18] sm:$0xff]  ;;  %v899_v24 = vld [vmem:[%s1095_s7 + $0x10] sm:$0xff] }
  0x30   : > { %v909_v19 = vld [vmem:[%s1095_s7 + $0x60] sm:$0xff]  ;;  %v908_v22 = vld [vmem:[%s1095_s7 + $0x58] sm:$0xff]  ;;  %v907_v25 = vld [vmem:[%s1095_s7 + $0x50] sm:$0xff] }
  0x31   : > { %542 = vmatpush.bf16.msra.mxu0 %v903_v12  ;;  %933 = vmatpush.bf16.msra.mxu3 %v903_v12  ;;  %v917_v20 = vld [vmem:[%s1095_s7 + $0xa0] sm:$0xff]  ;;  %v916_v23 = vld [vmem:[%s1095_s7 + $0x98] sm:$0xff]  ;;  %v915_v26 = vld [vmem:[%s1095_s7 + $0x90] sm:$0xff] }
  0x32   : > { %561 = vmatpush.bf16.msra.mxu1 %v911_v13  ;;  %v898_v27 = vld [vmem:[%s1095_s7 + $0x8] sm:$0xff]  ;;  %v897_v30 = vld [vmem:[%s1095_s7] sm:$0xff]  ;;  %v305_v54 = vld [vmem:[#allocation2 + $0x10] sm:$0xff] }
  0x33   : > { %580 = vmatpush.bf16.msra.mxu2 %v919_v14  ;;  %v906_v28 = vld [vmem:[%s1095_s7 + $0x48] sm:$0xff]  ;;  %v905_v31 = vld [vmem:[%s1095_s7 + $0x40] sm:$0xff]  ;;  %v307_v4 = vld [vmem:[#allocation2 + $0x18] sm:$0xff] }
  0x34   : > { %v914_v29 = vld [vmem:[%s1095_s7 + $0x88] sm:$0xff]  ;;  %v913_v32 = vld [vmem:[%s1095_s7 + $0x80] sm:$0xff] }
  0x35   : > { %543 = vmatpush.bf16.msra.mxu0 %v902_v15  ;;  %934 = vmatpush.bf16.msra.mxu3 %v902_v15  ;;  %v767_v33 = vld [vmem:[%s1097_s8] sm:$0xf]  ;;  %v892_v34 = vld [vmem:[%s1097_s8 + $0x8] sm:$0xf0]  ;;  %v891_v35 = vld [vmem:[%s1097_s8 + $0x4] sm:$0xf] }
  0x36   : > { %562 = vmatpush.bf16.msra.mxu1 %v910_v16  ;;  %v769_v36 = vld [vmem:[%s1097_s8 + $0xc] sm:$0xf0]  ;;  %v775_v37 = vld [vmem:[%s1097_s8 + $0x8] sm:$0xf]  ;;  %v893_v38 = vld [vmem:[%s1097_s8 + $0x10] sm:$0xf0]  ;;  %v768_v41 = vor.u32 %v892_v34, %v767_v33 }
  0x37   : > { %581 = vmatpush.bf16.msra.mxu2 %v918_v17  ;;  %v779_v39 = vld [vmem:[%s1097_s8 + $0x18] sm:$0xf]  ;;  %v895_v40 = vld [vmem:[%s1097_s8 + $0x20] sm:$0xf0]  ;;  %v772_v42 = vor.u32 %v891_v35, %v769_v36  ;;  %v776_v43 = vor.u32 %v893_v38, %v775_v37  ;;  %v894_v45 = vld [vmem:[%s1097_s8 + $0x1c] sm:$0xf] }
  0x38   : > { %v780_v44 = vor.u32 %v895_v40, %v779_v39  ;;  %v781_v46 = vld [vmem:[%s1097_s8 + $0x24] sm:$0xf0]  ;;  %v787_v47 = vld [vmem:[%s1097_s8 + $0x20] sm:$0xf]  ;;  %v896_v48 = vld [vmem:[%s1097_s8 + $0x28] sm:$0xf0] }
  0x39   : > { %544 = vmatpush.bf16.msra.mxu0 %v901_v18  ;;  %935 = vmatpush.bf16.msra.mxu3 %v901_v18  ;;  %v784_v49 = vor.u32 %v894_v45, %v781_v46  ;;  %v788_v50 = vor.u32 %v896_v48, %v787_v47  ;;  %v306_v61 = vld [vmem:[#allocation2] sm:$0xff]  ;;  %v308_v11 = vld [vmem:[#allocation2 + $0x8] sm:$0xff] }
  0x3a   : > { %563 = vmatpush.bf16.msra.mxu1 %v909_v19 }
  0x3b   : > { %582 = vmatpush.bf16.msra.mxu2 %v917_v20 }
  0x3d   : > { %545 = vmatpush.bf16.msra.mxu0 %v900_v21  ;;  %936 = vmatpush.bf16.msra.mxu3 %v900_v21 }
  0x3e   : > { %564 = vmatpush.bf16.msra.mxu1 %v908_v22 }
  0x3f   : > { %583 = vmatpush.bf16.msra.mxu2 %v916_v23 }
  0x41   : > { %546 = vmatpush.bf16.msra.mxu0 %v899_v24  ;;  %937 = vmatpush.bf16.msra.mxu3 %v899_v24 }
  0x42   : > { %565 = vmatpush.bf16.msra.mxu1 %v907_v25 }
  0x43   : > { %584 = vmatpush.bf16.msra.mxu2 %v915_v26 }
  0x45   : > { %547 = vmatpush.bf16.msra.mxu0 %v898_v27  ;;  %938 = vmatpush.bf16.msra.mxu3 %v898_v27 }
  0x46   : > { %566 = vmatpush.bf16.msra.mxu1 %v906_v28 }
  0x47   : > { %585 = vmatpush.bf16.msra.mxu2 %v914_v29 }
  0x49   : > { %548 = vmatpush.bf16.msra.mxu0 %v897_v30  ;;  %939 = vmatpush.bf16.msra.mxu3 %v897_v30 }
  0x4a   : > { %567 = vmatpush.bf16.msra.mxu1 %v905_v31 }
  0x4b   : > { %586 = vmatpush.bf16.msra.mxu2 %v913_v32 }
  0x4c   : > { %549 = vmatmul.bf16.vlgmr.msra.gmra.mxu0 %v768_v41  ;;  %554 = vmatmul.bf16.vlgmr.msra.gmra.mxu3 %v780_v44 }
  0x4d   : > { %568 = vmatmul.bf16.vlgmr.msra.gmra.mxu1 %v772_v42 }
  0x4e   : > { %587 = vmatmul.bf16.vlgmr.msra.gmra.mxu2 %v776_v43 }
  0x5d   : > { %573 = vmatmul.bf16.gmra.mxu1 %v784_v49 }
  0x5e   : > { %592 = vmatmul.bf16.gmra.mxu2 %v788_v50 }
  0xc9   : > { %v550_v52 = vpop.f32.mrf.mxu0 }
  0xca   : > { %v569_v51 = vpop.f32.mrf.mxu1 }
  0xcb   : > { %v570_v53 = vadd.f32 %v569_v51, %v550_v52 }
  0xcf   : > { %v555_v2 = vpop.f32.mrf.mxu3 }
  0xd1   : > { %v588_v55 = vpop.f32.mrf.mxu2  ;;  %v552_v59 = vpop.f32.mrf.mxu0 }
  0xd2   : > { %v589_v56 = vadd.f32 %v588_v55, %v570_v53  ;;  %v571_v57 = vpop.f32.mrf.mxu1 }
  0xd3   : > { %v572_v60 = vadd.f32 %v571_v57, %v552_v59 }
  0xd4   : > { %v598_v58 = vadd.f32 %v589_v56, %v305_v54 }
  0xd6   : > { %602 = vst [vmem:[#allocation2 + $0x10] sm:$0xff] %v598_v58 }
  0xd7   : > { %v557_v9 = vpop.f32.mrf.mxu3 }
  0xd9   : > { %v590_v62 = vpop.f32.mrf.mxu2 }
  0xda   : > { %v591_v63 = vadd.f32 %v590_v62, %v572_v60  ;;  %v574_v0 = vpop.f32.mrf.mxu1 }
  0xdb   : > { %v575_v3 = vadd.f32 %v574_v0, %v555_v2 }
  0xdc   : > { %v599_v1 = vadd.f32 %v591_v63, %v306_v61 }
  0xde   : > { %603 = vst [vmem:[#allocation2] sm:$0xff] %v599_v1 }
  0xe1   : > { %v593_v5 = vpop.f32.mrf.mxu2 }
  0xe2   : > { %v594_v6 = vadd.f32 %v593_v5, %v575_v3  ;;  %v576_v8 = vpop.f32.mrf.mxu1 }
  0xe3   : > { %v577_v10 = vadd.f32 %v576_v8, %v557_v9 }
  0xe4   : > { %v600_v7 = vadd.f32 %v594_v6, %v307_v4 }
  0xe6   : > { %604 = vst [vmem:[#allocation2 + $0x18] sm:$0xff] %v600_v7 }
  0xe9   : > { %v595_v12 = vpop.f32.mrf.mxu2 }
  0xea   : > { %v596_v13 = vadd.f32 %v595_v12, %v577_v10  ;;  %609 = sbr.rel (%p885_p11) target bundleno = 253 (0xfd), region = 66 }
  0xec   : > { %v601_v14 = vadd.f32 %v596_v13, %v308_v11 }
  0xee   : > { %605 = vst [vmem:[#allocation2 + $0x8] sm:$0xff] %v601_v14 }
  0xef   : > { %v610_v15 = vld [vmem:[#allocation2 + $0x10] sm:$0xff]  ;;  %v611_v16 = vld [vmem:[#allocation2] sm:$0xff]  ;;  %v612_v18 = vld [vmem:[#allocation2 + $0x18] sm:$0xff] }
  0xf0   : > { %v983_v17 = vld [vmem:[%s1163_s2] ss:$0 sm:$0xff] }
  0xf1   : > { %v618_v20 = vadd.f32 %v983_v17, %v610_v15  ;;  %v619_v21 = vadd.f32 %v983_v17, %v611_v16  ;;  %v620_v22 = vadd.f32 %v983_v17, %v612_v18 }
  0xf3   : > { %v622_v24 = vmax.f32 %v618_v20, 0.0  ;;  %v623_v25 = vmax.f32 %v619_v21, 0.0  ;;  %v624_v26 = vmax.f32 %v620_v22, 0.0 }
  0xf5   : > { %v613_v19 = vld [vmem:[#allocation2 + $0x8] sm:$0xff]  ;;  %v924_v28 = vpack.c.bf16 %v623_v25, %v622_v24 }
  0xf6   : > { %v621_v23 = vadd.f32 %v983_v17, %v613_v19 }
  0xf7   : > { %925 = vst [vmem:[%s1164_s3] sm:$0xff] %v924_v28  }
  0xf8   : > { %v625_v27 = vmax.f32 %v621_v23, 0.0 }
  0xfa   : > { %v929_v29 = vpack.c.bf16 %v625_v27, %v624_v26 }
  0xfc   : > { %931 = vst [vmem:[%s1164_s3 + $0x8] sm:$0xff] %v929_v29  }
  0xfd PF: > { %s13_s16 = sadd.s32 1, %s1022_s16   ;;  %s1165_s12 = smov %s1010_s13 }
  0xfe   : > { %p10_p12 = scmp.ge.s32.totalorder %s13_s16, 5   ;;  %s1166_s13 = smov %s1080_s20 }
  0xff   : > { %s1167_s14 = smov %s1018_s15  ;;  %s1168_s15 = smov %s1170_s17 }
 0x100   :  { %12 = sbr.rel (!%p10_p12) target bundleno = 3 (0x3), region = 113 }

// kernel: _lambda_.9
= control target key start
LH: loop header
LB: loop body
LE: loop exit
PB: predicated region body
PF: predicated region fallthrough
CT: control target
= control target key end

     0   :  { %s280_s1 = inlined_call_operand.vmem [shape: bf16[128,128], index: 1, kind: input, shape index: {}]   ;;  %s281_s2 = inlined_call_operand.vmem [shape: f32[1,128], index: 2, kind: input, shape index: {}]   ;;  %s282_s0 = inlined_call_operand.vmem [shape: bf16[32,128], index: 0, kind: input, shape index: {}]   ;;  %s283_s3 = inlined_call_operand.vmem [shape: f32[32,128], index: 3, kind: output, shape index: {}]  }
   0x1   :  { %v205_v0 = vld [vmem:[%s280_s1 + $0x38] sm:$0xff]  ;;  %v204_v1 = vld [vmem:[%s280_s1 + $0x30] sm:$0xff]  ;;  %v203_v2 = vld [vmem:[%s280_s1 + $0x28] sm:$0xff] }
   0x2   :  { %106 = vmatpush.bf16.msra.mxu0 %v205_v0  ;;  %206 = vmatpush.bf16.msra.mxu1 %v205_v0  ;;  %v202_v3 = vld [vmem:[%s280_s1 + $0x20] sm:$0xff]  ;;  %v201_v4 = vld [vmem:[%s280_s1 + $0x18] sm:$0xff]  ;;  %v200_v5 = vld [vmem:[%s280_s1 + $0x10] sm:$0xff] }
   0x3   :  { %v199_v6 = vld [vmem:[%s280_s1 + $0x8] sm:$0xff]  ;;  %v198_v7 = vld [vmem:[%s280_s1] sm:$0xff] }
   0x4   :  { %v196_v8 = vld [vmem:[%s282_s0] sm:$0xff]  ;;  %v197_v9 = vld [vmem:[%s282_s0 + $0x8] sm:$0xff] }
   0x5   :  { %v214_v10 = vld [vmem:[%s281_s2] ss:$0 sm:$0xff] }
   0x6   :  { %107 = vmatpush.bf16.msra.mxu0 %v204_v1  ;;  %207 = vmatpush.bf16.msra.mxu1 %v204_v1 }
   0xa   :  { %108 = vmatpush.bf16.msra.mxu0 %v203_v2  ;;  %208 = vmatpush.bf16.msra.mxu1 %v203_v2 }
   0xe   :  { %109 = vmatpush.bf16.msra.mxu0 %v202_v3  ;;  %209 = vmatpush.bf16.msra.mxu1 %v202_v3 }
  0x12   :  { %110 = vmatpush.bf16.msra.mxu0 %v201_v4  ;;  %210 = vmatpush.bf16.msra.mxu1 %v201_v4 }
  0x16   :  { %111 = vmatpush.bf16.msra.mxu0 %v200_v5  ;;  %211 = vmatpush.bf16.msra.mxu1 %v200_v5 }
  0x1a   :  { %112 = vmatpush.bf16.msra.mxu0 %v199_v6  ;;  %212 = vmatpush.bf16.msra.mxu1 %v199_v6 }
  0x1e   :  { %113 = vmatpush.bf16.msra.mxu0 %v198_v7  ;;  %213 = vmatpush.bf16.msra.mxu1 %v198_v7 }
  0x21   :  { %114 = vmatmul.bf16.vlgmr.msra.gmra.mxu0 %v196_v8  ;;  %119 = vmatmul.bf16.vlgmr.msra.gmra.mxu1 %v197_v9 }
  0x9e   :  { %v115_v11 = vpop.f32.mrf.mxu0  ;;  %v120_v12 = vpop.f32.mrf.mxu1 }
  0x9f   :  { %v144_v13 = vadd.f32 %v214_v10, %v115_v11  ;;  %v146_v14 = vadd.f32 %v214_v10, %v120_v12 }
  0xa1   :  { %148 = vst [vmem:[%s283_s3] sm:$0xff] %v144_v13 }
  0xa2   :  { %150 = vst [vmem:[%s283_s3 + $0x10] sm:$0xff] %v146_v14 }
  0xa6   :  { %v117_v15 = vpop.f32.mrf.mxu0  ;;  %v122_v16 = vpop.f32.mrf.mxu1 }
  0xa7   :  { %v145_v17 = vadd.f32 %v214_v10, %v117_v15  ;;  %v147_v18 = vadd.f32 %v214_v10, %v122_v16 }
  0xa9   :  { %149 = vst [vmem:[%s283_s3 + $0x8] sm:$0xff] %v145_v17 }
  0xaa   :  { %151 = vst [vmem:[%s283_s3 + $0x18] sm:$0xff] %v147_v18 }

// kernel: _lambda_.10
= control target key start
LH: loop header
LB: loop body
LE: loop exit
PB: predicated region body
PF: predicated region fallthrough
CT: control target
= control target key end

     0   :  { %s559_s9 = smov 0   ;;  %s561_s10 = smov 0   ;;  %s642_s0 = inlined_call_operand.vmem [shape: f32[32,4], index: 0, kind: input, shape index: {}]   ;;  %s643_s1 = inlined_call_operand.vmem [shape: f32[2,4,512], index: 1, kind: input, shape index: {}]   ;;  %s644_s2 = inlined_call_operand.vmem [shape: f32[2,32,512], index: 2, kind: output, shape index: {}]  }
   0x1   :  { %s563_s11 = smov 0  }
   0x2 LB: > { %s24_s12 = sadd.s32 1, %s538_s10  ;;  %p467_p0 = scmp.ge.s32.totalorder %s542_s11, 1  ;;  %s542_s11 = sphi %s563_s11, %s12_s11   ;;  %s538_s10 = sphi %s561_s10, %s646_s10   ;;  %s534_s9 = sphi %s559_s9, %s645_s9  }
   0x3   : > { %p26_p1 = scmp.ge.s32.totalorder %s24_s12, 2  ;;  %p137_p2 = scmp.lt.s32.totalorder %s542_s11, 3 }
   0x5   : > { %s648_s12 = smov (%p26_p1, %s24_s12), 0  ;;  %p138_p3 = pnand %p467_p0, %p137_p2 }
   0x6   : > { %p175_p4 = scmp.lt.s32.totalorder (!%p138_p3), %s534_s9, 1 }
   0x7   : > { %141 = sbr.rel (%p138_p3) target bundleno = 183 (0xb7), region = 28 }
   0xc   : > { %s650_s9 = smov (!%p175_p4, %s534_s9), 1  ;;  %vm219_vm0 = vcmask 1043456   ;;  %v191_v2 = vld [vmem:[%s642_s0] sm:$0xff]  ;;  %vm206_vm1 = vcmask 31744   ;;  %v192_v7 = vld [vmem:[%s642_s0 + $0x8] sm:$0xff]  ;;  %v193_v8 = vld [vmem:[%s642_s0 + $0x10] sm:$0xff] }
   0xd   : > { %s494_s13 = sshll.u32 %s650_s9, 4  ;;  %v194_v9 = vld [vmem:[%s642_s0 + $0x18] sm:$0xff]  ;;  %s495_s25 = sshll.u32 %s650_s9, 7 }
   0xe   : > { %s179_s16 = scalar_lea.vmem %s643_s1, %s494_s13  ;;  %s615_s28 = scalar_lea.vmem %s644_s2, %s495_s25 }
   0xf   : > { %v196_v0 = vld [vmem:[%s179_s16 + $0x8] sm:$0xff]  ;;  %v195_v1 = vld [vmem:[%s179_s16] sm:$0xff] }
  0x10   : > { %201 = vst [vmem:[#allocation1 + $0x10] ss:$2 sm:$0xff] %v196_v0 }
  0x11   : > { %199 = vst [vmem:[#allocation1] ss:$2 sm:$0xff] %v195_v1 }
  0x17   : > { %v204_v3 = vld.sshfl [vmem:[#allocation1 + $0x10] sm:$0xff pattern:$0x75316420]  ;;  %v205_v4 = vld.sshfl [vmem:[#allocation1 + $0x18] sm:$0xff pattern:$0x75316420] }
  0x18   : > { %482 = vmatpush.msk.msra.mxu2 %vm219_vm0, %v204_v3  ;;  %487 = vmatpush.msk.msra.mxu3 %vm219_vm0, %v205_v4  ;;  %v202_v5 = vld.sshfl [vmem:[#allocation1] sm:$0xff pattern:$0x75316420]  ;;  %v203_v6 = vld.sshfl [vmem:[#allocation1 + $0x8] sm:$0xff pattern:$0x75316420] }
  0x19   : > { %483 = vmatmul.msk.f32.vlgmr.msra.gmra.mxu2 %vm206_vm1, %v191_v2  ;;  %488 = vmatmul.msk.f32.vlgmr.msra.gmra.mxu3 %vm206_vm1, %v191_v2 }
  0x1a   : > { %472 = vmatpush.msk.msra.mxu0 %vm219_vm0, %v202_v5  ;;  %477 = vmatpush.msk.msra.mxu1 %vm219_vm0, %v203_v6 }
  0x1b   : > { %473 = vmatmul.msk.f32.vlgmr.msra.gmra.mxu0 %vm206_vm1, %v191_v2  ;;  %478 = vmatmul.msk.f32.vlgmr.msra.gmra.mxu1 %vm206_vm1, %v191_v2 }
  0x21   : > { %484 = vmatmul.msk.f32.gmra.mxu2 %vm206_vm1, %v192_v7  ;;  %489 = vmatmul.msk.f32.gmra.mxu3 %vm206_vm1, %v192_v7 }
  0x23   : > { %474 = vmatmul.msk.f32.gmra.mxu0 %vm206_vm1, %v192_v7  ;;  %479 = vmatmul.msk.f32.gmra.mxu1 %vm206_vm1, %v192_v7 }
  0x29   : > { %485 = vmatmul.msk.f32.gmra.mxu2 %vm206_vm1, %v193_v8  ;;  %490 = vmatmul.msk.f32.gmra.mxu3 %vm206_vm1, %v193_v8 }
  0x2b   : > { %475 = vmatmul.msk.f32.gmra.mxu0 %vm206_vm1, %v193_v8  ;;  %480 = vmatmul.msk.f32.gmra.mxu1 %vm206_vm1, %v193_v8 }
  0x31   : > { %486 = vmatmul.msk.f32.gmra.mxu2 %vm206_vm1, %v194_v9  ;;  %491 = vmatmul.msk.f32.gmra.mxu3 %vm206_vm1, %v194_v9 }
  0x33   : > { %476 = vmatmul.msk.f32.gmra.mxu0 %vm206_vm1, %v194_v9  ;;  %481 = vmatmul.msk.f32.gmra.mxu1 %vm206_vm1, %v194_v9 }
  0x98   : > { %v245_v10 = vpop.f32.mrf.mxu0  ;;  %v274_v11 = vpop.f32.mrf.mxu1 }
  0x99   : > { %344 = vst [vmem:[%s615_s28] sm:$0xff] %v245_v10 }
  0x9a   : > { %345 = vst [vmem:[%s615_s28 + $0x8] sm:$0xff] %v274_v11 }
  0x9c   : > { %v303_v12 = vpop.f32.mrf.mxu2  ;;  %v332_v13 = vpop.f32.mrf.mxu3 }
  0x9d   : > { %346 = vst [vmem:[%s615_s28 + $0x10] sm:$0xff] %v303_v12 }
  0x9e   : > { %347 = vst [vmem:[%s615_s28 + $0x18] sm:$0xff] %v332_v13 }
  0xa0   : > { %v248_v14 = vpop.f32.mrf.mxu0  ;;  %v277_v15 = vpop.f32.mrf.mxu1 }
  0xa1   : > { %348 = vst [vmem:[%s615_s28 + $0x20] sm:$0xff] %v248_v14 }
  0xa2   : > { %349 = vst [vmem:[%s615_s28 + $0x28] sm:$0xff] %v277_v15 }
  0xa4   : > { %v306_v16 = vpop.f32.mrf.mxu2  ;;  %v335_v17 = vpop.f32.mrf.mxu3 }
  0xa5   : > { %350 = vst [vmem:[%s615_s28 + $0x30] sm:$0xff] %v306_v16 }
  0xa6   : > { %351 = vst [vmem:[%s615_s28 + $0x38] sm:$0xff] %v335_v17 }
  0xa8   : > { %v251_v18 = vpop.f32.mrf.mxu0  ;;  %v280_v19 = vpop.f32.mrf.mxu1 }
  0xa9   : > { %352 = vst [vmem:[%s615_s28 + $0x40] sm:$0xff] %v251_v18 }
  0xaa   : > { %353 = vst [vmem:[%s615_s28 + $0x48] sm:$0xff] %v280_v19 }
  0xac   : > { %v309_v20 = vpop.f32.mrf.mxu2  ;;  %v338_v21 = vpop.f32.mrf.mxu3 }
  0xad   : > { %354 = vst [vmem:[%s615_s28 + $0x50] sm:$0xff] %v309_v20 }
  0xae   : > { %355 = vst [vmem:[%s615_s28 + $0x58] sm:$0xff] %v338_v21 }
  0xb0   : > { %v254_v22 = vpop.f32.mrf.mxu0  ;;  %v283_v23 = vpop.f32.mrf.mxu1 }
  0xb1   : > { %356 = vst [vmem:[%s615_s28 + $0x60] sm:$0xff] %v254_v22 }
  0xb2   : > { %357 = vst [vmem:[%s615_s28 + $0x68] sm:$0xff] %v283_v23 }
  0xb4   : > { %v312_v24 = vpop.f32.mrf.mxu2  ;;  %v341_v25 = vpop.f32.mrf.mxu3 }
  0xb5   : > { %358 = vst [vmem:[%s615_s28 + $0x70] sm:$0xff] %v312_v24 }
  0xb6   : > { %359 = vst [vmem:[%s615_s28 + $0x78] sm:$0xff] %v341_v25 }
  0xb7 PF: > { %s12_s11 = sadd.s32 1, %s542_s11   ;;  %s645_s9 = smov %s538_s10 }
  0xb8   : > { %p9_p5 = scmp.ge.s32.totalorder %s12_s11, 4   ;;  %s646_s10 = smov %s648_s12 }
  0xba   :  { %11 = sbr.rel (!%p9_p5) target bundleno = 2 (0x2), region = 62 }

// kernel: _lambda_.11
= control target key start
LH: loop header
LB: loop body
LE: loop exit
PB: predicated region body
PF: predicated region fallthrough
CT: control target
= control target key end

     0   :  { %s1933_s9 = smov 0   ;;  %s1935_s10 = smov 0   ;;  %s2442_s0 = inlined_call_operand.vmem [shape: f32[32,4], index: 0, kind: input, shape index: {}]   ;;  %s2443_s1 = inlined_call_operand.vmem [shape: f32[2,32,4,128], index: 1, kind: input, shape index: {}]   ;;  %s2444_s2 = inlined_call_operand.vmem [shape: f32[2,32,32,128], index: 2, kind: output, shape index: {}]  }
   0x1   :  { %s1937_s11 = smov 0  }
   0x2 LB: > { %s24_s12 = sadd.s32 1, %s1912_s10  ;;  %p1546_p0 = scmp.ge.s32.totalorder %s1916_s11, 1  ;;  %s1916_s11 = sphi %s1937_s11, %s12_s11   ;;  %s1912_s10 = sphi %s1935_s10, %s2446_s10   ;;  %s1908_s9 = sphi %s1933_s9, %s2445_s9  }
   0x3   : > { %p26_p1 = scmp.ge.s32.totalorder %s24_s12, 2  ;;  %p133_p2 = scmp.lt.s32.totalorder %s1916_s11, 3 }
   0x5   : > { %s2448_s12 = smov (%p26_p1, %s24_s12), 0  ;;  %p134_p3 = pnand %p1546_p0, %p133_p2 }
   0x6   : > { %p165_p4 = scmp.lt.s32.totalorder (!%p134_p3), %s1908_s9, 1 }
   0x7   : > { %137 = sbr.rel (%p134_p3) target bundleno = 399 (0x18f), region = 28 }
   0xc   : > { %s2450_s9 = smov (!%p165_p4, %s1908_s9), 1  ;;  %vm203_vm0 = vcmask 1043456   ;;  %v1962_v0 = vld [vmem:[%s2442_s0] sm:$0xff]  ;;  %vm190_vm1 = vcmask 31744   ;;  %v1995_v13 = vld [vmem:[%s2442_s0 + $0x8] sm:$0xff]  ;;  %v2012_v14 = vld [vmem:[%s2442_s0 + $0x10] sm:$0xff] }
   0xd   : > { %s1868_s13 = sshll.u32 %s2450_s9, 7  ;;  %v2025_v15 = vld [vmem:[%s2442_s0 + $0x18] sm:$0xff]  ;;  %s1869_s25 = sshll.u32 %s2450_s9, 10 }
   0xe   : > { %s1957_s16 = scalar_lea.vmem %s2443_s1, %s1868_s13  ;;  %s2159_s28 = scalar_lea.vmem %s2444_s2, %s1869_s25 }
   0xf   : > { %v1566_v1 = vld [vmem:[%s1957_s16 + $0x8] sm:$0xf]  ;;  %v1576_v2 = vld [vmem:[%s1957_s16 + $0xc] sm:$0xf]  ;;  %v1606_v3 = vld [vmem:[%s1957_s16 + $0x18] sm:$0xf] }
  0x10   : > { %1567 = vmatpush.msk.msra.mxu2 %vm203_vm0, %v1566_v1  ;;  %1577 = vmatpush.msk.msra.mxu3 %vm203_vm0, %v1576_v2  ;;  %v1616_v4 = vld [vmem:[%s1957_s16 + $0x1c] sm:$0xf]  ;;  %v189_v5 = vld [vmem:[%s1957_s16] sm:$0xf]  ;;  %v1556_v6 = vld [vmem:[%s1957_s16 + $0x4] sm:$0xf] }
  0x11   : > { %1568 = vmatmul.msk.f32.vlgmr.msra.gmra.mxu2 %vm190_vm1, %v1962_v0  ;;  %1578 = vmatmul.msk.f32.vlgmr.msra.gmra.mxu3 %vm190_vm1, %v1962_v0  ;;  %v1586_v7 = vld [vmem:[%s1957_s16 + $0x10] sm:$0xf]  ;;  %v1596_v8 = vld [vmem:[%s1957_s16 + $0x14] sm:$0xf]  ;;  %v1646_v9 = vld [vmem:[%s1957_s16 + $0x28] sm:$0xf] }
  0x12   : > { %1607 = vmatpush.msk.msrb.mxu2 %vm203_vm0, %v1606_v3  ;;  %1617 = vmatpush.msk.msrb.mxu3 %vm203_vm0, %v1616_v4  ;;  %v1656_v10 = vld [vmem:[%s1957_s16 + $0x2c] sm:$0xf]  ;;  %v1626_v11 = vld [vmem:[%s1957_s16 + $0x20] sm:$0xf]  ;;  %v1636_v12 = vld [vmem:[%s1957_s16 + $0x24] sm:$0xf] }
  0x13   : > { %1551 = vmatpush.msk.msra.mxu0 %vm203_vm0, %v189_v5  ;;  %1557 = vmatpush.msk.msra.mxu1 %vm203_vm0, %v1556_v6  ;;  %v1686_v16 = vld [vmem:[%s1957_s16 + $0x38] sm:$0xf]  ;;  %v1696_v17 = vld [vmem:[%s1957_s16 + $0x3c] sm:$0xf]  ;;  %v1666_v18 = vld [vmem:[%s1957_s16 + $0x30] sm:$0xf] }
  0x14   : > { %1552 = vmatmul.msk.f32.vlgmr.msra.gmra.mxu0 %vm190_vm1, %v1962_v0  ;;  %1558 = vmatmul.msk.f32.vlgmr.msra.gmra.mxu1 %vm190_vm1, %v1962_v0  ;;  %v1676_v19 = vld [vmem:[%s1957_s16 + $0x34] sm:$0xf]  ;;  %v1726_v20 = vld [vmem:[%s1957_s16 + $0x48] sm:$0xf]  ;;  %v1736_v21 = vld [vmem:[%s1957_s16 + $0x4c] sm:$0xf] }
  0x15   : > { %1587 = vmatpush.msk.msrb.mxu0 %vm203_vm0, %v1586_v7  ;;  %1597 = vmatpush.msk.msrb.mxu1 %vm203_vm0, %v1596_v8  ;;  %v1706_v22 = vld [vmem:[%s1957_s16 + $0x40] sm:$0xf]  ;;  %v1716_v23 = vld [vmem:[%s1957_s16 + $0x44] sm:$0xf]  ;;  %v1766_v24 = vld [vmem:[%s1957_s16 + $0x58] sm:$0xf] }
  0x16   : > { %1647 = vmatpush.msk.msra.mxu2 %vm203_vm0, %v1646_v9  ;;  %1657 = vmatpush.msk.msra.mxu3 %vm203_vm0, %v1656_v10  ;;  %v1776_v25 = vld [vmem:[%s1957_s16 + $0x5c] sm:$0xf]  ;;  %v1746_v26 = vld [vmem:[%s1957_s16 + $0x50] sm:$0xf]  ;;  %v1756_v27 = vld [vmem:[%s1957_s16 + $0x54] sm:$0xf] }
  0x17   : > { %1627 = vmatpush.msk.msra.mxu0 %vm203_vm0, %v1626_v11  ;;  %1637 = vmatpush.msk.msra.mxu1 %vm203_vm0, %v1636_v12  ;;  %v1806_v30 = vld [vmem:[%s1957_s16 + $0x68] sm:$0xf]  ;;  %v1816_v31 = vld [vmem:[%s1957_s16 + $0x6c] sm:$0xf]  ;;  %v1786_v34 = vld [vmem:[%s1957_s16 + $0x60] sm:$0xf] }
  0x18   : > { %v1796_v35 = vld [vmem:[%s1957_s16 + $0x64] sm:$0xf]  ;;  %v1846_v50 = vld [vmem:[%s1957_s16 + $0x78] sm:$0xf]  ;;  %v1856_v51 = vld [vmem:[%s1957_s16 + $0x7c] sm:$0xf] }
  0x19   : > { %1569 = vmatmul.msk.f32.gmra.mxu2 %vm190_vm1, %v1995_v13  ;;  %1579 = vmatmul.msk.f32.gmra.mxu3 %vm190_vm1, %v1995_v13  ;;  %v1826_v54 = vld [vmem:[%s1957_s16 + $0x70] sm:$0xf]  ;;  %v1836_v55 = vld [vmem:[%s1957_s16 + $0x74] sm:$0xf] }
  0x1c   : > { %1553 = vmatmul.msk.f32.gmra.mxu0 %vm190_vm1, %v1995_v13  ;;  %1559 = vmatmul.msk.f32.gmra.mxu1 %vm190_vm1, %v1995_v13 }
  0x21   : > { %1570 = vmatmul.msk.f32.gmra.mxu2 %vm190_vm1, %v2012_v14  ;;  %1580 = vmatmul.msk.f32.gmra.mxu3 %vm190_vm1, %v2012_v14 }
  0x24   : > { %1554 = vmatmul.msk.f32.gmra.mxu0 %vm190_vm1, %v2012_v14  ;;  %1560 = vmatmul.msk.f32.gmra.mxu1 %vm190_vm1, %v2012_v14 }
  0x29   : > { %1571 = vmatmul.msk.f32.gmra.mxu2 %vm190_vm1, %v2025_v15  ;;  %1581 = vmatmul.msk.f32.gmra.mxu3 %vm190_vm1, %v2025_v15 }
  0x2c   : > { %1555 = vmatmul.msk.f32.gmra.mxu0 %vm190_vm1, %v2025_v15  ;;  %1561 = vmatmul.msk.f32.gmra.mxu1 %vm190_vm1, %v2025_v15 }
  0x31   : > { %1608 = vmatmul.msk.f32.vlgmr.msrb.gmra.mxu2 %vm190_vm1, %v1962_v0  ;;  %1618 = vmatmul.msk.f32.vlgmr.msrb.gmra.mxu3 %vm190_vm1, %v1962_v0 }
  0x32   : > { %1687 = vmatpush.msk.msrb.mxu2 %vm203_vm0, %v1686_v16  ;;  %1697 = vmatpush.msk.msrb.mxu3 %vm203_vm0, %v1696_v17 }
  0x34   : > { %1588 = vmatmul.msk.f32.vlgmr.msrb.gmra.mxu0 %vm190_vm1, %v1962_v0  ;;  %1598 = vmatmul.msk.f32.vlgmr.msrb.gmra.mxu1 %vm190_vm1, %v1962_v0 }
  0x35   : > { %1667 = vmatpush.msk.msrb.mxu0 %vm203_vm0, %v1666_v18  ;;  %1677 = vmatpush.msk.msrb.mxu1 %vm203_vm0, %v1676_v19 }
  0x39   : > { %1609 = vmatmul.msk.f32.gmra.mxu2 %vm190_vm1, %v1995_v13  ;;  %1619 = vmatmul.msk.f32.gmra.mxu3 %vm190_vm1, %v1995_v13 }
  0x3c   : > { %1589 = vmatmul.msk.f32.gmra.mxu0 %vm190_vm1, %v1995_v13  ;;  %1599 = vmatmul.msk.f32.gmra.mxu1 %vm190_vm1, %v1995_v13 }
  0x41   : > { %1610 = vmatmul.msk.f32.gmra.mxu2 %vm190_vm1, %v2012_v14  ;;  %1620 = vmatmul.msk.f32.gmra.mxu3 %vm190_vm1, %v2012_v14 }
  0x44   : > { %1590 = vmatmul.msk.f32.gmra.mxu0 %vm190_vm1, %v2012_v14  ;;  %1600 = vmatmul.msk.f32.gmra.mxu1 %vm190_vm1, %v2012_v14 }
  0x49   : > { %1611 = vmatmul.msk.f32.gmra.mxu2 %vm190_vm1, %v2025_v15  ;;  %1621 = vmatmul.msk.f32.gmra.mxu3 %vm190_vm1, %v2025_v15 }
  0x4c   : > { %1591 = vmatmul.msk.f32.gmra.mxu0 %vm190_vm1, %v2025_v15  ;;  %1601 = vmatmul.msk.f32.gmra.mxu1 %vm190_vm1, %v2025_v15 }
  0x51   : > { %1648 = vmatmul.msk.f32.vlgmr.msra.gmra.mxu2 %vm190_vm1, %v1962_v0  ;;  %1658 = vmatmul.msk.f32.vlgmr.msra.gmra.mxu3 %vm190_vm1, %v1962_v0 }
  0x52   : > { %1727 = vmatpush.msk.msra.mxu2 %vm203_vm0, %v1726_v20  ;;  %1737 = vmatpush.msk.msra.mxu3 %vm203_vm0, %v1736_v21 }
  0x54   : > { %1628 = vmatmul.msk.f32.vlgmr.msra.gmra.mxu0 %vm190_vm1, %v1962_v0  ;;  %1638 = vmatmul.msk.f32.vlgmr.msra.gmra.mxu1 %vm190_vm1, %v1962_v0 }
  0x55   : > { %1707 = vmatpush.msk.msra.mxu0 %vm203_vm0, %v1706_v22  ;;  %1717 = vmatpush.msk.msra.mxu1 %vm203_vm0, %v1716_v23 }
  0x59   : > { %1649 = vmatmul.msk.f32.gmra.mxu2 %vm190_vm1, %v1995_v13  ;;  %1659 = vmatmul.msk.f32.gmra.mxu3 %vm190_vm1, %v1995_v13 }
  0x5c   : > { %1629 = vmatmul.msk.f32.gmra.mxu0 %vm190_vm1, %v1995_v13  ;;  %1639 = vmatmul.msk.f32.gmra.mxu1 %vm190_vm1, %v1995_v13 }
  0x61   : > { %1650 = vmatmul.msk.f32.gmra.mxu2 %vm190_vm1, %v2012_v14  ;;  %1660 = vmatmul.msk.f32.gmra.mxu3 %vm190_vm1, %v2012_v14 }
  0x64   : > { %1630 = vmatmul.msk.f32.gmra.mxu0 %vm190_vm1, %v2012_v14  ;;  %1640 = vmatmul.msk.f32.gmra.mxu1 %vm190_vm1, %v2012_v14 }
  0x69   : > { %1651 = vmatmul.msk.f32.gmra.mxu2 %vm190_vm1, %v2025_v15  ;;  %1661 = vmatmul.msk.f32.gmra.mxu3 %vm190_vm1, %v2025_v15 }
  0x6c   : > { %1631 = vmatmul.msk.f32.gmra.mxu0 %vm190_vm1, %v2025_v15  ;;  %1641 = vmatmul.msk.f32.gmra.mxu1 %vm190_vm1, %v2025_v15 }
  0x71   : > { %1688 = vmatmul.msk.f32.vlgmr.msrb.gmra.mxu2 %vm190_vm1, %v1962_v0  ;;  %1698 = vmatmul.msk.f32.vlgmr.msrb.gmra.mxu3 %vm190_vm1, %v1962_v0 }
  0x72   : > { %1767 = vmatpush.msk.msrb.mxu2 %vm203_vm0, %v1766_v24  ;;  %1777 = vmatpush.msk.msrb.mxu3 %vm203_vm0, %v1776_v25 }
  0x74   : > { %1668 = vmatmul.msk.f32.vlgmr.msrb.gmra.mxu0 %vm190_vm1, %v1962_v0  ;;  %1678 = vmatmul.msk.f32.vlgmr.msrb.gmra.mxu1 %vm190_vm1, %v1962_v0 }
  0x75   : > { %1747 = vmatpush.msk.msrb.mxu0 %vm203_vm0, %v1746_v26  ;;  %1757 = vmatpush.msk.msrb.mxu1 %vm203_vm0, %v1756_v27 }
  0x79   : > { %1689 = vmatmul.msk.f32.gmra.mxu2 %vm190_vm1, %v1995_v13  ;;  %1699 = vmatmul.msk.f32.gmra.mxu3 %vm190_vm1, %v1995_v13 }
  0x7c   : > { %1669 = vmatmul.msk.f32.gmra.mxu0 %vm190_vm1, %v1995_v13  ;;  %1679 = vmatmul.msk.f32.gmra.mxu1 %vm190_vm1, %v1995_v13 }
  0x81   : > { %1690 = vmatmul.msk.f32.gmra.mxu2 %vm190_vm1, %v2012_v14  ;;  %1700 = vmatmul.msk.f32.gmra.mxu3 %vm190_vm1, %v2012_v14 }
  0x84   : > { %1670 = vmatmul.msk.f32.gmra.mxu0 %vm190_vm1, %v2012_v14  ;;  %1680 = vmatmul.msk.f32.gmra.mxu1 %vm190_vm1, %v2012_v14 }
  0x89   : > { %1691 = vmatmul.msk.f32.gmra.mxu2 %vm190_vm1, %v2025_v15  ;;  %1701 = vmatmul.msk.f32.gmra.mxu3 %vm190_vm1, %v2025_v15 }
  0x8c   : > { %1671 = vmatmul.msk.f32.gmra.mxu0 %vm190_vm1, %v2025_v15  ;;  %1681 = vmatmul.msk.f32.gmra.mxu1 %vm190_vm1, %v2025_v15 }
  0x91   : > { %1728 = vmatmul.msk.f32.vlgmr.msra.gmra.mxu2 %vm190_vm1, %v1962_v0  ;;  %1738 = vmatmul.msk.f32.vlgmr.msra.gmra.mxu3 %vm190_vm1, %v1962_v0  ;;  %v224_v28 = vpop.f32.mrf.mxu0  ;;  %v262_v29 = vpop.f32.mrf.mxu1 }
  0x92   : > { %236 = vst [vmem:[%s2159_s28] sm:$0xff] %v224_v28  ;;  %1807 = vmatpush.msk.msra.mxu2 %vm203_vm0, %v1806_v30  ;;  %1817 = vmatpush.msk.msra.mxu3 %vm203_vm0, %v1816_v31 }
  0x93   : > { %1562 = vst [vmem:[%s2159_s28 + $0x20] sm:$0xff] %v262_v29 }
  0x94   : > { %v301_v32 = vpop.f32.mrf.mxu2  ;;  %v340_v33 = vpop.f32.mrf.mxu3  ;;  %1708 = vmatmul.msk.f32.vlgmr.msra.gmra.mxu0 %vm190_vm1, %v1962_v0  ;;  %1718 = vmatmul.msk.f32.vlgmr.msra.gmra.mxu1 %vm190_vm1, %v1962_v0 }
  0x95   : > { %1572 = vst [vmem:[%s2159_s28 + $0x40] sm:$0xff] %v301_v32  ;;  %1787 = vmatpush.msk.msra.mxu0 %vm203_vm0, %v1786_v34  ;;  %1797 = vmatpush.msk.msra.mxu1 %vm203_vm0, %v1796_v35 }
  0x96   : > { %1582 = vst [vmem:[%s2159_s28 + $0x60] sm:$0xff] %v340_v33 }
  0x99   : > { %1729 = vmatmul.msk.f32.gmra.mxu2 %vm190_vm1, %v1995_v13  ;;  %1739 = vmatmul.msk.f32.gmra.mxu3 %vm190_vm1, %v1995_v13  ;;  %v227_v36 = vpop.f32.mrf.mxu0  ;;  %v265_v37 = vpop.f32.mrf.mxu1 }
  0x9a   : > { %237 = vst [vmem:[%s2159_s28 + $0x8] sm:$0xff] %v227_v36 }
  0x9b   : > { %1563 = vst [vmem:[%s2159_s28 + $0x28] sm:$0xff] %v265_v37 }
  0x9c   : > { %v304_v38 = vpop.f32.mrf.mxu2  ;;  %v343_v39 = vpop.f32.mrf.mxu3  ;;  %1709 = vmatmul.msk.f32.gmra.mxu0 %vm190_vm1, %v1995_v13  ;;  %1719 = vmatmul.msk.f32.gmra.mxu1 %vm190_vm1, %v1995_v13 }
  0x9d   : > { %1573 = vst [vmem:[%s2159_s28 + $0x48] sm:$0xff] %v304_v38 }
  0x9e   : > { %1583 = vst [vmem:[%s2159_s28 + $0x68] sm:$0xff] %v343_v39 }
  0xa1   : > { %1730 = vmatmul.msk.f32.gmra.mxu2 %vm190_vm1, %v2012_v14  ;;  %1740 = vmatmul.msk.f32.gmra.mxu3 %vm190_vm1, %v2012_v14  ;;  %v230_v40 = vpop.f32.mrf.mxu0  ;;  %v268_v41 = vpop.f32.mrf.mxu1 }
  0xa2   : > { %238 = vst [vmem:[%s2159_s28 + $0x10] sm:$0xff] %v230_v40 }
  0xa3   : > { %1564 = vst [vmem:[%s2159_s28 + $0x30] sm:$0xff] %v268_v41 }
  0xa4   : > { %v307_v42 = vpop.f32.mrf.mxu2  ;;  %v346_v43 = vpop.f32.mrf.mxu3  ;;  %1710 = vmatmul.msk.f32.gmra.mxu0 %vm190_vm1, %v2012_v14  ;;  %1720 = vmatmul.msk.f32.gmra.mxu1 %vm190_vm1, %v2012_v14 }
  0xa5   : > { %1574 = vst [vmem:[%s2159_s28 + $0x50] sm:$0xff] %v307_v42 }
  0xa6   : > { %1584 = vst [vmem:[%s2159_s28 + $0x70] sm:$0xff] %v346_v43 }
  0xa9   : > { %1731 = vmatmul.msk.f32.gmra.mxu2 %vm190_vm1, %v2025_v15  ;;  %1741 = vmatmul.msk.f32.gmra.mxu3 %vm190_vm1, %v2025_v15  ;;  %v233_v44 = vpop.f32.mrf.mxu0  ;;  %v271_v45 = vpop.f32.mrf.mxu1 }
  0xaa   : > { %239 = vst [vmem:[%s2159_s28 + $0x18] sm:$0xff] %v233_v44 }
  0xab   : > { %1565 = vst [vmem:[%s2159_s28 + $0x38] sm:$0xff] %v271_v45 }
  0xac   : > { %v310_v46 = vpop.f32.mrf.mxu2  ;;  %v349_v47 = vpop.f32.mrf.mxu3  ;;  %1711 = vmatmul.msk.f32.gmra.mxu0 %vm190_vm1, %v2025_v15  ;;  %1721 = vmatmul.msk.f32.gmra.mxu1 %vm190_vm1, %v2025_v15 }
  0xad   : > { %1575 = vst [vmem:[%s2159_s28 + $0x58] sm:$0xff] %v310_v46 }
  0xae   : > { %1585 = vst [vmem:[%s2159_s28 + $0x78] sm:$0xff] %v349_v47 }
  0xb1   : > { %1768 = vmatmul.msk.f32.vlgmr.msrb.gmra.mxu2 %vm190_vm1, %v1962_v0  ;;  %1778 = vmatmul.msk.f32.vlgmr.msrb.gmra.mxu3 %vm190_vm1, %v1962_v0  ;;  %v379_v48 = vpop.f32.mrf.mxu0  ;;  %v418_v49 = vpop.f32.mrf.mxu1 }
  0xb2   : > { %1592 = vst [vmem:[%s2159_s28 + $0x80] sm:$0xff] %v379_v48  ;;  %1847 = vmatpush.msk.msrb.mxu2 %vm203_vm0, %v1846_v50  ;;  %1857 = vmatpush.msk.msrb.mxu3 %vm203_vm0, %v1856_v51 }
  0xb3   : > { %1602 = vst [vmem:[%s2159_s28 + $0xa0] sm:$0xff] %v418_v49 }
  0xb4   : > { %v457_v52 = vpop.f32.mrf.mxu2  ;;  %v496_v53 = vpop.f32.mrf.mxu3  ;;  %1748 = vmatmul.msk.f32.vlgmr.msrb.gmra.mxu0 %vm190_vm1, %v1962_v0  ;;  %1758 = vmatmul.msk.f32.vlgmr.msrb.gmra.mxu1 %vm190_vm1, %v1962_v0 }
  0xb5   : > { %1612 = vst [vmem:[%s2159_s28 + $0xc0] sm:$0xff] %v457_v52  ;;  %1827 = vmatpush.msk.msrb.mxu0 %vm203_vm0, %v1826_v54  ;;  %1837 = vmatpush.msk.msrb.mxu1 %vm203_vm0, %v1836_v55 }
  0xb6   : > { %1622 = vst [vmem:[%s2159_s28 + $0xe0] sm:$0xff] %v496_v53 }
  0xb9   : > { %1769 = vmatmul.msk.f32.gmra.mxu2 %vm190_vm1, %v1995_v13  ;;  %1779 = vmatmul.msk.f32.gmra.mxu3 %vm190_vm1, %v1995_v13  ;;  %v382_v56 = vpop.f32.mrf.mxu0  ;;  %v421_v57 = vpop.f32.mrf.mxu1 }
  0xba   : > { %1593 = vst [vmem:[%s2159_s28 + $0x88] sm:$0xff] %v382_v56 }
  0xbb   : > { %1603 = vst [vmem:[%s2159_s28 + $0xa8] sm:$0xff] %v421_v57 }
  0xbc   : > { %v460_v58 = vpop.f32.mrf.mxu2  ;;  %v499_v59 = vpop.f32.mrf.mxu3  ;;  %1749 = vmatmul.msk.f32.gmra.mxu0 %vm190_vm1, %v1995_v13  ;;  %1759 = vmatmul.msk.f32.gmra.mxu1 %vm190_vm1, %v1995_v13 }
  0xbd   : > { %1613 = vst [vmem:[%s2159_s28 + $0xc8] sm:$0xff] %v460_v58 }
  0xbe   : > { %1623 = vst [vmem:[%s2159_s28 + $0xe8] sm:$0xff] %v499_v59 }
  0xc1   : > { %1770 = vmatmul.msk.f32.gmra.mxu2 %vm190_vm1, %v2012_v14  ;;  %1780 = vmatmul.msk.f32.gmra.mxu3 %vm190_vm1, %v2012_v14  ;;  %v385_v60 = vpop.f32.mrf.mxu0  ;;  %v424_v61 = vpop.f32.mrf.mxu1 }
  0xc2   : > { %1594 = vst [vmem:[%s2159_s28 + $0x90] sm:$0xff] %v385_v60 }
  0xc3   : > { %1604 = vst [vmem:[%s2159_s28 + $0xb0] sm:$0xff] %v424_v61 }
  0xc4   : > { %v463_v62 = vpop.f32.mrf.mxu2  ;;  %v502_v63 = vpop.f32.mrf.mxu3  ;;  %1750 = vmatmul.msk.f32.gmra.mxu0 %vm190_vm1, %v2012_v14  ;;  %1760 = vmatmul.msk.f32.gmra.mxu1 %vm190_vm1, %v2012_v14 }
  0xc5   : > { %1614 = vst [vmem:[%s2159_s28 + $0xd0] sm:$0xff] %v463_v62 }
  0xc6   : > { %1624 = vst [vmem:[%s2159_s28 + $0xf0] sm:$0xff] %v502_v63 }
  0xc9   : > { %1771 = vmatmul.msk.f32.gmra.mxu2 %vm190_vm1, %v2025_v15  ;;  %1781 = vmatmul.msk.f32.gmra.mxu3 %vm190_vm1, %v2025_v15  ;;  %v388_v1 = vpop.f32.mrf.mxu0  ;;  %v427_v2 = vpop.f32.mrf.mxu1 }
  0xca   : > { %1595 = vst [vmem:[%s2159_s28 + $0x98] sm:$0xff] %v388_v1 }
  0xcb   : > { %1605 = vst [vmem:[%s2159_s28 + $0xb8] sm:$0xff] %v427_v2 }
  0xcc   : > { %v466_v3 = vpop.f32.mrf.mxu2  ;;  %v505_v4 = vpop.f32.mrf.mxu3  ;;  %1751 = vmatmul.msk.f32.gmra.mxu0 %vm190_vm1, %v2025_v15  ;;  %1761 = vmatmul.msk.f32.gmra.mxu1 %vm190_vm1, %v2025_v15 }
  0xcd   : > { %1615 = vst [vmem:[%s2159_s28 + $0xd8] sm:$0xff] %v466_v3 }
  0xce   : > { %1625 = vst [vmem:[%s2159_s28 + $0xf8] sm:$0xff] %v505_v4 }
  0xd1   : > { %1808 = vmatmul.msk.f32.vlgmr.msra.gmra.mxu2 %vm190_vm1, %v1962_v0  ;;  %1818 = vmatmul.msk.f32.vlgmr.msra.gmra.mxu3 %vm190_vm1, %v1962_v0  ;;  %v535_v5 = vpop.f32.mrf.mxu0  ;;  %v574_v6 = vpop.f32.mrf.mxu1 }
  0xd2   : > { %1632 = vst [vmem:[%s2159_s28 + $0x100] sm:$0xff] %v535_v5 }
  0xd3   : > { %1642 = vst [vmem:[%s2159_s28 + $0x120] sm:$0xff] %v574_v6 }
  0xd4   : > { %v613_v7 = vpop.f32.mrf.mxu2  ;;  %v652_v8 = vpop.f32.mrf.mxu3  ;;  %1788 = vmatmul.msk.f32.vlgmr.msra.gmra.mxu0 %vm190_vm1, %v1962_v0  ;;  %1798 = vmatmul.msk.f32.vlgmr.msra.gmra.mxu1 %vm190_vm1, %v1962_v0 }
  0xd5   : > { %1652 = vst [vmem:[%s2159_s28 + $0x140] sm:$0xff] %v613_v7 }
  0xd6   : > { %1662 = vst [vmem:[%s2159_s28 + $0x160] sm:$0xff] %v652_v8 }
  0xd9   : > { %1809 = vmatmul.msk.f32.gmra.mxu2 %vm190_vm1, %v1995_v13  ;;  %1819 = vmatmul.msk.f32.gmra.mxu3 %vm190_vm1, %v1995_v13  ;;  %v538_v9 = vpop.f32.mrf.mxu0  ;;  %v577_v10 = vpop.f32.mrf.mxu1 }
  0xda   : > { %1633 = vst [vmem:[%s2159_s28 + $0x108] sm:$0xff] %v538_v9 }
  0xdb   : > { %1643 = vst [vmem:[%s2159_s28 + $0x128] sm:$0xff] %v577_v10 }
  0xdc   : > { %v616_v11 = vpop.f32.mrf.mxu2  ;;  %v655_v12 = vpop.f32.mrf.mxu3  ;;  %1789 = vmatmul.msk.f32.gmra.mxu0 %vm190_vm1, %v1995_v13  ;;  %1799 = vmatmul.msk.f32.gmra.mxu1 %vm190_vm1, %v1995_v13 }
  0xdd   : > { %1653 = vst [vmem:[%s2159_s28 + $0x148] sm:$0xff] %v616_v11 }
  0xde   : > { %1663 = vst [vmem:[%s2159_s28 + $0x168] sm:$0xff] %v655_v12 }
  0xe1   : > { %1810 = vmatmul.msk.f32.gmra.mxu2 %vm190_vm1, %v2012_v14  ;;  %1820 = vmatmul.msk.f32.gmra.mxu3 %vm190_vm1, %v2012_v14  ;;  %v541_v16 = vpop.f32.mrf.mxu0  ;;  %v580_v17 = vpop.f32.mrf.mxu1 }
  0xe2   : > { %1634 = vst [vmem:[%s2159_s28 + $0x110] sm:$0xff] %v541_v16 }
  0xe3   : > { %1644 = vst [vmem:[%s2159_s28 + $0x130] sm:$0xff] %v580_v17 }
  0xe4   : > { %v619_v18 = vpop.f32.mrf.mxu2  ;;  %v658_v19 = vpop.f32.mrf.mxu3  ;;  %1790 = vmatmul.msk.f32.gmra.mxu0 %vm190_vm1, %v2012_v14  ;;  %1800 = vmatmul.msk.f32.gmra.mxu1 %vm190_vm1, %v2012_v14 }
  0xe5   : > { %1654 = vst [vmem:[%s2159_s28 + $0x150] sm:$0xff] %v619_v18 }
  0xe6   : > { %1664 = vst [vmem:[%s2159_s28 + $0x170] sm:$0xff] %v658_v19 }
  0xe9   : > { %1811 = vmatmul.msk.f32.gmra.mxu2 %vm190_vm1, %v2025_v15  ;;  %1821 = vmatmul.msk.f32.gmra.mxu3 %vm190_vm1, %v2025_v15  ;;  %v544_v20 = vpop.f32.mrf.mxu0  ;;  %v583_v21 = vpop.f32.mrf.mxu1 }
  0xea   : > { %1635 = vst [vmem:[%s2159_s28 + $0x118] sm:$0xff] %v544_v20 }
  0xeb   : > { %1645 = vst [vmem:[%s2159_s28 + $0x138] sm:$0xff] %v583_v21 }
  0xec   : > { %v622_v22 = vpop.f32.mrf.mxu2  ;;  %v661_v23 = vpop.f32.mrf.mxu3  ;;  %1791 = vmatmul.msk.f32.gmra.mxu0 %vm190_vm1, %v2025_v15  ;;  %1801 = vmatmul.msk.f32.gmra.mxu1 %vm190_vm1, %v2025_v15 }
  0xed   : > { %1655 = vst [vmem:[%s2159_s28 + $0x158] sm:$0xff] %v622_v22 }
  0xee   : > { %1665 = vst [vmem:[%s2159_s28 + $0x178] sm:$0xff] %v661_v23 }
  0xf1   : > { %1848 = vmatmul.msk.f32.vlgmr.msrb.gmra.mxu2 %vm190_vm1, %v1962_v0  ;;  %1858 = vmatmul.msk.f32.vlgmr.msrb.gmra.mxu3 %vm190_vm1, %v1962_v0  ;;  %v691_v24 = vpop.f32.mrf.mxu0  ;;  %v730_v25 = vpop.f32.mrf.mxu1 }
  0xf2   : > { %1672 = vst [vmem:[%s2159_s28 + $0x180] sm:$0xff] %v691_v24 }
  0xf3   : > { %1682 = vst [vmem:[%s2159_s28 + $0x1a0] sm:$0xff] %v730_v25 }
  0xf4   : > { %v769_v26 = vpop.f32.mrf.mxu2  ;;  %v808_v27 = vpop.f32.mrf.mxu3  ;;  %1828 = vmatmul.msk.f32.vlgmr.msrb.gmra.mxu0 %vm190_vm1, %v1962_v0  ;;  %1838 = vmatmul.msk.f32.vlgmr.msrb.gmra.mxu1 %vm190_vm1, %v1962_v0 }
  0xf5   : > { %1692 = vst [vmem:[%s2159_s28 + $0x1c0] sm:$0xff] %v769_v26 }
  0xf6   : > { %1702 = vst [vmem:[%s2159_s28 + $0x1e0] sm:$0xff] %v808_v27 }
  0xf9   : > { %1849 = vmatmul.msk.f32.gmra.mxu2 %vm190_vm1, %v1995_v13  ;;  %1859 = vmatmul.msk.f32.gmra.mxu3 %vm190_vm1, %v1995_v13  ;;  %v694_v28 = vpop.f32.mrf.mxu0  ;;  %v733_v29 = vpop.f32.mrf.mxu1 }
  0xfa   : > { %1673 = vst [vmem:[%s2159_s28 + $0x188] sm:$0xff] %v694_v28 }
  0xfb   : > { %1683 = vst [vmem:[%s2159_s28 + $0x1a8] sm:$0xff] %v733_v29 }
  0xfc   : > { %v772_v30 = vpop.f32.mrf.mxu2  ;;  %v811_v31 = vpop.f32.mrf.mxu3  ;;  %1829 = vmatmul.msk.f32.gmra.mxu0 %vm190_vm1, %v1995_v13  ;;  %1839 = vmatmul.msk.f32.gmra.mxu1 %vm190_vm1, %v1995_v13 }
  0xfd   : > { %1693 = vst [vmem:[%s2159_s28 + $0x1c8] sm:$0xff] %v772_v30 }
  0xfe   : > { %1703 = vst [vmem:[%s2159_s28 + $0x1e8] sm:$0xff] %v811_v31 }
 0x101   : > { %1850 = vmatmul.msk.f32.gmra.mxu2 %vm190_vm1, %v2012_v14  ;;  %1860 = vmatmul.msk.f32.gmra.mxu3 %vm190_vm1, %v2012_v14  ;;  %v697_v0 = vpop.f32.mrf.mxu0  ;;  %v736_v32 = vpop.f32.mrf.mxu1 }
 0x102   : > { %1674 = vst [vmem:[%s2159_s28 + $0x190] sm:$0xff] %v697_v0 }
 0x103   : > { %1684 = vst [vmem:[%s2159_s28 + $0x1b0] sm:$0xff] %v736_v32 }
 0x104   : > { %v775_v33 = vpop.f32.mrf.mxu2  ;;  %v814_v34 = vpop.f32.mrf.mxu3  ;;  %1830 = vmatmul.msk.f32.gmra.mxu0 %vm190_vm1, %v2012_v14  ;;  %1840 = vmatmul.msk.f32.gmra.mxu1 %vm190_vm1, %v2012_v14 }
 0x105   : > { %1694 = vst [vmem:[%s2159_s28 + $0x1d0] sm:$0xff] %v775_v33 }
 0x106   : > { %1704 = vst [vmem:[%s2159_s28 + $0x1f0] sm:$0xff] %v814_v34 }
 0x109   : > { %1851 = vmatmul.msk.f32.gmra.mxu2 %vm190_vm1, %v2025_v15  ;;  %1861 = vmatmul.msk.f32.gmra.mxu3 %vm190_vm1, %v2025_v15  ;;  %v700_v13 = vpop.f32.mrf.mxu0  ;;  %v739_v35 = vpop.f32.mrf.mxu1 }
 0x10a   : > { %1675 = vst [vmem:[%s2159_s28 + $0x198] sm:$0xff] %v700_v13 }
 0x10b   : > { %1685 = vst [vmem:[%s2159_s28 + $0x1b8] sm:$0xff] %v739_v35 }
 0x10c   : > { %v778_v36 = vpop.f32.mrf.mxu2  ;;  %v817_v37 = vpop.f32.mrf.mxu3  ;;  %1831 = vmatmul.msk.f32.gmra.mxu0 %vm190_vm1, %v2025_v15  ;;  %1841 = vmatmul.msk.f32.gmra.mxu1 %vm190_vm1, %v2025_v15 }
 0x10d   : > { %1695 = vst [vmem:[%s2159_s28 + $0x1d8] sm:$0xff] %v778_v36 }
 0x10e   : > { %1705 = vst [vmem:[%s2159_s28 + $0x1f8] sm:$0xff] %v817_v37 }
 0x111   : > { %v847_v14 = vpop.f32.mrf.mxu0  ;;  %v886_v38 = vpop.f32.mrf.mxu1 }
 0x112   : > { %1712 = vst [vmem:[%s2159_s28 + $0x200] sm:$0xff] %v847_v14 }
 0x113   : > { %1722 = vst [vmem:[%s2159_s28 + $0x220] sm:$0xff] %v886_v38 }
 0x114   : > { %v925_v39 = vpop.f32.mrf.mxu2  ;;  %v964_v40 = vpop.f32.mrf.mxu3 }
 0x115   : > { %1732 = vst [vmem:[%s2159_s28 + $0x240] sm:$0xff] %v925_v39 }
 0x116   : > { %1742 = vst [vmem:[%s2159_s28 + $0x260] sm:$0xff] %v964_v40 }
 0x119   : > { %v850_v41 = vpop.f32.mrf.mxu0  ;;  %v889_v42 = vpop.f32.mrf.mxu1 }
 0x11a   : > { %1713 = vst [vmem:[%s2159_s28 + $0x208] sm:$0xff] %v850_v41 }
 0x11b   : > { %1723 = vst [vmem:[%s2159_s28 + $0x228] sm:$0xff] %v889_v42 }
 0x11c   : > { %v928_v15 = vpop.f32.mrf.mxu2  ;;  %v967_v43 = vpop.f32.mrf.mxu3 }
 0x11d   : > { %1733 = vst [vmem:[%s2159_s28 + $0x248] sm:$0xff] %v928_v15 }
 0x11e   : > { %1743 = vst [vmem:[%s2159_s28 + $0x268] sm:$0xff] %v967_v43 }
 0x121   : > { %v853_v44 = vpop.f32.mrf.mxu0  ;;  %v892_v45 = vpop.f32.mrf.mxu1 }
 0x122   : > { %1714 = vst [vmem:[%s2159_s28 + $0x210] sm:$0xff] %v853_v44 }
 0x123   : > { %1724 = vst [vmem:[%s2159_s28 + $0x230] sm:$0xff] %v892_v45 }
 0x124   : > { %v931_v46 = vpop.f32.mrf.mxu2  ;;  %v970_v47 = vpop.f32.mrf.mxu3 }
 0x125   : > { %1734 = vst [vmem:[%s2159_s28 + $0x250] sm:$0xff] %v931_v46 }
 0x126   : > { %1744 = vst [vmem:[%s2159_s28 + $0x270] sm:$0xff] %v970_v47 }
 0x129   : > { %v856_v48 = vpop.f32.mrf.mxu0  ;;  %v895_v49 = vpop.f32.mrf.mxu1 }
 0x12a   : > { %1715 = vst [vmem:[%s2159_s28 + $0x218] sm:$0xff] %v856_v48 }
 0x12b   : > { %1725 = vst [vmem:[%s2159_s28 + $0x238] sm:$0xff] %v895_v49 }
 0x12c   : > { %v934_v50 = vpop.f32.mrf.mxu2  ;;  %v973_v51 = vpop.f32.mrf.mxu3 }
 0x12d   : > { %1735 = vst [vmem:[%s2159_s28 + $0x258] sm:$0xff] %v934_v50 }
 0x12e   : > { %1745 = vst [vmem:[%s2159_s28 + $0x278] sm:$0xff] %v973_v51 }
 0x131   : > { %v1003_v52 = vpop.f32.mrf.mxu0  ;;  %v1042_v53 = vpop.f32.mrf.mxu1 }
 0x132   : > { %1752 = vst [vmem:[%s2159_s28 + $0x280] sm:$0xff] %v1003_v52 }
 0x133   : > { %1762 = vst [vmem:[%s2159_s28 + $0x2a0] sm:$0xff] %v1042_v53 }
 0x134   : > { %v1081_v54 = vpop.f32.mrf.mxu2  ;;  %v1120_v55 = vpop.f32.mrf.mxu3 }
 0x135   : > { %1772 = vst [vmem:[%s2159_s28 + $0x2c0] sm:$0xff] %v1081_v54 }
 0x136   : > { %1782 = vst [vmem:[%s2159_s28 + $0x2e0] sm:$0xff] %v1120_v55 }
 0x139   : > { %v1006_v56 = vpop.f32.mrf.mxu0  ;;  %v1045_v57 = vpop.f32.mrf.mxu1 }
 0x13a   : > { %1753 = vst [vmem:[%s2159_s28 + $0x288] sm:$0xff] %v1006_v56 }
 0x13b   : > { %1763 = vst [vmem:[%s2159_s28 + $0x2a8] sm:$0xff] %v1045_v57 }
 0x13c   : > { %v1084_v58 = vpop.f32.mrf.mxu2  ;;  %v1123_v59 = vpop.f32.mrf.mxu3 }
 0x13d   : > { %1773 = vst [vmem:[%s2159_s28 + $0x2c8] sm:$0xff] %v1084_v58 }
 0x13e   : > { %1783 = vst [vmem:[%s2159_s28 + $0x2e8] sm:$0xff] %v1123_v59 }
 0x141   : > { %v1009_v60 = vpop.f32.mrf.mxu0  ;;  %v1048_v61 = vpop.f32.mrf.mxu1 }
 0x142   : > { %1754 = vst [vmem:[%s2159_s28 + $0x290] sm:$0xff] %v1009_v60 }
 0x143   : > { %1764 = vst [vmem:[%s2159_s28 + $0x2b0] sm:$0xff] %v1048_v61 }
 0x144   : > { %v1087_v62 = vpop.f32.mrf.mxu2  ;;  %v1126_v63 = vpop.f32.mrf.mxu3 }
 0x145   : > { %1774 = vst [vmem:[%s2159_s28 + $0x2d0] sm:$0xff] %v1087_v62 }
 0x146   : > { %1784 = vst [vmem:[%s2159_s28 + $0x2f0] sm:$0xff] %v1126_v63 }
 0x149   : > { %v1012_v1 = vpop.f32.mrf.mxu0  ;;  %v1051_v2 = vpop.f32.mrf.mxu1 }
 0x14a   : > { %1755 = vst [vmem:[%s2159_s28 + $0x298] sm:$0xff] %v1012_v1 }
 0x14b   : > { %1765 = vst [vmem:[%s2159_s28 + $0x2b8] sm:$0xff] %v1051_v2 }
 0x14c   : > { %v1090_v3 = vpop.f32.mrf.mxu2  ;;  %v1129_v4 = vpop.f32.mrf.mxu3 }
 0x14d   : > { %1775 = vst [vmem:[%s2159_s28 + $0x2d8] sm:$0xff] %v1090_v3 }
 0x14e   : > { %1785 = vst [vmem:[%s2159_s28 + $0x2f8] sm:$0xff] %v1129_v4 }
 0x151   : > { %v1159_v5 = vpop.f32.mrf.mxu0  ;;  %v1198_v6 = vpop.f32.mrf.mxu1 }
 0x152   : > { %1792 = vst [vmem:[%s2159_s28 + $0x300] sm:$0xff] %v1159_v5 }
 0x153   : > { %1802 = vst [vmem:[%s2159_s28 + $0x320] sm:$0xff] %v1198_v6 }
 0x154   : > { %v1237_v7 = vpop.f32.mrf.mxu2  ;;  %v1276_v8 = vpop.f32.mrf.mxu3 }
 0x155   : > { %1812 = vst [vmem:[%s2159_s28 + $0x340] sm:$0xff] %v1237_v7 }
 0x156   : > { %1822 = vst [vmem:[%s2159_s28 + $0x360] sm:$0xff] %v1276_v8 }
 0x159   : > { %v1162_v9 = vpop.f32.mrf.mxu0  ;;  %v1201_v10 = vpop.f32.mrf.mxu1 }
 0x15a   : > { %1793 = vst [vmem:[%s2159_s28 + $0x308] sm:$0xff] %v1162_v9 }
 0x15b   : > { %1803 = vst [vmem:[%s2159_s28 + $0x328] sm:$0xff] %v1201_v10 }
 0x15c   : > { %v1240_v11 = vpop.f32.mrf.mxu2  ;;  %v1279_v12 = vpop.f32.mrf.mxu3 }
 0x15d   : > { %1813 = vst [vmem:[%s2159_s28 + $0x348] sm:$0xff] %v1240_v11 }
 0x15e   : > { %1823 = vst [vmem:[%s2159_s28 + $0x368] sm:$0xff] %v1279_v12 }
 0x161   : > { %v1165_v16 = vpop.f32.mrf.mxu0  ;;  %v1204_v17 = vpop.f32.mrf.mxu1 }
 0x162   : > { %1794 = vst [vmem:[%s2159_s28 + $0x310] sm:$0xff] %v1165_v16 }
 0x163   : > { %1804 = vst [vmem:[%s2159_s28 + $0x330] sm:$0xff] %v1204_v17 }
 0x164   : > { %v1243_v18 = vpop.f32.mrf.mxu2  ;;  %v1282_v19 = vpop.f32.mrf.mxu3 }
 0x165   : > { %1814 = vst [vmem:[%s2159_s28 + $0x350] sm:$0xff] %v1243_v18 }
 0x166   : > { %1824 = vst [vmem:[%s2159_s28 + $0x370] sm:$0xff] %v1282_v19 }
 0x169   : > { %v1168_v20 = vpop.f32.mrf.mxu0  ;;  %v1207_v21 = vpop.f32.mrf.mxu1 }
 0x16a   : > { %1795 = vst [vmem:[%s2159_s28 + $0x318] sm:$0xff] %v1168_v20 }
 0x16b   : > { %1805 = vst [vmem:[%s2159_s28 + $0x338] sm:$0xff] %v1207_v21 }
 0x16c   : > { %v1246_v22 = vpop.f32.mrf.mxu2  ;;  %v1285_v23 = vpop.f32.mrf.mxu3 }
 0x16d   : > { %1815 = vst [vmem:[%s2159_s28 + $0x358] sm:$0xff] %v1246_v22 }
 0x16e   : > { %1825 = vst [vmem:[%s2159_s28 + $0x378] sm:$0xff] %v1285_v23 }
 0x171   : > { %v1315_v24 = vpop.f32.mrf.mxu0  ;;  %v1354_v25 = vpop.f32.mrf.mxu1 }
 0x172   : > { %1832 = vst [vmem:[%s2159_s28 + $0x380] sm:$0xff] %v1315_v24 }
 0x173   : > { %1842 = vst [vmem:[%s2159_s28 + $0x3a0] sm:$0xff] %v1354_v25 }
 0x174   : > { %v1393_v26 = vpop.f32.mrf.mxu2  ;;  %v1432_v27 = vpop.f32.mrf.mxu3 }
 0x175   : > { %1852 = vst [vmem:[%s2159_s28 + $0x3c0] sm:$0xff] %v1393_v26 }
 0x176   : > { %1862 = vst [vmem:[%s2159_s28 + $0x3e0] sm:$0xff] %v1432_v27 }
 0x179   : > { %v1318_v28 = vpop.f32.mrf.mxu0  ;;  %v1357_v29 = vpop.f32.mrf.mxu1 }
 0x17a   : > { %1833 = vst [vmem:[%s2159_s28 + $0x388] sm:$0xff] %v1318_v28 }
 0x17b   : > { %1843 = vst [vmem:[%s2159_s28 + $0x3a8] sm:$0xff] %v1357_v29 }
 0x17c   : > { %v1396_v30 = vpop.f32.mrf.mxu2  ;;  %v1435_v31 = vpop.f32.mrf.mxu3 }
 0x17d   : > { %1853 = vst [vmem:[%s2159_s28 + $0x3c8] sm:$0xff] %v1396_v30 }
 0x17e   : > { %1863 = vst [vmem:[%s2159_s28 + $0x3e8] sm:$0xff] %v1435_v31 }
 0x181   : > { %v1321_v0 = vpop.f32.mrf.mxu0  ;;  %v1360_v32 = vpop.f32.mrf.mxu1 }
 0x182   : > { %1834 = vst [vmem:[%s2159_s28 + $0x390] sm:$0xff] %v1321_v0 }
 0x183   : > { %1844 = vst [vmem:[%s2159_s28 + $0x3b0] sm:$0xff] %v1360_v32 }
 0x184   : > { %v1399_v33 = vpop.f32.mrf.mxu2  ;;  %v1438_v34 = vpop.f32.mrf.mxu3 }
 0x185   : > { %1854 = vst [vmem:[%s2159_s28 + $0x3d0] sm:$0xff] %v1399_v33 }
 0x186   : > { %1864 = vst [vmem:[%s2159_s28 + $0x3f0] sm:$0xff] %v1438_v34 }
 0x189   : > { %v1324_v13 = vpop.f32.mrf.mxu0  ;;  %v1363_v35 = vpop.f32.mrf.mxu1 }
 0x18a   : > { %1835 = vst [vmem:[%s2159_s28 + $0x398] sm:$0xff] %v1324_v13 }
 0x18b   : > { %1845 = vst [vmem:[%s2159_s28 + $0x3b8] sm:$0xff] %v1363_v35 }
 0x18c   : > { %v1402_v36 = vpop.f32.mrf.mxu2  ;;  %v1441_v37 = vpop.f32.mrf.mxu3 }
 0x18d   : > { %1855 = vst [vmem:[%s2159_s28 + $0x3d8] sm:$0xff] %v1402_v36 }
 0x18e   : > { %1865 = vst [vmem:[%s2159_s28 + $0x3f8] sm:$0xff] %v1441_v37 }
 0x18f PF: > { %s12_s11 = sadd.s32 1, %s1916_s11   ;;  %s2445_s9 = smov %s1912_s10 }
 0x190   : > { %p9_p5 = scmp.ge.s32.totalorder %s12_s11, 4   ;;  %s2446_s10 = smov %s2448_s12 }
 0x192   :  { %11 = sbr.rel (!%p9_p5) target bundleno = 2 (0x2), region = 120 }

</bundles_post_ra>
